<compile_context>
chip_gen: v6e
topology: v6e:2x2x1
jax: 0.10.0
libtpu: 0.0.40
codegen_flags: <defaults>
</compile_context>

<pallas_src>
import math

import jax
import jax.numpy as jnp
from jax import lax
from jax.experimental import pallas as pl
from jax.experimental.pallas import tpu as pltpu

# ----------------------------- small config ---------------------------------
BATCH = 2
AUDIO_LEN = 320          # raw waveform length
CONV_DIM = 32            # feature-extractor channels   (real HuBERT: 512)
HIDDEN = 32              # hidden_size                  (real HuBERT: 768)
NUM_HEADS = 4
HEAD_DIM = HIDDEN // NUM_HEADS
NUM_LAYERS = 2           # transformer layers           (real HuBERT: 12)
FFN_DIM = 64             # intermediate_size            (real HuBERT: 3072)
ADAPTER = 64             # adapter_hidden_size (module default)
NUM_CLASSES = 36
LANE = 128               # classifier logits padded to a full lane tile
K0, S0 = 10, 5           # feature-extractor conv 0
K1, S1 = 4, 2            # feature-extractor conv 1
POS_K = 3                # positional conv kernel (real HuBERT: 128, groups 16)
EPS = 1e-5

T1 = (AUDIO_LEN - K0) // S0 + 1    # 63  after conv0
T2 = (T1 - K1) // S1 + 1           # 30  after conv1 (= encoder sequence length)
T1_PAD = 64                        # sublane-aligned scratch rows for conv0 output


def _align8(n):
    return (n + 7) // 8 * 8


# ------------------------ weight-slab row layout (8-aligned) ------------------
OFF_C0 = 0                                   # conv0 weight      (K0, CONV_DIM)
OFF_C1 = _align8(OFF_C0 + K0)                # 4 taps            (CONV_DIM, CONV_DIM)
OFF_FP = OFF_C1 + K1 * CONV_DIM              # feature proj      (CONV_DIM, HIDDEN)
OFF_POS = OFF_FP + CONV_DIM                  # 3 taps            (HIDDEN, HIDDEN)
OFF_LAYERS = OFF_POS + POS_K * HIDDEN
LAYER_ROWS = 3 * HIDDEN + FFN_DIM            # qkv(32) + wo(32) + ff1(32) + ff2(64)
OFF_AW1 = OFF_LAYERS + NUM_LAYERS * LAYER_ROWS
OFF_AW2 = OFF_AW1 + HIDDEN
OFF_CW1 = OFF_AW2 + ADAPTER
OFF_CW2 = OFF_CW1 + HIDDEN
RW = OFF_CW2 + ADAPTER                       # 784 rows, multiple of 8

# ------------------------ vector-slab row layout ------------------------------
V_GN_G, V_GN_B = 0, 1
V_FPLN_G, V_FPLN_B = 2, 3
V_FP_B = 4
V_POS_B = 5
V_ENC_G, V_ENC_B = 6, 7
V_LAYER0 = 8
V_PER_LAYER = 8        # bqkv, bo, ln1_g, ln1_b, b_ff1, b_ff2, ln2_g, ln2_b
V_AB1 = V_LAYER0 + NUM_LAYERS * V_PER_LAYER
V_AB2 = V_AB1 + 1
V_CB1 = V_AB2 + 1
V_CB2 = V_CB1 + 1
NV = _align8(V_CB2 + 1)                      # 32 rows


# ------------------------------ in-kernel helpers ----------------------------
def _gelu(x):
    # TODO(synk): PyTorch HuBERT uses erf GELU; tanh approximation used here.
    return jax.nn.gelu(x, approximate=True)


def _layer_norm(x, g, b):
    mu = jnp.mean(x, axis=-1, keepdims=True)
    var = jnp.mean((x - mu) ** 2, axis=-1, keepdims=True)
    return (x - mu) * lax.rsqrt(var + EPS) * g + b


# ------------------------------ the fused kernel -----------------------------
def _hubert_kernel(a_ref, vec_ref, w_ref, o_ref, ysc_ref, hsc_ref):
    f32 = jnp.float32

    def W(off, rows, cols):
        # static, 8-aligned row slice of the packed weight slab
        return w_ref[pl.ds(off, rows), pl.ds(0, cols)]

    V = vec_ref[...]                               # (NV, 128), loaded once

    def vrow(r, width):
        return V[r:r + 1, :width]

    # ---------------- feature extractor ----------------
    # conv0 (K=10, stride=5, Cin=1, bias=False): host-side im2col -> one matmul.
    y = jnp.dot(a_ref[...], W(OFF_C0, K0, CONV_DIM), preferred_element_type=f32)  # (T1, C)

    # GroupNorm(num_groups == num_channels): per-channel stats over time, + GELU.
    mu = jnp.mean(y, axis=0, keepdims=True)
    var = jnp.mean((y - mu) ** 2, axis=0, keepdims=True)
    y = _gelu((y - mu) * lax.rsqrt(var + EPS) * vrow(V_GN_G, CONV_DIM)
              + vrow(V_GN_B, CONV_DIM))

    # conv1 (K=4, stride=2, bias=False) + GELU: sublane-strided tap reads from
    # a VMEM scratch instead of 0/1 selection matmuls.
    ysc_ref[pl.ds(0, T1), :] = y
    x = jnp.zeros((T2, CONV_DIM), f32)
    for tap_k in range(K1):
        tap = ysc_ref[pl.ds(tap_k, T2, stride=S1), :]                    # rows 2t+k
        x = x + jnp.dot(tap, W(OFF_C1 + tap_k * CONV_DIM, CONV_DIM, CONV_DIM),
                        preferred_element_type=f32)
    x = _gelu(x)                                                         # (T2, C)

    # ---------------- feature projection: LN -> Linear (Dropout = identity) ----
    x = _layer_norm(x, vrow(V_FPLN_G, CONV_DIM), vrow(V_FPLN_B, CONV_DIM))
    h = (jnp.dot(x, W(OFF_FP, CONV_DIM, HIDDEN), preferred_element_type=f32)
         + vrow(V_FP_B, HIDDEN))

    # ---------------- positional conv embedding + encoder LN ----------------
    # TODO(synk): real HuBERT pos-conv is kernel=128, groups=16, weight-normed;
    # approximated by a dense kernel=3 SAME conv.  Zero-padded scratch provides
    # the shifted neighbours without selection matmuls.
    hsc_ref[...] = jnp.zeros((T2 + 2, HIDDEN), f32)
    hsc_ref[pl.ds(1, T2), :] = h
    prev = hsc_ref[pl.ds(0, T2), :]                                      # h[t-1]
    nxt = hsc_ref[pl.ds(2, T2), :]                                       # h[t+1]
    pos = (jnp.dot(prev, W(OFF_POS, HIDDEN, HIDDEN), preferred_element_type=f32)
           + jnp.dot(h, W(OFF_POS + HIDDEN, HIDDEN, HIDDEN), preferred_element_type=f32)
           + jnp.dot(nxt, W(OFF_POS + 2 * HIDDEN, HIDDEN, HIDDEN),
                     preferred_element_type=f32))
    pos = _gelu(pos + vrow(V_POS_B, HIDDEN))
    h = _layer_norm(pos + h, vrow(V_ENC_G, HIDDEN), vrow(V_ENC_B, HIDDEN))  # (T2, H)

    # ---------------- transformer encoder (post-LN, fully unrolled) -----------
    scale = 1.0 / math.sqrt(HEAD_DIM)
    for layer in range(NUM_LAYERS):
        wb = OFF_LAYERS + layer * LAYER_ROWS
        vb = V_LAYER0 + layer * V_PER_LAYER
        # one fused QKV matmul, heads concatenated along lanes
        qkv = (jnp.dot(h, W(wb, HIDDEN, 3 * HIDDEN), preferred_element_type=f32)
               + vrow(vb, 3 * HIDDEN))                                   # (T2, 96)
        ctx_heads = []
        for hd in range(NUM_HEADS):
            q = qkv[:, hd * HEAD_DIM:(hd + 1) * HEAD_DIM]
            kx = qkv[:, HIDDEN + hd * HEAD_DIM: HIDDEN + (hd + 1) * HEAD_DIM]
            v = qkv[:, 2 * HIDDEN + hd * HEAD_DIM: 2 * HIDDEN + (hd + 1) * HEAD_DIM]
            s = lax.dot_general(q, kx, (((1,), (1,)), ((), ())),
                                preferred_element_type=f32) * scale      # (T2, T2)
            s = s - jnp.max(s, axis=-1, keepdims=True)
            p = jnp.exp(s)
            p = p * pl.reciprocal(jnp.sum(p, axis=-1, keepdims=True), approx=True)
            ctx_heads.append(jnp.dot(p, v, preferred_element_type=f32))  # (T2, DH)
        ctx = jnp.concatenate(ctx_heads, axis=-1)                        # (T2, H)
        attn = (jnp.dot(ctx, W(wb + HIDDEN, HIDDEN, HIDDEN), preferred_element_type=f32)
                + vrow(vb + 1, HIDDEN))
        h = _layer_norm(attn + h, vrow(vb + 2, HIDDEN), vrow(vb + 3, HIDDEN))
        ff = (jnp.dot(
                _gelu(jnp.dot(h, W(wb + 2 * HIDDEN, HIDDEN, FFN_DIM),
                              preferred_element_type=f32) + vrow(vb + 4, FFN_DIM)),
                W(wb + 3 * HIDDEN, FFN_DIM, HIDDEN), preferred_element_type=f32)
              + vrow(vb + 5, HIDDEN))
        h = _layer_norm(ff + h, vrow(vb + 6, HIDDEN), vrow(vb + 7, HIDDEN))

    # ---------------- module head (exactly the PyTorch forward) ---------------
    # F.layer_norm(x, x.shape[1:]): normalize jointly over (T, H), no affine.
    mu = jnp.mean(h, keepdims=True)
    var = jnp.mean((h - mu) ** 2, keepdims=True)
    xn = (h - mu) * lax.rsqrt(var + EPS)
    # adaptor: Linear -> ReLU -> Dropout(identity) -> Linear
    a = jnp.maximum(jnp.dot(xn, W(OFF_AW1, HIDDEN, ADAPTER),
                            preferred_element_type=f32) + vrow(V_AB1, ADAPTER), 0.0)
    a = (jnp.dot(a, W(OFF_AW2, ADAPTER, HIDDEN), preferred_element_type=f32)
         + vrow(V_AB2, HIDDEN))
    pooled = jnp.max(a, axis=0, keepdims=True)                           # max over seq
    # classifier: Linear -> ReLU -> Dropout(identity) -> Linear (lane-padded out)
    c = jnp.maximum(jnp.dot(pooled, W(OFF_CW1, HIDDEN, ADAPTER),
                            preferred_element_type=f32) + vrow(V_CB1, ADAPTER), 0.0)
    o_ref[...] = (jnp.dot(c, W(OFF_CW2, ADAPTER, LANE), preferred_element_type=f32)
                  + vrow(V_CB2, LANE))


# ------------------------------ host-side wrapper -----------------------------
def hubert_classifier_forward(params, audio):
    B = audio.shape[0]
    # conv0 im2col on the host (tiny: 63x10 floats per element, free layout op)
    idx = jnp.arange(T1)[:, None] * S0 + jnp.arange(K0)[None, :]
    xcol = audio[:, idx]                                                 # (B, T1, K0)
    out = pl.pallas_call(
        _hubert_kernel,
        grid=(B,),
        out_shape=jax.ShapeDtypeStruct((B, 1, LANE), jnp.float32),
        in_specs=[
            pl.BlockSpec((None, T1, K0), lambda i: (i, 0, 0)),           # activation
            pl.BlockSpec((NV, LANE), lambda i: (0, 0)),                  # vector slab
            pl.BlockSpec((RW, LANE), lambda i: (0, 0)),                  # weight slab
        ],
        out_specs=pl.BlockSpec((None, 1, LANE), lambda i: (i, 0, 0)),
        scratch_shapes=[
            pltpu.VMEM((T1_PAD, CONV_DIM), jnp.float32),   # conv0 output (strided taps)
            pltpu.VMEM((T2 + 2, HIDDEN), jnp.float32),     # zero-padded pos-conv shifts
        ],
        compiler_params=pltpu.CompilerParams(
            dimension_semantics=("parallel",),   # v7x: one batch element per TC
        ),
    )(xcol, params["vslab"], params["wslab"])
    # Lane-dense (128-wide) store inside the kernel; slice the real classes here.
    return out[:, 0, :NUM_CLASSES]


# ------------------------------ parameters ------------------------------------
def init_params(key):
    keys = iter(jax.random.split(key, 20))

    def w(shape, scale=0.05):
        return scale * jax.random.normal(next(keys), shape, dtype=jnp.float32)

    # ---- packed weight slab (RW, 128) ----
    wslab = jnp.zeros((RW, LANE), jnp.float32)

    def put(slab, off, mat):
        r, c = mat.shape
        return slab.at[off:off + r, :c].set(mat)

    wslab = put(wslab, OFF_C0, w((K0, CONV_DIM)))                        # conv0
    conv1 = w((K1, CONV_DIM, CONV_DIM))
    for k in range(K1):
        wslab = put(wslab, OFF_C1 + k * CONV_DIM, conv1[k])              # conv1 taps
    wslab = put(wslab, OFF_FP, w((CONV_DIM, HIDDEN)))                    # feature proj
    posw = w((POS_K, HIDDEN, HIDDEN))
    for k in range(POS_K):
        wslab = put(wslab, OFF_POS + k * HIDDEN, posw[k])                # pos-conv taps
    for layer in range(NUM_LAYERS):
        base = OFF_LAYERS + layer * LAYER_ROWS
        wslab = put(wslab, base, w((HIDDEN, 3 * HIDDEN)))                # fused QKV
        wslab = put(wslab, base + HIDDEN, w((HIDDEN, HIDDEN)))           # out proj
        wslab = put(wslab, base + 2 * HIDDEN, w((HIDDEN, FFN_DIM)))      # ffn1
        wslab = put(wslab, base + 3 * HIDDEN, w((FFN_DIM, HIDDEN)))      # ffn2
    wslab = put(wslab, OFF_AW1, w((HIDDEN, ADAPTER)))
    wslab = put(wslab, OFF_AW2, w((ADAPTER, HIDDEN)))
    wslab = put(wslab, OFF_CW1, w((HIDDEN, ADAPTER)))
    wslab = put(wslab, OFF_CW2, w((ADAPTER, NUM_CLASSES)))               # 36 -> 128 pad

    # ---- packed vector slab (NV, 128): LN gains = 1, biases = 0 ----
    vslab = jnp.zeros((NV, LANE), jnp.float32)

    def ones_row(slab, r, width):
        return slab.at[r, :width].set(1.0)

    vslab = ones_row(vslab, V_GN_G, CONV_DIM)
    vslab = ones_row(vslab, V_FPLN_G, CONV_DIM)
    vslab = ones_row(vslab, V_ENC_G, HIDDEN)
    for layer in range(NUM_LAYERS):
        b = V_LAYER0 + layer * V_PER_LAYER
        vslab = ones_row(vslab, b + 2, HIDDEN)   # ln1 gain
        vslab = ones_row(vslab, b + 6, HIDDEN)   # ln2 gain

    return {"wslab": wslab, "vslab": vslab}


# ------------------------------ main ------------------------------------------
if __name__ == "__main__":
    root = jax.random.PRNGKey(0)
    pkey, xkey = jax.random.split(root)
    params = init_params(pkey)
    audio = jax.random.normal(xkey, (BATCH, AUDIO_LEN), dtype=jnp.float32)

    forward = jax.jit(hubert_classifier_forward)
    logits = forward(params, audio)
    jax.block_until_ready(logits)

    assert logits.shape == (BATCH, NUM_CLASSES), logits.shape
    assert bool(jnp.all(jnp.isfinite(logits)))
    print("KERNEL_OK")
</pallas_src>

<mosaic_0001>
module attributes {stable_mosaic.version = 11 : i64} {
  func.func @_hubert_kernel(%arg0: i32, %arg1: memref<1x63x10xf32, #tpu.memory_space<vmem>>, %arg2: memref<32x128xf32, #tpu.memory_space<vmem>>, %arg3: memref<784x128xf32, #tpu.memory_space<vmem>>, %arg4: memref<1x1x128xf32, #tpu.memory_space<vmem>>, %arg5: memref<64x32xf32, #tpu.memory_space<vmem>>, %arg6: memref<32x32xf32, #tpu.memory_space<vmem>>) attributes {dimension_semantics = [#tpu.dimension_semantics<parallel>], iteration_bounds = array<i64: 2>, scalar_prefetch = 0 : i64, scratch_operands = 2 : i64, tpu.core_type = #tpu.core_type<tc>, window_params = [{transform_indices = @transform_0, window_bounds = array<i64: 1, 63, 10>}, {pipeline_mode = #tpu.pipeline_mode<synchronous>, transform_indices = @transform_1, window_bounds = array<i64: 32, 128>}, {pipeline_mode = #tpu.pipeline_mode<synchronous>, transform_indices = @transform_2, window_bounds = array<i64: 784, 128>}, {transform_indices = @transform_3, window_bounds = array<i64: 1, 1, 128>}]} {
    %c0 = arith.constant 0 : index
    %c0_0 = arith.constant 0 : index
    %0 = vector.load %arg2[%c0, %c0_0] : memref<32x128xf32, #tpu.memory_space<vmem>>, vector<32x128xf32>
    %c0_1 = arith.constant 0 : index
    %c0_2 = arith.constant 0 : index
    %c0_3 = arith.constant 0 : index
    %1 = vector.load %arg1[%c0_1, %c0_2, %c0_3] : memref<1x63x10xf32, #tpu.memory_space<vmem>>, vector<1x63x10xf32>
    %2 = vector.shape_cast %1 : vector<1x63x10xf32> to vector<63x10xf32>
    %c0_4 = arith.constant 0 : index
    %c0_5 = arith.constant 0 : index
    %3 = vector.load %arg3[%c0_4, %c0_5] : memref<784x128xf32, #tpu.memory_space<vmem>>, vector<10x32xf32>
    %cst = arith.constant dense<0.000000e+00> : vector<63x32xf32>
    %4 = tpu.matmul %2, %3, %cst {dimension_numbers = #tpu.dot_dimension_numbers<[1], [0], [0], [1], [0, 0, 1, 1], [], []>} : vector<63x10xf32>, vector<10x32xf32>, vector<63x32xf32> -> vector<63x32xf32>
    %cst_6 = arith.constant dense<0.000000e+00> : vector<32xf32>
    %5 = vector.multi_reduction <add>, %4, %cst_6 [0] : vector<63x32xf32> to vector<32xf32>
    %6 = vector.shape_cast %5 : vector<32xf32> to vector<1x32xf32>
    %cst_7 = arith.constant 6.300000e+01 : f32
    %7 = vector.broadcast %cst_7 : f32 to vector<1x32xf32>
    %8 = arith.divf %6, %7 : vector<1x32xf32>
    %9 = vector.broadcast %8 : vector<1x32xf32> to vector<63x32xf32>
    %10 = arith.subf %4, %9 : vector<63x32xf32>
    %11 = arith.mulf %10, %10 : vector<63x32xf32>
    %cst_8 = arith.constant dense<0.000000e+00> : vector<32xf32>
    %12 = vector.multi_reduction <add>, %11, %cst_8 [0] : vector<63x32xf32> to vector<32xf32>
    %13 = vector.shape_cast %12 : vector<32xf32> to vector<1x32xf32>
    %cst_9 = arith.constant 6.300000e+01 : f32
    %14 = vector.broadcast %cst_9 : f32 to vector<1x32xf32>
    %15 = arith.divf %13, %14 : vector<1x32xf32>
    %16 = vector.broadcast %8 : vector<1x32xf32> to vector<63x32xf32>
    %17 = arith.subf %4, %16 : vector<63x32xf32>
    %cst_10 = arith.constant 9.99999974E-6 : f32
    %18 = vector.broadcast %cst_10 : f32 to vector<1x32xf32>
    %19 = arith.addf %15, %18 : vector<1x32xf32>
    %20 = math.rsqrt %19 : vector<1x32xf32>
    %21 = vector.broadcast %20 : vector<1x32xf32> to vector<63x32xf32>
    %22 = arith.mulf %17, %21 : vector<63x32xf32>
    %23 = vector.extract_strided_slice %0 {offsets = [0, 0], sizes = [1, 32], strides = [1, 1]} : vector<32x128xf32> to vector<1x32xf32>
    %24 = vector.broadcast %23 : vector<1x32xf32> to vector<63x32xf32>
    %25 = arith.mulf %22, %24 : vector<63x32xf32>
    %26 = vector.extract_strided_slice %0 {offsets = [1, 0], sizes = [1, 32], strides = [1, 1]} : vector<32x128xf32> to vector<1x32xf32>
    %27 = vector.broadcast %26 : vector<1x32xf32> to vector<63x32xf32>
    %28 = arith.addf %25, %27 : vector<63x32xf32>
    %29 = arith.mulf %28, %28 : vector<63x32xf32>
    %30 = arith.mulf %28, %29 : vector<63x32xf32>
    %cst_11 = arith.constant 4.471500e-02 : f32
    %31 = vector.broadcast %cst_11 : f32 to vector<63x32xf32>
    %32 = arith.mulf %31, %30 : vector<63x32xf32>
    %33 = arith.addf %28, %32 : vector<63x32xf32>
    %cst_12 = arith.constant 0.797884583 : f32
    %34 = vector.broadcast %cst_12 : f32 to vector<63x32xf32>
    %35 = arith.mulf %34, %33 : vector<63x32xf32>
    %36 = math.tanh %35 : vector<63x32xf32>
    %cst_13 = arith.constant 1.000000e+00 : f32
    %37 = vector.broadcast %cst_13 : f32 to vector<63x32xf32>
    %38 = arith.addf %37, %36 : vector<63x32xf32>
    %cst_14 = arith.constant 5.000000e-01 : f32
    %39 = vector.broadcast %cst_14 : f32 to vector<63x32xf32>
    %40 = arith.mulf %39, %38 : vector<63x32xf32>
    %41 = arith.mulf %28, %40 : vector<63x32xf32>
    %c0_15 = arith.constant 0 : index
    %c0_16 = arith.constant 0 : index
    %42 = vector.load %arg5[%c0_15, %c0_16] : memref<64x32xf32, #tpu.memory_space<vmem>>, vector<63x32xf32>
    tpu.vector_store %arg5[%c0_15, %c0_16], %41 {strides = array<i32>} : memref<64x32xf32, #tpu.memory_space<vmem>>, vector<63x32xf32>,
    %cst_17 = arith.constant 0.000000e+00 : f32
    %43 = vector.broadcast %cst_17 : f32 to vector<30x32xf32>
    %c0_18 = arith.constant 0 : index
    %c0_19 = arith.constant 0 : index
    %44 = tpu.strided_load %arg5[%c0_18, %c0_19] {strides = array<i32: 2, 1>} : memref<64x32xf32, #tpu.memory_space<vmem>>, vector<30x32xf32>
    %c16 = arith.constant 16 : index
    %c0_20 = arith.constant 0 : index
    %45 = vector.load %arg3[%c16, %c0_20] : memref<784x128xf32, #tpu.memory_space<vmem>>, vector<32x32xf32>
    %cst_21 = arith.constant dense<0.000000e+00> : vector<30x32xf32>
    %46 = tpu.matmul %44, %45, %cst_21 {dimension_numbers = #tpu.dot_dimension_numbers<[1], [0], [0], [1], [0, 0, 1, 1], [], []>} : vector<30x32xf32>, vector<32x32xf32>, vector<30x32xf32> -> vector<30x32xf32>
    %47 = arith.addf %43, %46 : vector<30x32xf32>
    %c1 = arith.constant 1 : index
    %c0_22 = arith.constant 0 : index
    %48 = tpu.strided_load %arg5[%c1, %c0_22] {strides = array<i32: 2, 1>} : memref<64x32xf32, #tpu.memory_space<vmem>>, vector<30x32xf32>
    %c48 = arith.constant 48 : index
    %c0_23 = arith.constant 0 : index
    %49 = vector.load %arg3[%c48, %c0_23] : memref<784x128xf32, #tpu.memory_space<vmem>>, vector<32x32xf32>
    %cst_24 = arith.constant dense<0.000000e+00> : vector<30x32xf32>
    %50 = tpu.matmul %48, %49, %cst_24 {dimension_numbers = #tpu.dot_dimension_numbers<[1], [0], [0], [1], [0, 0, 1, 1], [], []>} : vector<30x32xf32>, vector<32x32xf32>, vector<30x32xf32> -> vector<30x32xf32>
    %51 = arith.addf %47, %50 : vector<30x32xf32>
    %c2 = arith.constant 2 : index
    %c0_25 = arith.constant 0 : index
    %52 = tpu.strided_load %arg5[%c2, %c0_25] {strides = array<i32: 2, 1>} : memref<64x32xf32, #tpu.memory_space<vmem>>, vector<30x32xf32>
    %c80 = arith.constant 80 : index
    %c0_26 = arith.constant 0 : index
    %53 = vector.load %arg3[%c80, %c0_26] : memref<784x128xf32, #tpu.memory_space<vmem>>, vector<32x32xf32>
    %cst_27 = arith.constant dense<0.000000e+00> : vector<30x32xf32>
    %54 = tpu.matmul %52, %53, %cst_27 {dimension_numbers = #tpu.dot_dimension_numbers<[1], [0], [0], [1], [0, 0, 1, 1], [], []>} : vector<30x32xf32>, vector<32x32xf32>, vector<30x32xf32> -> vector<30x32xf32>
    %55 = arith.addf %51, %54 : vector<30x32xf32>
    %c3 = arith.constant 3 : index
    %c0_28 = arith.constant 0 : index
    %56 = tpu.strided_load %arg5[%c3, %c0_28] {strides = array<i32: 2, 1>} : memref<64x32xf32, #tpu.memory_space<vmem>>, vector<30x32xf32>
    %c112 = arith.constant 112 : index
    %c0_29 = arith.constant 0 : index
    %57 = vector.load %arg3[%c112, %c0_29] : memref<784x128xf32, #tpu.memory_space<vmem>>, vector<32x32xf32>
    %cst_30 = arith.constant dense<0.000000e+00> : vector<30x32xf32>
    %58 = tpu.matmul %56, %57, %cst_30 {dimension_numbers = #tpu.dot_dimension_numbers<[1], [0], [0], [1], [0, 0, 1, 1], [], []>} : vector<30x32xf32>, vector<32x32xf32>, vector<30x32xf32> -> vector<30x32xf32>
    %59 = arith.addf %55, %58 : vector<30x32xf32>
    %60 = arith.mulf %59, %59 : vector<30x32xf32>
    %61 = arith.mulf %59, %60 : vector<30x32xf32>
    %cst_31 = arith.constant 4.471500e-02 : f32
    %62 = vector.broadcast %cst_31 : f32 to vector<30x32xf32>
    %63 = arith.mulf %62, %61 : vector<30x32xf32>
    %64 = arith.addf %59, %63 : vector<30x32xf32>
    %cst_32 = arith.constant 0.797884583 : f32
    %65 = vector.broadcast %cst_32 : f32 to vector<30x32xf32>
    %66 = arith.mulf %65, %64 : vector<30x32xf32>
    %67 = math.tanh %66 : vector<30x32xf32>
    %cst_33 = arith.constant 1.000000e+00 : f32
    %68 = vector.broadcast %cst_33 : f32 to vector<30x32xf32>
    %69 = arith.addf %68, %67 : vector<30x32xf32>
    %cst_34 = arith.constant 5.000000e-01 : f32
    %70 = vector.broadcast %cst_34 : f32 to vector<30x32xf32>
    %71 = arith.mulf %70, %69 : vector<30x32xf32>
    %72 = arith.mulf %59, %71 : vector<30x32xf32>
    %73 = vector.extract_strided_slice %0 {offsets = [2, 0], sizes = [1, 32], strides = [1, 1]} : vector<32x128xf32> to vector<1x32xf32>
    %74 = vector.extract_strided_slice %0 {offsets = [3, 0], sizes = [1, 32], strides = [1, 1]} : vector<32x128xf32> to vector<1x32xf32>
    %cst_35 = arith.constant dense<0.000000e+00> : vector<30xf32>
    %75 = vector.multi_reduction <add>, %72, %cst_35 [1] : vector<30x32xf32> to vector<30xf32>
    %76 = vector.shape_cast %75 : vector<30xf32> to vector<30x1xf32>
    %cst_36 = arith.constant 3.200000e+01 : f32
    %77 = vector.broadcast %cst_36 : f32 to vector<30x1xf32>
    %78 = arith.divf %76, %77 : vector<30x1xf32>
    %79 = vector.broadcast %78 : vector<30x1xf32> to vector<30x32xf32>
    %80 = arith.subf %72, %79 : vector<30x32xf32>
    %81 = arith.mulf %80, %80 : vector<30x32xf32>
    %cst_37 = arith.constant dense<0.000000e+00> : vector<30xf32>
    %82 = vector.multi_reduction <add>, %81, %cst_37 [1] : vector<30x32xf32> to vector<30xf32>
    %83 = vector.shape_cast %82 : vector<30xf32> to vector<30x1xf32>
    %cst_38 = arith.constant 3.200000e+01 : f32
    %84 = vector.broadcast %cst_38 : f32 to vector<30x1xf32>
    %85 = arith.divf %83, %84 : vector<30x1xf32>
    %86 = vector.broadcast %78 : vector<30x1xf32> to vector<30x32xf32>
    %87 = arith.subf %72, %86 : vector<30x32xf32>
    %cst_39 = arith.constant 9.99999974E-6 : f32
    %88 = vector.broadcast %cst_39 : f32 to vector<30x1xf32>
    %89 = arith.addf %85, %88 : vector<30x1xf32>
    %90 = math.rsqrt %89 : vector<30x1xf32>
    %91 = vector.broadcast %90 : vector<30x1xf32> to vector<30x32xf32>
    %92 = arith.mulf %87, %91 : vector<30x32xf32>
    %93 = vector.broadcast %73 : vector<1x32xf32> to vector<30x32xf32>
    %94 = arith.mulf %92, %93 : vector<30x32xf32>
    %95 = vector.broadcast %74 : vector<1x32xf32> to vector<30x32xf32>
    %96 = arith.addf %94, %95 : vector<30x32xf32>
    %c144 = arith.constant 144 : index
    %c0_40 = arith.constant 0 : index
    %97 = vector.load %arg3[%c144, %c0_40] : memref<784x128xf32, #tpu.memory_space<vmem>>, vector<32x32xf32>
    %cst_41 = arith.constant dense<0.000000e+00> : vector<30x32xf32>
    %98 = tpu.matmul %96, %97, %cst_41 {dimension_numbers = #tpu.dot_dimension_numbers<[1], [0], [0], [1], [0, 0, 1, 1], [], []>} : vector<30x32xf32>, vector<32x32xf32>, vector<30x32xf32> -> vector<30x32xf32>
    %99 = vector.extract_strided_slice %0 {offsets = [4, 0], sizes = [1, 32], strides = [1, 1]} : vector<32x128xf32> to vector<1x32xf32>
    %100 = vector.broadcast %99 : vector<1x32xf32> to vector<30x32xf32>
    %101 = arith.addf %98, %100 : vector<30x32xf32>
    %cst_42 = arith.constant 0.000000e+00 : f32
    %102 = vector.broadcast %cst_42 : f32 to vector<32x32xf32>
    %c0_43 = arith.constant 0 : index
    %c0_44 = arith.constant 0 : index
    %103 = vector.load %arg6[%c0_43, %c0_44] : memref<32x32xf32, #tpu.memory_space<vmem>>, vector<32x32xf32>
    tpu.vector_store %arg6[%c0_43, %c0_44], %102 {strides = array<i32>} : memref<32x32xf32, #tpu.memory_space<vmem>>, vector<32x32xf32>,
    %c1_45 = arith.constant 1 : index
    %c0_46 = arith.constant 0 : index
    %104 = vector.load %arg6[%c1_45, %c0_46] : memref<32x32xf32, #tpu.memory_space<vmem>>, vector<30x32xf32>
    tpu.vector_store %arg6[%c1_45, %c0_46], %101 {strides = array<i32>} : memref<32x32xf32, #tpu.memory_space<vmem>>, vector<30x32xf32>,
    %c0_47 = arith.constant 0 : index
    %c0_48 = arith.constant 0 : index
    %105 = vector.load %arg6[%c0_47, %c0_48] : memref<32x32xf32, #tpu.memory_space<vmem>>, vector<30x32xf32>
    %c2_49 = arith.constant 2 : index
    %c0_50 = arith.constant 0 : index
    %106 = vector.load %arg6[%c2_49, %c0_50] : memref<32x32xf32, #tpu.memory_space<vmem>>, vector<30x32xf32>
    %c176 = arith.constant 176 : index
    %c0_51 = arith.constant 0 : index
    %107 = vector.load %arg3[%c176, %c0_51] : memref<784x128xf32, #tpu.memory_space<vmem>>, vector<32x32xf32>
    %cst_52 = arith.constant dense<0.000000e+00> : vector<30x32xf32>
    %108 = tpu.matmul %105, %107, %cst_52 {dimension_numbers = #tpu.dot_dimension_numbers<[1], [0], [0], [1], [0, 0, 1, 1], [], []>} : vector<30x32xf32>, vector<32x32xf32>, vector<30x32xf32> -> vector<30x32xf32>
    %c208 = arith.constant 208 : index
    %c0_53 = arith.constant 0 : index
    %109 = vector.load %arg3[%c208, %c0_53] : memref<784x128xf32, #tpu.memory_space<vmem>>, vector<32x32xf32>
    %cst_54 = arith.constant dense<0.000000e+00> : vector<30x32xf32>
    %110 = tpu.matmul %101, %109, %cst_54 {dimension_numbers = #tpu.dot_dimension_numbers<[1], [0], [0], [1], [0, 0, 1, 1], [], []>} : vector<30x32xf32>, vector<32x32xf32>, vector<30x32xf32> -> vector<30x32xf32>
    %111 = arith.addf %108, %110 : vector<30x32xf32>
    %c240 = arith.constant 240 : index
    %c0_55 = arith.constant 0 : index
    %112 = vector.load %arg3[%c240, %c0_55] : memref<784x128xf32, #tpu.memory_space<vmem>>, vector<32x32xf32>
    %cst_56 = arith.constant dense<0.000000e+00> : vector<30x32xf32>
    %113 = tpu.matmul %106, %112, %cst_56 {dimension_numbers = #tpu.dot_dimension_numbers<[1], [0], [0], [1], [0, 0, 1, 1], [], []>} : vector<30x32xf32>, vector<32x32xf32>, vector<30x32xf32> -> vector<30x32xf32>
    %114 = arith.addf %111, %113 : vector<30x32xf32>
    %115 = vector.extract_strided_slice %0 {offsets = [5, 0], sizes = [1, 32], strides = [1, 1]} : vector<32x128xf32> to vector<1x32xf32>
    %116 = vector.broadcast %115 : vector<1x32xf32> to vector<30x32xf32>
    %117 = arith.addf %114, %116 : vector<30x32xf32>
    %118 = arith.mulf %117, %117 : vector<30x32xf32>
    %119 = arith.mulf %117, %118 : vector<30x32xf32>
    %cst_57 = arith.constant 4.471500e-02 : f32
    %120 = vector.broadcast %cst_57 : f32 to vector<30x32xf32>
    %121 = arith.mulf %120, %119 : vector<30x32xf32>
    %122 = arith.addf %117, %121 : vector<30x32xf32>
    %cst_58 = arith.constant 0.797884583 : f32
    %123 = vector.broadcast %cst_58 : f32 to vector<30x32xf32>
    %124 = arith.mulf %123, %122 : vector<30x32xf32>
    %125 = math.tanh %124 : vector<30x32xf32>
    %cst_59 = arith.constant 1.000000e+00 : f32
    %126 = vector.broadcast %cst_59 : f32 to vector<30x32xf32>
    %127 = arith.addf %126, %125 : vector<30x32xf32>
    %cst_60 = arith.constant 5.000000e-01 : f32
    %128 = vector.broadcast %cst_60 : f32 to vector<30x32xf32>
    %129 = arith.mulf %128, %127 : vector<30x32xf32>
    %130 = arith.mulf %117, %129 : vector<30x32xf32>
    %131 = arith.addf %130, %101 : vector<30x32xf32>
    %132 = vector.extract_strided_slice %0 {offsets = [6, 0], sizes = [1, 32], strides = [1, 1]} : vector<32x128xf32> to vector<1x32xf32>
    %133 = vector.extract_strided_slice %0 {offsets = [7, 0], sizes = [1, 32], strides = [1, 1]} : vector<32x128xf32> to vector<1x32xf32>
    %cst_61 = arith.constant dense<0.000000e+00> : vector<30xf32>
    %134 = vector.multi_reduction <add>, %131, %cst_61 [1] : vector<30x32xf32> to vector<30xf32>
    %135 = vector.shape_cast %134 : vector<30xf32> to vector<30x1xf32>
    %cst_62 = arith.constant 3.200000e+01 : f32
    %136 = vector.broadcast %cst_62 : f32 to vector<30x1xf32>
    %137 = arith.divf %135, %136 : vector<30x1xf32>
    %138 = vector.broadcast %137 : vector<30x1xf32> to vector<30x32xf32>
    %139 = arith.subf %131, %138 : vector<30x32xf32>
    %140 = arith.mulf %139, %139 : vector<30x32xf32>
    %cst_63 = arith.constant dense<0.000000e+00> : vector<30xf32>
    %141 = vector.multi_reduction <add>, %140, %cst_63 [1] : vector<30x32xf32> to vector<30xf32>
    %142 = vector.shape_cast %141 : vector<30xf32> to vector<30x1xf32>
    %cst_64 = arith.constant 3.200000e+01 : f32
    %143 = vector.broadcast %cst_64 : f32 to vector<30x1xf32>
    %144 = arith.divf %142, %143 : vector<30x1xf32>
    %145 = vector.broadcast %137 : vector<30x1xf32> to vector<30x32xf32>
    %146 = arith.subf %131, %145 : vector<30x32xf32>
    %cst_65 = arith.constant 9.99999974E-6 : f32
    %147 = vector.broadcast %cst_65 : f32 to vector<30x1xf32>
    %148 = arith.addf %144, %147 : vector<30x1xf32>
    %149 = math.rsqrt %148 : vector<30x1xf32>
    %150 = vector.broadcast %149 : vector<30x1xf32> to vector<30x32xf32>
    %151 = arith.mulf %146, %150 : vector<30x32xf32>
    %152 = vector.broadcast %132 : vector<1x32xf32> to vector<30x32xf32>
    %153 = arith.mulf %151, %152 : vector<30x32xf32>
    %154 = vector.broadcast %133 : vector<1x32xf32> to vector<30x32xf32>
    %155 = arith.addf %153, %154 : vector<30x32xf32>
    %c272 = arith.constant 272 : index
    %c0_66 = arith.constant 0 : index
    %156 = vector.load %arg3[%c272, %c0_66] : memref<784x128xf32, #tpu.memory_space<vmem>>, vector<32x96xf32>
    %cst_67 = arith.constant dense<0.000000e+00> : vector<30x96xf32>
    %157 = tpu.matmul %155, %156, %cst_67 {dimension_numbers = #tpu.dot_dimension_numbers<[1], [0], [0], [1], [0, 0, 1, 1], [], []>} : vector<30x32xf32>, vector<32x96xf32>, vector<30x96xf32> -> vector<30x96xf32>
    %158 = vector.extract_strided_slice %0 {offsets = [8, 0], sizes = [1, 96], strides = [1, 1]} : vector<32x128xf32> to vector<1x96xf32>
    %159 = vector.broadcast %158 : vector<1x96xf32> to vector<30x96xf32>
    %160 = arith.addf %157, %159 : vector<30x96xf32>
    %161 = vector.extract_strided_slice %160 {offsets = [0, 0], sizes = [30, 8], strides = [1, 1]} : vector<30x96xf32> to vector<30x8xf32>
    %162 = vector.extract_strided_slice %160 {offsets = [0, 32], sizes = [30, 8], strides = [1, 1]} : vector<30x96xf32> to vector<30x8xf32>
    %163 = vector.extract_strided_slice %160 {offsets = [0, 64], sizes = [30, 8], strides = [1, 1]} : vector<30x96xf32> to vector<30x8xf32>
    %cst_68 = arith.constant dense<0.000000e+00> : vector<30x30xf32>
    %164 = tpu.matmul %161, %162, %cst_68 {dimension_numbers = #tpu.dot_dimension_numbers<[1], [1], [0], [0], [0, 0, 1, 0], [], []>} : vector<30x8xf32>, vector<30x8xf32>, vector<30x30xf32> -> vector<30x30xf32>
    %cst_69 = arith.constant 0.353553385 : f32
    %165 = vector.broadcast %cst_69 : f32 to vector<30x30xf32>
    %166 = arith.mulf %164, %165 : vector<30x30xf32>
    %cst_70 = arith.constant dense<0xFF800000> : vector<30xf32>
    %167 = vector.multi_reduction <maximumf>, %166, %cst_70 [1] : vector<30x30xf32> to vector<30xf32>
    %168 = vector.shape_cast %167 : vector<30xf32> to vector<30x1xf32>
    %169 = vector.broadcast %168 : vector<30x1xf32> to vector<30x30xf32>
    %170 = arith.subf %166, %169 : vector<30x30xf32>
    %171 = math.exp %170 : vector<30x30xf32>
    %cst_71 = arith.constant dense<0.000000e+00> : vector<30xf32>
    %172 = vector.multi_reduction <add>, %171, %cst_71 [1] : vector<30x30xf32> to vector<30xf32>
    %173 = vector.shape_cast %172 : vector<30xf32> to vector<30x1xf32>
    %174 = tpu.reciprocal %173 {approx = true} : vector<30x1xf32> -> vector<30x1xf32>
    %175 = vector.broadcast %174 : vector<30x1xf32> to vector<30x30xf32>
    %176 = arith.mulf %171, %175 : vector<30x30xf32>
    %cst_72 = arith.constant dense<0.000000e+00> : vector<30x8xf32>
    %177 = tpu.matmul %176, %163, %cst_72 {dimension_numbers = #tpu.dot_dimension_numbers<[1], [0], [0], [1], [0, 0, 1, 1], [], []>} : vector<30x30xf32>, vector<30x8xf32>, vector<30x8xf32> -> vector<30x8xf32>
    %178 = vector.extract_strided_slice %160 {offsets = [0, 8], sizes = [30, 8], strides = [1, 1]} : vector<30x96xf32> to vector<30x8xf32>
    %179 = vector.extract_strided_slice %160 {offsets = [0, 40], sizes = [30, 8], strides = [1, 1]} : vector<30x96xf32> to vector<30x8xf32>
    %180 = vector.extract_strided_slice %160 {offsets = [0, 72], sizes = [30, 8], strides = [1, 1]} : vector<30x96xf32> to vector<30x8xf32>
    %cst_73 = arith.constant dense<0.000000e+00> : vector<30x30xf32>
    %181 = tpu.matmul %178, %179, %cst_73 {dimension_numbers = #tpu.dot_dimension_numbers<[1], [1], [0], [0], [0, 0, 1, 0], [], []>} : vector<30x8xf32>, vector<30x8xf32>, vector<30x30xf32> -> vector<30x30xf32>
    %cst_74 = arith.constant 0.353553385 : f32
    %182 = vector.broadcast %cst_74 : f32 to vector<30x30xf32>
    %183 = arith.mulf %181, %182 : vector<30x30xf32>
    %cst_75 = arith.constant dense<0xFF800000> : vector<30xf32>
    %184 = vector.multi_reduction <maximumf>, %183, %cst_75 [1] : vector<30x30xf32> to vector<30xf32>
    %185 = vector.shape_cast %184 : vector<30xf32> to vector<30x1xf32>
    %186 = vector.broadcast %185 : vector<30x1xf32> to vector<30x30xf32>
    %187 = arith.subf %183, %186 : vector<30x30xf32>
    %188 = math.exp %187 : vector<30x30xf32>
    %cst_76 = arith.constant dense<0.000000e+00> : vector<30xf32>
    %189 = vector.multi_reduction <add>, %188, %cst_76 [1] : vector<30x30xf32> to vector<30xf32>
    %190 = vector.shape_cast %189 : vector<30xf32> to vector<30x1xf32>
    %191 = tpu.reciprocal %190 {approx = true} : vector<30x1xf32> -> vector<30x1xf32>
    %192 = vector.broadcast %191 : vector<30x1xf32> to vector<30x30xf32>
    %193 = arith.mulf %188, %192 : vector<30x30xf32>
    %cst_77 = arith.constant dense<0.000000e+00> : vector<30x8xf32>
    %194 = tpu.matmul %193, %180, %cst_77 {dimension_numbers = #tpu.dot_dimension_numbers<[1], [0], [0], [1], [0, 0, 1, 1], [], []>} : vector<30x30xf32>, vector<30x8xf32>, vector<30x8xf32> -> vector<30x8xf32>
    %195 = vector.extract_strided_slice %160 {offsets = [0, 16], sizes = [30, 8], strides = [1, 1]} : vector<30x96xf32> to vector<30x8xf32>
    %196 = vector.extract_strided_slice %160 {offsets = [0, 48], sizes = [30, 8], strides = [1, 1]} : vector<30x96xf32> to vector<30x8xf32>
    %197 = vector.extract_strided_slice %160 {offsets = [0, 80], sizes = [30, 8], strides = [1, 1]} : vector<30x96xf32> to vector<30x8xf32>
    %cst_78 = arith.constant dense<0.000000e+00> : vector<30x30xf32>
    %198 = tpu.matmul %195, %196, %cst_78 {dimension_numbers = #tpu.dot_dimension_numbers<[1], [1], [0], [0], [0, 0, 1, 0], [], []>} : vector<30x8xf32>, vector<30x8xf32>, vector<30x30xf32> -> vector<30x30xf32>
    %cst_79 = arith.constant 0.353553385 : f32
    %199 = vector.broadcast %cst_79 : f32 to vector<30x30xf32>
    %200 = arith.mulf %198, %199 : vector<30x30xf32>
    %cst_80 = arith.constant dense<0xFF800000> : vector<30xf32>
    %201 = vector.multi_reduction <maximumf>, %200, %cst_80 [1] : vector<30x30xf32> to vector<30xf32>
    %202 = vector.shape_cast %201 : vector<30xf32> to vector<30x1xf32>
    %203 = vector.broadcast %202 : vector<30x1xf32> to vector<30x30xf32>
    %204 = arith.subf %200, %203 : vector<30x30xf32>
    %205 = math.exp %204 : vector<30x30xf32>
    %cst_81 = arith.constant dense<0.000000e+00> : vector<30xf32>
    %206 = vector.multi_reduction <add>, %205, %cst_81 [1] : vector<30x30xf32> to vector<30xf32>
    %207 = vector.shape_cast %206 : vector<30xf32> to vector<30x1xf32>
    %208 = tpu.reciprocal %207 {approx = true} : vector<30x1xf32> -> vector<30x1xf32>
    %209 = vector.broadcast %208 : vector<30x1xf32> to vector<30x30xf32>
    %210 = arith.mulf %205, %209 : vector<30x30xf32>
    %cst_82 = arith.constant dense<0.000000e+00> : vector<30x8xf32>
    %211 = tpu.matmul %210, %197, %cst_82 {dimension_numbers = #tpu.dot_dimension_numbers<[1], [0], [0], [1], [0, 0, 1, 1], [], []>} : vector<30x30xf32>, vector<30x8xf32>, vector<30x8xf32> -> vector<30x8xf32>
    %212 = vector.extract_strided_slice %160 {offsets = [0, 24], sizes = [30, 8], strides = [1, 1]} : vector<30x96xf32> to vector<30x8xf32>
    %213 = vector.extract_strided_slice %160 {offsets = [0, 56], sizes = [30, 8], strides = [1, 1]} : vector<30x96xf32> to vector<30x8xf32>
    %214 = vector.extract_strided_slice %160 {offsets = [0, 88], sizes = [30, 8], strides = [1, 1]} : vector<30x96xf32> to vector<30x8xf32>
    %cst_83 = arith.constant dense<0.000000e+00> : vector<30x30xf32>
    %215 = tpu.matmul %212, %213, %cst_83 {dimension_numbers = #tpu.dot_dimension_numbers<[1], [1], [0], [0], [0, 0, 1, 0], [], []>} : vector<30x8xf32>, vector<30x8xf32>, vector<30x30xf32> -> vector<30x30xf32>
    %cst_84 = arith.constant 0.353553385 : f32
    %216 = vector.broadcast %cst_84 : f32 to vector<30x30xf32>
    %217 = arith.mulf %215, %216 : vector<30x30xf32>
    %cst_85 = arith.constant dense<0xFF800000> : vector<30xf32>
    %218 = vector.multi_reduction <maximumf>, %217, %cst_85 [1] : vector<30x30xf32> to vector<30xf32>
    %219 = vector.shape_cast %218 : vector<30xf32> to vector<30x1xf32>
    %220 = vector.broadcast %219 : vector<30x1xf32> to vector<30x30xf32>
    %221 = arith.subf %217, %220 : vector<30x30xf32>
    %222 = math.exp %221 : vector<30x30xf32>
    %cst_86 = arith.constant dense<0.000000e+00> : vector<30xf32>
    %223 = vector.multi_reduction <add>, %222, %cst_86 [1] : vector<30x30xf32> to vector<30xf32>
    %224 = vector.shape_cast %223 : vector<30xf32> to vector<30x1xf32>
    %225 = tpu.reciprocal %224 {approx = true} : vector<30x1xf32> -> vector<30x1xf32>
    %226 = vector.broadcast %225 : vector<30x1xf32> to vector<30x30xf32>
    %227 = arith.mulf %222, %226 : vector<30x30xf32>
    %cst_87 = arith.constant dense<0.000000e+00> : vector<30x8xf32>
    %228 = tpu.matmul %227, %214, %cst_87 {dimension_numbers = #tpu.dot_dimension_numbers<[1], [0], [0], [1], [0, 0, 1, 1], [], []>} : vector<30x30xf32>, vector<30x8xf32>, vector<30x8xf32> -> vector<30x8xf32>
    %229 = tpu.concatenate %177, %194, %211, %228 in 1 : vector<30x8xf32>, vector<30x8xf32>, vector<30x8xf32>, vector<30x8xf32> -> vector<30x32xf32>
    %c304 = arith.constant 304 : index
    %c0_88 = arith.constant 0 : index
    %230 = vector.load %arg3[%c304, %c0_88] : memref<784x128xf32, #tpu.memory_space<vmem>>, vector<32x32xf32>
    %cst_89 = arith.constant dense<0.000000e+00> : vector<30x32xf32>
    %231 = tpu.matmul %229, %230, %cst_89 {dimension_numbers = #tpu.dot_dimension_numbers<[1], [0], [0], [1], [0, 0, 1, 1], [], []>} : vector<30x32xf32>, vector<32x32xf32>, vector<30x32xf32> -> vector<30x32xf32>
    %232 = vector.extract_strided_slice %0 {offsets = [9, 0], sizes = [1, 32], strides = [1, 1]} : vector<32x128xf32> to vector<1x32xf32>
    %233 = vector.broadcast %232 : vector<1x32xf32> to vector<30x32xf32>
    %234 = arith.addf %231, %233 : vector<30x32xf32>
    %235 = arith.addf %234, %155 : vector<30x32xf32>
    %236 = vector.extract_strided_slice %0 {offsets = [10, 0], sizes = [1, 32], strides = [1, 1]} : vector<32x128xf32> to vector<1x32xf32>
    %237 = vector.extract_strided_slice %0 {offsets = [11, 0], sizes = [1, 32], strides = [1, 1]} : vector<32x128xf32> to vector<1x32xf32>
    %cst_90 = arith.constant dense<0.000000e+00> : vector<30xf32>
    %238 = vector.multi_reduction <add>, %235, %cst_90 [1] : vector<30x32xf32> to vector<30xf32>
    %239 = vector.shape_cast %238 : vector<30xf32> to vector<30x1xf32>
    %cst_91 = arith.constant 3.200000e+01 : f32
    %240 = vector.broadcast %cst_91 : f32 to vector<30x1xf32>
    %241 = arith.divf %239, %240 : vector<30x1xf32>
    %242 = vector.broadcast %241 : vector<30x1xf32> to vector<30x32xf32>
    %243 = arith.subf %235, %242 : vector<30x32xf32>
    %244 = arith.mulf %243, %243 : vector<30x32xf32>
    %cst_92 = arith.constant dense<0.000000e+00> : vector<30xf32>
    %245 = vector.multi_reduction <add>, %244, %cst_92 [1] : vector<30x32xf32> to vector<30xf32>
    %246 = vector.shape_cast %245 : vector<30xf32> to vector<30x1xf32>
    %cst_93 = arith.constant 3.200000e+01 : f32
    %247 = vector.broadcast %cst_93 : f32 to vector<30x1xf32>
    %248 = arith.divf %246, %247 : vector<30x1xf32>
    %249 = vector.broadcast %241 : vector<30x1xf32> to vector<30x32xf32>
    %250 = arith.subf %235, %249 : vector<30x32xf32>
    %cst_94 = arith.constant 9.99999974E-6 : f32
    %251 = vector.broadcast %cst_94 : f32 to vector<30x1xf32>
    %252 = arith.addf %248, %251 : vector<30x1xf32>
    %253 = math.rsqrt %252 : vector<30x1xf32>
    %254 = vector.broadcast %253 : vector<30x1xf32> to vector<30x32xf32>
    %255 = arith.mulf %250, %254 : vector<30x32xf32>
    %256 = vector.broadcast %236 : vector<1x32xf32> to vector<30x32xf32>
    %257 = arith.mulf %255, %256 : vector<30x32xf32>
    %258 = vector.broadcast %237 : vector<1x32xf32> to vector<30x32xf32>
    %259 = arith.addf %257, %258 : vector<30x32xf32>
    %c336 = arith.constant 336 : index
    %c0_95 = arith.constant 0 : index
    %260 = vector.load %arg3[%c336, %c0_95] : memref<784x128xf32, #tpu.memory_space<vmem>>, vector<32x64xf32>
    %cst_96 = arith.constant dense<0.000000e+00> : vector<30x64xf32>
    %261 = tpu.matmul %259, %260, %cst_96 {dimension_numbers = #tpu.dot_dimension_numbers<[1], [0], [0], [1], [0, 0, 1, 1], [], []>} : vector<30x32xf32>, vector<32x64xf32>, vector<30x64xf32> -> vector<30x64xf32>
    %262 = vector.extract_strided_slice %0 {offsets = [12, 0], sizes = [1, 64], strides = [1, 1]} : vector<32x128xf32> to vector<1x64xf32>
    %263 = vector.broadcast %262 : vector<1x64xf32> to vector<30x64xf32>
    %264 = arith.addf %261, %263 : vector<30x64xf32>
    %265 = arith.mulf %264, %264 : vector<30x64xf32>
    %266 = arith.mulf %264, %265 : vector<30x64xf32>
    %cst_97 = arith.constant 4.471500e-02 : f32
    %267 = vector.broadcast %cst_97 : f32 to vector<30x64xf32>
    %268 = arith.mulf %267, %266 : vector<30x64xf32>
    %269 = arith.addf %264, %268 : vector<30x64xf32>
    %cst_98 = arith.constant 0.797884583 : f32
    %270 = vector.broadcast %cst_98 : f32 to vector<30x64xf32>
    %271 = arith.mulf %270, %269 : vector<30x64xf32>
    %272 = math.tanh %271 : vector<30x64xf32>
    %cst_99 = arith.constant 1.000000e+00 : f32
    %273 = vector.broadcast %cst_99 : f32 to vector<30x64xf32>
    %274 = arith.addf %273, %272 : vector<30x64xf32>
    %cst_100 = arith.constant 5.000000e-01 : f32
    %275 = vector.broadcast %cst_100 : f32 to vector<30x64xf32>
    %276 = arith.mulf %275, %274 : vector<30x64xf32>
    %277 = arith.mulf %264, %276 : vector<30x64xf32>
    %c368 = arith.constant 368 : index
    %c0_101 = arith.constant 0 : index
    %278 = vector.load %arg3[%c368, %c0_101] : memref<784x128xf32, #tpu.memory_space<vmem>>, vector<64x32xf32>
    %cst_102 = arith.constant dense<0.000000e+00> : vector<30x32xf32>
    %279 = tpu.matmul %277, %278, %cst_102 {dimension_numbers = #tpu.dot_dimension_numbers<[1], [0], [0], [1], [0, 0, 1, 1], [], []>} : vector<30x64xf32>, vector<64x32xf32>, vector<30x32xf32> -> vector<30x32xf32>
    %280 = vector.extract_strided_slice %0 {offsets = [13, 0], sizes = [1, 32], strides = [1, 1]} : vector<32x128xf32> to vector<1x32xf32>
    %281 = vector.broadcast %280 : vector<1x32xf32> to vector<30x32xf32>
    %282 = arith.addf %279, %281 : vector<30x32xf32>
    %283 = arith.addf %282, %259 : vector<30x32xf32>
    %284 = vector.extract_strided_slice %0 {offsets = [14, 0], sizes = [1, 32], strides = [1, 1]} : vector<32x128xf32> to vector<1x32xf32>
    %285 = vector.extract_strided_slice %0 {offsets = [15, 0], sizes = [1, 32], strides = [1, 1]} : vector<32x128xf32> to vector<1x32xf32>
    %cst_103 = arith.constant dense<0.000000e+00> : vector<30xf32>
    %286 = vector.multi_reduction <add>, %283, %cst_103 [1] : vector<30x32xf32> to vector<30xf32>
    %287 = vector.shape_cast %286 : vector<30xf32> to vector<30x1xf32>
    %cst_104 = arith.constant 3.200000e+01 : f32
    %288 = vector.broadcast %cst_104 : f32 to vector<30x1xf32>
    %289 = arith.divf %287, %288 : vector<30x1xf32>
    %290 = vector.broadcast %289 : vector<30x1xf32> to vector<30x32xf32>
    %291 = arith.subf %283, %290 : vector<30x32xf32>
    %292 = arith.mulf %291, %291 : vector<30x32xf32>
    %cst_105 = arith.constant dense<0.000000e+00> : vector<30xf32>
    %293 = vector.multi_reduction <add>, %292, %cst_105 [1] : vector<30x32xf32> to vector<30xf32>
    %294 = vector.shape_cast %293 : vector<30xf32> to vector<30x1xf32>
    %cst_106 = arith.constant 3.200000e+01 : f32
    %295 = vector.broadcast %cst_106 : f32 to vector<30x1xf32>
    %296 = arith.divf %294, %295 : vector<30x1xf32>
    %297 = vector.broadcast %289 : vector<30x1xf32> to vector<30x32xf32>
    %298 = arith.subf %283, %297 : vector<30x32xf32>
    %cst_107 = arith.constant 9.99999974E-6 : f32
    %299 = vector.broadcast %cst_107 : f32 to vector<30x1xf32>
    %300 = arith.addf %296, %299 : vector<30x1xf32>
    %301 = math.rsqrt %300 : vector<30x1xf32>
    %302 = vector.broadcast %301 : vector<30x1xf32> to vector<30x32xf32>
    %303 = arith.mulf %298, %302 : vector<30x32xf32>
    %304 = vector.broadcast %284 : vector<1x32xf32> to vector<30x32xf32>
    %305 = arith.mulf %303, %304 : vector<30x32xf32>
    %306 = vector.broadcast %285 : vector<1x32xf32> to vector<30x32xf32>
    %307 = arith.addf %305, %306 : vector<30x32xf32>
    %c432 = arith.constant 432 : index
    %c0_108 = arith.constant 0 : index
    %308 = vector.load %arg3[%c432, %c0_108] : memref<784x128xf32, #tpu.memory_space<vmem>>, vector<32x96xf32>
    %cst_109 = arith.constant dense<0.000000e+00> : vector<30x96xf32>
    %309 = tpu.matmul %307, %308, %cst_109 {dimension_numbers = #tpu.dot_dimension_numbers<[1], [0], [0], [1], [0, 0, 1, 1], [], []>} : vector<30x32xf32>, vector<32x96xf32>, vector<30x96xf32> -> vector<30x96xf32>
    %310 = vector.extract_strided_slice %0 {offsets = [16, 0], sizes = [1, 96], strides = [1, 1]} : vector<32x128xf32> to vector<1x96xf32>
    %311 = vector.broadcast %310 : vector<1x96xf32> to vector<30x96xf32>
    %312 = arith.addf %309, %311 : vector<30x96xf32>
    %313 = vector.extract_strided_slice %312 {offsets = [0, 0], sizes = [30, 8], strides = [1, 1]} : vector<30x96xf32> to vector<30x8xf32>
    %314 = vector.extract_strided_slice %312 {offsets = [0, 32], sizes = [30, 8], strides = [1, 1]} : vector<30x96xf32> to vector<30x8xf32>
    %315 = vector.extract_strided_slice %312 {offsets = [0, 64], sizes = [30, 8], strides = [1, 1]} : vector<30x96xf32> to vector<30x8xf32>
    %cst_110 = arith.constant dense<0.000000e+00> : vector<30x30xf32>
    %316 = tpu.matmul %313, %314, %cst_110 {dimension_numbers = #tpu.dot_dimension_numbers<[1], [1], [0], [0], [0, 0, 1, 0], [], []>} : vector<30x8xf32>, vector<30x8xf32>, vector<30x30xf32> -> vector<30x30xf32>
    %cst_111 = arith.constant 0.353553385 : f32
    %317 = vector.broadcast %cst_111 : f32 to vector<30x30xf32>
    %318 = arith.mulf %316, %317 : vector<30x30xf32>
    %cst_112 = arith.constant dense<0xFF800000> : vector<30xf32>
    %319 = vector.multi_reduction <maximumf>, %318, %cst_112 [1] : vector<30x30xf32> to vector<30xf32>
    %320 = vector.shape_cast %319 : vector<30xf32> to vector<30x1xf32>
    %321 = vector.broadcast %320 : vector<30x1xf32> to vector<30x30xf32>
    %322 = arith.subf %318, %321 : vector<30x30xf32>
    %323 = math.exp %322 : vector<30x30xf32>
    %cst_113 = arith.constant dense<0.000000e+00> : vector<30xf32>
    %324 = vector.multi_reduction <add>, %323, %cst_113 [1] : vector<30x30xf32> to vector<30xf32>
    %325 = vector.shape_cast %324 : vector<30xf32> to vector<30x1xf32>
    %326 = tpu.reciprocal %325 {approx = true} : vector<30x1xf32> -> vector<30x1xf32>
    %327 = vector.broadcast %326 : vector<30x1xf32> to vector<30x30xf32>
    %328 = arith.mulf %323, %327 : vector<30x30xf32>
    %cst_114 = arith.constant dense<0.000000e+00> : vector<30x8xf32>
    %329 = tpu.matmul %328, %315, %cst_114 {dimension_numbers = #tpu.dot_dimension_numbers<[1], [0], [0], [1], [0, 0, 1, 1], [], []>} : vector<30x30xf32>, vector<30x8xf32>, vector<30x8xf32> -> vector<30x8xf32>
    %330 = vector.extract_strided_slice %312 {offsets = [0, 8], sizes = [30, 8], strides = [1, 1]} : vector<30x96xf32> to vector<30x8xf32>
    %331 = vector.extract_strided_slice %312 {offsets = [0, 40], sizes = [30, 8], strides = [1, 1]} : vector<30x96xf32> to vector<30x8xf32>
    %332 = vector.extract_strided_slice %312 {offsets = [0, 72], sizes = [30, 8], strides = [1, 1]} : vector<30x96xf32> to vector<30x8xf32>
    %cst_115 = arith.constant dense<0.000000e+00> : vector<30x30xf32>
    %333 = tpu.matmul %330, %331, %cst_115 {dimension_numbers = #tpu.dot_dimension_numbers<[1], [1], [0], [0], [0, 0, 1, 0], [], []>} : vector<30x8xf32>, vector<30x8xf32>, vector<30x30xf32> -> vector<30x30xf32>
    %cst_116 = arith.constant 0.353553385 : f32
    %334 = vector.broadcast %cst_116 : f32 to vector<30x30xf32>
    %335 = arith.mulf %333, %334 : vector<30x30xf32>
    %cst_117 = arith.constant dense<0xFF800000> : vector<30xf32>
    %336 = vector.multi_reduction <maximumf>, %335, %cst_117 [1] : vector<30x30xf32> to vector<30xf32>
    %337 = vector.shape_cast %336 : vector<30xf32> to vector<30x1xf32>
    %338 = vector.broadcast %337 : vector<30x1xf32> to vector<30x30xf32>
    %339 = arith.subf %335, %338 : vector<30x30xf32>
    %340 = math.exp %339 : vector<30x30xf32>
    %cst_118 = arith.constant dense<0.000000e+00> : vector<30xf32>
    %341 = vector.multi_reduction <add>, %340, %cst_118 [1] : vector<30x30xf32> to vector<30xf32>
    %342 = vector.shape_cast %341 : vector<30xf32> to vector<30x1xf32>
    %343 = tpu.reciprocal %342 {approx = true} : vector<30x1xf32> -> vector<30x1xf32>
    %344 = vector.broadcast %343 : vector<30x1xf32> to vector<30x30xf32>
    %345 = arith.mulf %340, %344 : vector<30x30xf32>
    %cst_119 = arith.constant dense<0.000000e+00> : vector<30x8xf32>
    %346 = tpu.matmul %345, %332, %cst_119 {dimension_numbers = #tpu.dot_dimension_numbers<[1], [0], [0], [1], [0, 0, 1, 1], [], []>} : vector<30x30xf32>, vector<30x8xf32>, vector<30x8xf32> -> vector<30x8xf32>
    %347 = vector.extract_strided_slice %312 {offsets = [0, 16], sizes = [30, 8], strides = [1, 1]} : vector<30x96xf32> to vector<30x8xf32>
    %348 = vector.extract_strided_slice %312 {offsets = [0, 48], sizes = [30, 8], strides = [1, 1]} : vector<30x96xf32> to vector<30x8xf32>
    %349 = vector.extract_strided_slice %312 {offsets = [0, 80], sizes = [30, 8], strides = [1, 1]} : vector<30x96xf32> to vector<30x8xf32>
    %cst_120 = arith.constant dense<0.000000e+00> : vector<30x30xf32>
    %350 = tpu.matmul %347, %348, %cst_120 {dimension_numbers = #tpu.dot_dimension_numbers<[1], [1], [0], [0], [0, 0, 1, 0], [], []>} : vector<30x8xf32>, vector<30x8xf32>, vector<30x30xf32> -> vector<30x30xf32>
    %cst_121 = arith.constant 0.353553385 : f32
    %351 = vector.broadcast %cst_121 : f32 to vector<30x30xf32>
    %352 = arith.mulf %350, %351 : vector<30x30xf32>
    %cst_122 = arith.constant dense<0xFF800000> : vector<30xf32>
    %353 = vector.multi_reduction <maximumf>, %352, %cst_122 [1] : vector<30x30xf32> to vector<30xf32>
    %354 = vector.shape_cast %353 : vector<30xf32> to vector<30x1xf32>
    %355 = vector.broadcast %354 : vector<30x1xf32> to vector<30x30xf32>
    %356 = arith.subf %352, %355 : vector<30x30xf32>
    %357 = math.exp %356 : vector<30x30xf32>
    %cst_123 = arith.constant dense<0.000000e+00> : vector<30xf32>
    %358 = vector.multi_reduction <add>, %357, %cst_123 [1] : vector<30x30xf32> to vector<30xf32>
    %359 = vector.shape_cast %358 : vector<30xf32> to vector<30x1xf32>
    %360 = tpu.reciprocal %359 {approx = true} : vector<30x1xf32> -> vector<30x1xf32>
    %361 = vector.broadcast %360 : vector<30x1xf32> to vector<30x30xf32>
    %362 = arith.mulf %357, %361 : vector<30x30xf32>
    %cst_124 = arith.constant dense<0.000000e+00> : vector<30x8xf32>
    %363 = tpu.matmul %362, %349, %cst_124 {dimension_numbers = #tpu.dot_dimension_numbers<[1], [0], [0], [1], [0, 0, 1, 1], [], []>} : vector<30x30xf32>, vector<30x8xf32>, vector<30x8xf32> -> vector<30x8xf32>
    %364 = vector.extract_strided_slice %312 {offsets = [0, 24], sizes = [30, 8], strides = [1, 1]} : vector<30x96xf32> to vector<30x8xf32>
    %365 = vector.extract_strided_slice %312 {offsets = [0, 56], sizes = [30, 8], strides = [1, 1]} : vector<30x96xf32> to vector<30x8xf32>
    %366 = vector.extract_strided_slice %312 {offsets = [0, 88], sizes = [30, 8], strides = [1, 1]} : vector<30x96xf32> to vector<30x8xf32>
    %cst_125 = arith.constant dense<0.000000e+00> : vector<30x30xf32>
    %367 = tpu.matmul %364, %365, %cst_125 {dimension_numbers = #tpu.dot_dimension_numbers<[1], [1], [0], [0], [0, 0, 1, 0], [], []>} : vector<30x8xf32>, vector<30x8xf32>, vector<30x30xf32> -> vector<30x30xf32>
    %cst_126 = arith.constant 0.353553385 : f32
    %368 = vector.broadcast %cst_126 : f32 to vector<30x30xf32>
    %369 = arith.mulf %367, %368 : vector<30x30xf32>
    %cst_127 = arith.constant dense<0xFF800000> : vector<30xf32>
    %370 = vector.multi_reduction <maximumf>, %369, %cst_127 [1] : vector<30x30xf32> to vector<30xf32>
    %371 = vector.shape_cast %370 : vector<30xf32> to vector<30x1xf32>
    %372 = vector.broadcast %371 : vector<30x1xf32> to vector<30x30xf32>
    %373 = arith.subf %369, %372 : vector<30x30xf32>
    %374 = math.exp %373 : vector<30x30xf32>
    %cst_128 = arith.constant dense<0.000000e+00> : vector<30xf32>
    %375 = vector.multi_reduction <add>, %374, %cst_128 [1] : vector<30x30xf32> to vector<30xf32>
    %376 = vector.shape_cast %375 : vector<30xf32> to vector<30x1xf32>
    %377 = tpu.reciprocal %376 {approx = true} : vector<30x1xf32> -> vector<30x1xf32>
    %378 = vector.broadcast %377 : vector<30x1xf32> to vector<30x30xf32>
    %379 = arith.mulf %374, %378 : vector<30x30xf32>
    %cst_129 = arith.constant dense<0.000000e+00> : vector<30x8xf32>
    %380 = tpu.matmul %379, %366, %cst_129 {dimension_numbers = #tpu.dot_dimension_numbers<[1], [0], [0], [1], [0, 0, 1, 1], [], []>} : vector<30x30xf32>, vector<30x8xf32>, vector<30x8xf32> -> vector<30x8xf32>
    %381 = tpu.concatenate %329, %346, %363, %380 in 1 : vector<30x8xf32>, vector<30x8xf32>, vector<30x8xf32>, vector<30x8xf32> -> vector<30x32xf32>
    %c464 = arith.constant 464 : index
    %c0_130 = arith.constant 0 : index
    %382 = vector.load %arg3[%c464, %c0_130] : memref<784x128xf32, #tpu.memory_space<vmem>>, vector<32x32xf32>
    %cst_131 = arith.constant dense<0.000000e+00> : vector<30x32xf32>
    %383 = tpu.matmul %381, %382, %cst_131 {dimension_numbers = #tpu.dot_dimension_numbers<[1], [0], [0], [1], [0, 0, 1, 1], [], []>} : vector<30x32xf32>, vector<32x32xf32>, vector<30x32xf32> -> vector<30x32xf32>
    %384 = vector.extract_strided_slice %0 {offsets = [17, 0], sizes = [1, 32], strides = [1, 1]} : vector<32x128xf32> to vector<1x32xf32>
    %385 = vector.broadcast %384 : vector<1x32xf32> to vector<30x32xf32>
    %386 = arith.addf %383, %385 : vector<30x32xf32>
    %387 = arith.addf %386, %307 : vector<30x32xf32>
    %388 = vector.extract_strided_slice %0 {offsets = [18, 0], sizes = [1, 32], strides = [1, 1]} : vector<32x128xf32> to vector<1x32xf32>
    %389 = vector.extract_strided_slice %0 {offsets = [19, 0], sizes = [1, 32], strides = [1, 1]} : vector<32x128xf32> to vector<1x32xf32>
    %cst_132 = arith.constant dense<0.000000e+00> : vector<30xf32>
    %390 = vector.multi_reduction <add>, %387, %cst_132 [1] : vector<30x32xf32> to vector<30xf32>
    %391 = vector.shape_cast %390 : vector<30xf32> to vector<30x1xf32>
    %cst_133 = arith.constant 3.200000e+01 : f32
    %392 = vector.broadcast %cst_133 : f32 to vector<30x1xf32>
    %393 = arith.divf %391, %392 : vector<30x1xf32>
    %394 = vector.broadcast %393 : vector<30x1xf32> to vector<30x32xf32>
    %395 = arith.subf %387, %394 : vector<30x32xf32>
    %396 = arith.mulf %395, %395 : vector<30x32xf32>
    %cst_134 = arith.constant dense<0.000000e+00> : vector<30xf32>
    %397 = vector.multi_reduction <add>, %396, %cst_134 [1] : vector<30x32xf32> to vector<30xf32>
    %398 = vector.shape_cast %397 : vector<30xf32> to vector<30x1xf32>
    %cst_135 = arith.constant 3.200000e+01 : f32
    %399 = vector.broadcast %cst_135 : f32 to vector<30x1xf32>
    %400 = arith.divf %398, %399 : vector<30x1xf32>
    %401 = vector.broadcast %393 : vector<30x1xf32> to vector<30x32xf32>
    %402 = arith.subf %387, %401 : vector<30x32xf32>
    %cst_136 = arith.constant 9.99999974E-6 : f32
    %403 = vector.broadcast %cst_136 : f32 to vector<30x1xf32>
    %404 = arith.addf %400, %403 : vector<30x1xf32>
    %405 = math.rsqrt %404 : vector<30x1xf32>
    %406 = vector.broadcast %405 : vector<30x1xf32> to vector<30x32xf32>
    %407 = arith.mulf %402, %406 : vector<30x32xf32>
    %408 = vector.broadcast %388 : vector<1x32xf32> to vector<30x32xf32>
    %409 = arith.mulf %407, %408 : vector<30x32xf32>
    %410 = vector.broadcast %389 : vector<1x32xf32> to vector<30x32xf32>
    %411 = arith.addf %409, %410 : vector<30x32xf32>
    %c496 = arith.constant 496 : index
    %c0_137 = arith.constant 0 : index
    %412 = vector.load %arg3[%c496, %c0_137] : memref<784x128xf32, #tpu.memory_space<vmem>>, vector<32x64xf32>
    %cst_138 = arith.constant dense<0.000000e+00> : vector<30x64xf32>
    %413 = tpu.matmul %411, %412, %cst_138 {dimension_numbers = #tpu.dot_dimension_numbers<[1], [0], [0], [1], [0, 0, 1, 1], [], []>} : vector<30x32xf32>, vector<32x64xf32>, vector<30x64xf32> -> vector<30x64xf32>
    %414 = vector.extract_strided_slice %0 {offsets = [20, 0], sizes = [1, 64], strides = [1, 1]} : vector<32x128xf32> to vector<1x64xf32>
    %415 = vector.broadcast %414 : vector<1x64xf32> to vector<30x64xf32>
    %416 = arith.addf %413, %415 : vector<30x64xf32>
    %417 = arith.mulf %416, %416 : vector<30x64xf32>
    %418 = arith.mulf %416, %417 : vector<30x64xf32>
    %cst_139 = arith.constant 4.471500e-02 : f32
    %419 = vector.broadcast %cst_139 : f32 to vector<30x64xf32>
    %420 = arith.mulf %419, %418 : vector<30x64xf32>
    %421 = arith.addf %416, %420 : vector<30x64xf32>
    %cst_140 = arith.constant 0.797884583 : f32
    %422 = vector.broadcast %cst_140 : f32 to vector<30x64xf32>
    %423 = arith.mulf %422, %421 : vector<30x64xf32>
    %424 = math.tanh %423 : vector<30x64xf32>
    %cst_141 = arith.constant 1.000000e+00 : f32
    %425 = vector.broadcast %cst_141 : f32 to vector<30x64xf32>
    %426 = arith.addf %425, %424 : vector<30x64xf32>
    %cst_142 = arith.constant 5.000000e-01 : f32
    %427 = vector.broadcast %cst_142 : f32 to vector<30x64xf32>
    %428 = arith.mulf %427, %426 : vector<30x64xf32>
    %429 = arith.mulf %416, %428 : vector<30x64xf32>
    %c528 = arith.constant 528 : index
    %c0_143 = arith.constant 0 : index
    %430 = vector.load %arg3[%c528, %c0_143] : memref<784x128xf32, #tpu.memory_space<vmem>>, vector<64x32xf32>
    %cst_144 = arith.constant dense<0.000000e+00> : vector<30x32xf32>
    %431 = tpu.matmul %429, %430, %cst_144 {dimension_numbers = #tpu.dot_dimension_numbers<[1], [0], [0], [1], [0, 0, 1, 1], [], []>} : vector<30x64xf32>, vector<64x32xf32>, vector<30x32xf32> -> vector<30x32xf32>
    %432 = vector.extract_strided_slice %0 {offsets = [21, 0], sizes = [1, 32], strides = [1, 1]} : vector<32x128xf32> to vector<1x32xf32>
    %433 = vector.broadcast %432 : vector<1x32xf32> to vector<30x32xf32>
    %434 = arith.addf %431, %433 : vector<30x32xf32>
    %435 = arith.addf %434, %411 : vector<30x32xf32>
    %436 = vector.extract_strided_slice %0 {offsets = [22, 0], sizes = [1, 32], strides = [1, 1]} : vector<32x128xf32> to vector<1x32xf32>
    %437 = vector.extract_strided_slice %0 {offsets = [23, 0], sizes = [1, 32], strides = [1, 1]} : vector<32x128xf32> to vector<1x32xf32>
    %cst_145 = arith.constant dense<0.000000e+00> : vector<30xf32>
    %438 = vector.multi_reduction <add>, %435, %cst_145 [1] : vector<30x32xf32> to vector<30xf32>
    %439 = vector.shape_cast %438 : vector<30xf32> to vector<30x1xf32>
    %cst_146 = arith.constant 3.200000e+01 : f32
    %440 = vector.broadcast %cst_146 : f32 to vector<30x1xf32>
    %441 = arith.divf %439, %440 : vector<30x1xf32>
    %442 = vector.broadcast %441 : vector<30x1xf32> to vector<30x32xf32>
    %443 = arith.subf %435, %442 : vector<30x32xf32>
    %444 = arith.mulf %443, %443 : vector<30x32xf32>
    %cst_147 = arith.constant dense<0.000000e+00> : vector<30xf32>
    %445 = vector.multi_reduction <add>, %444, %cst_147 [1] : vector<30x32xf32> to vector<30xf32>
    %446 = vector.shape_cast %445 : vector<30xf32> to vector<30x1xf32>
    %cst_148 = arith.constant 3.200000e+01 : f32
    %447 = vector.broadcast %cst_148 : f32 to vector<30x1xf32>
    %448 = arith.divf %446, %447 : vector<30x1xf32>
    %449 = vector.broadcast %441 : vector<30x1xf32> to vector<30x32xf32>
    %450 = arith.subf %435, %449 : vector<30x32xf32>
    %cst_149 = arith.constant 9.99999974E-6 : f32
    %451 = vector.broadcast %cst_149 : f32 to vector<30x1xf32>
    %452 = arith.addf %448, %451 : vector<30x1xf32>
    %453 = math.rsqrt %452 : vector<30x1xf32>
    %454 = vector.broadcast %453 : vector<30x1xf32> to vector<30x32xf32>
    %455 = arith.mulf %450, %454 : vector<30x32xf32>
    %456 = vector.broadcast %436 : vector<1x32xf32> to vector<30x32xf32>
    %457 = arith.mulf %455, %456 : vector<30x32xf32>
    %458 = vector.broadcast %437 : vector<1x32xf32> to vector<30x32xf32>
    %459 = arith.addf %457, %458 : vector<30x32xf32>
    %460 = vector.shape_cast %459 : vector<30x32xf32> to vector<1x30x32xf32>
    %cst_150 = arith.constant dense<0.000000e+00> : vector<1xf32>
    %461 = vector.multi_reduction <add>, %460, %cst_150 [1, 2] : vector<1x30x32xf32> to vector<1xf32>
    %462 = vector.shape_cast %461 : vector<1xf32> to vector<1x1x1xf32>
    %463 = vector.extract %462[0, 0, 0] : f32 from vector<1x1x1xf32>
    %464 = vector.broadcast %463 : f32 to vector<1x1xf32>
    %cst_151 = arith.constant 9.600000e+02 : f32
    %465 = vector.broadcast %cst_151 : f32 to vector<1x1xf32>
    %466 = arith.divf %464, %465 : vector<1x1xf32>
    %467 = vector.broadcast %466 : vector<1x1xf32> to vector<30x32xf32>
    %468 = arith.subf %459, %467 : vector<30x32xf32>
    %469 = arith.mulf %468, %468 : vector<30x32xf32>
    %470 = vector.shape_cast %469 : vector<30x32xf32> to vector<1x30x32xf32>
    %cst_152 = arith.constant dense<0.000000e+00> : vector<1xf32>
    %471 = vector.multi_reduction <add>, %470, %cst_152 [1, 2] : vector<1x30x32xf32> to vector<1xf32>
    %472 = vector.shape_cast %471 : vector<1xf32> to vector<1x1x1xf32>
    %473 = vector.extract %472[0, 0, 0] : f32 from vector<1x1x1xf32>
    %474 = vector.broadcast %473 : f32 to vector<1x1xf32>
    %cst_153 = arith.constant 9.600000e+02 : f32
    %475 = vector.broadcast %cst_153 : f32 to vector<1x1xf32>
    %476 = arith.divf %474, %475 : vector<1x1xf32>
    %477 = vector.broadcast %466 : vector<1x1xf32> to vector<30x32xf32>
    %478 = arith.subf %459, %477 : vector<30x32xf32>
    %cst_154 = arith.constant 9.99999974E-6 : f32
    %479 = vector.broadcast %cst_154 : f32 to vector<1x1xf32>
    %480 = arith.addf %476, %479 : vector<1x1xf32>
    %481 = math.rsqrt %480 : vector<1x1xf32>
    %482 = vector.broadcast %481 : vector<1x1xf32> to vector<30x32xf32>
    %483 = arith.mulf %478, %482 : vector<30x32xf32>
    %c592 = arith.constant 592 : index
    %c0_155 = arith.constant 0 : index
    %484 = vector.load %arg3[%c592, %c0_155] : memref<784x128xf32, #tpu.memory_space<vmem>>, vector<32x64xf32>
    %cst_156 = arith.constant dense<0.000000e+00> : vector<30x64xf32>
    %485 = tpu.matmul %483, %484, %cst_156 {dimension_numbers = #tpu.dot_dimension_numbers<[1], [0], [0], [1], [0, 0, 1, 1], [], []>} : vector<30x32xf32>, vector<32x64xf32>, vector<30x64xf32> -> vector<30x64xf32>
    %486 = vector.extract_strided_slice %0 {offsets = [24, 0], sizes = [1, 64], strides = [1, 1]} : vector<32x128xf32> to vector<1x64xf32>
    %487 = vector.broadcast %486 : vector<1x64xf32> to vector<30x64xf32>
    %488 = arith.addf %485, %487 : vector<30x64xf32>
    %cst_157 = arith.constant 0.000000e+00 : f32
    %489 = vector.broadcast %cst_157 : f32 to vector<30x64xf32>
    %490 = arith.maximumf %488, %489 : vector<30x64xf32>
    %c624 = arith.constant 624 : index
    %c0_158 = arith.constant 0 : index
    %491 = vector.load %arg3[%c624, %c0_158] : memref<784x128xf32, #tpu.memory_space<vmem>>, vector<64x32xf32>
    %cst_159 = arith.constant dense<0.000000e+00> : vector<30x32xf32>
    %492 = tpu.matmul %490, %491, %cst_159 {dimension_numbers = #tpu.dot_dimension_numbers<[1], [0], [0], [1], [0, 0, 1, 1], [], []>} : vector<30x64xf32>, vector<64x32xf32>, vector<30x32xf32> -> vector<30x32xf32>
    %493 = vector.extract_strided_slice %0 {offsets = [25, 0], sizes = [1, 32], strides = [1, 1]} : vector<32x128xf32> to vector<1x32xf32>
    %494 = vector.broadcast %493 : vector<1x32xf32> to vector<30x32xf32>
    %495 = arith.addf %492, %494 : vector<30x32xf32>
    %cst_160 = arith.constant dense<0xFF800000> : vector<32xf32>
    %496 = vector.multi_reduction <maximumf>, %495, %cst_160 [0] : vector<30x32xf32> to vector<32xf32>
    %497 = vector.shape_cast %496 : vector<32xf32> to vector<1x32xf32>
    %c688 = arith.constant 688 : index
    %c0_161 = arith.constant 0 : index
    %498 = vector.load %arg3[%c688, %c0_161] : memref<784x128xf32, #tpu.memory_space<vmem>>, vector<32x64xf32>
    %cst_162 = arith.constant dense<0.000000e+00> : vector<1x64xf32>
    %499 = tpu.matmul %497, %498, %cst_162 {dimension_numbers = #tpu.dot_dimension_numbers<[1], [0], [0], [1], [0, 0, 1, 1], [], []>} : vector<1x32xf32>, vector<32x64xf32>, vector<1x64xf32> -> vector<1x64xf32>
    %500 = vector.extract_strided_slice %0 {offsets = [26, 0], sizes = [1, 64], strides = [1, 1]} : vector<32x128xf32> to vector<1x64xf32>
    %501 = arith.addf %499, %500 : vector<1x64xf32>
    %cst_163 = arith.constant 0.000000e+00 : f32
    %502 = vector.broadcast %cst_163 : f32 to vector<1x64xf32>
    %503 = arith.maximumf %501, %502 : vector<1x64xf32>
    %c720 = arith.constant 720 : index
    %c0_164 = arith.constant 0 : index
    %504 = vector.load %arg3[%c720, %c0_164] : memref<784x128xf32, #tpu.memory_space<vmem>>, vector<64x128xf32>
    %cst_165 = arith.constant dense<0.000000e+00> : vector<1x128xf32>
    %505 = tpu.matmul %503, %504, %cst_165 {dimension_numbers = #tpu.dot_dimension_numbers<[1], [0], [0], [1], [0, 0, 1, 1], [], []>} : vector<1x64xf32>, vector<64x128xf32>, vector<1x128xf32> -> vector<1x128xf32>
    %506 = vector.extract_strided_slice %0 {offsets = [27, 0], sizes = [1, 128], strides = [1, 1]} : vector<32x128xf32> to vector<1x128xf32>
    %507 = arith.addf %505, %506 : vector<1x128xf32>
    %c0_166 = arith.constant 0 : index
    %c0_167 = arith.constant 0 : index
    %c0_168 = arith.constant 0 : index
    %508 = vector.load %arg4[%c0_166, %c0_167, %c0_168] : memref<1x1x128xf32, #tpu.memory_space<vmem>>, vector<1x1x128xf32>
    %509 = vector.shape_cast %508 : vector<1x1x128xf32> to vector<1x128xf32>
    %510 = vector.shape_cast %507 : vector<1x128xf32> to vector<1x1x128xf32>
    tpu.vector_store %arg4[%c0_166, %c0_167, %c0_168], %510 {strides = array<i32>} : memref<1x1x128xf32, #tpu.memory_space<vmem>>, vector<1x1x128xf32>,
    return
  }
  func.func @transform_0(%arg0: i32) -> (i32, i32, i32) {
    %c0_i32 = arith.constant 0 : i32
    %c0_i32_0 = arith.constant 0 : i32
    %c0_i32_1 = arith.constant 0 : i32
    return %arg0, %c0_i32, %c0_i32_0 : i32, i32, i32
  }
  func.func @transform_1(%arg0: i32) -> (i32, i32) {
    %c0_i32 = arith.constant 0 : i32
    %c0_i32_0 = arith.constant 0 : i32
    %c0_i32_1 = arith.constant 0 : i32
    return %c0_i32, %c0_i32_0 : i32, i32
  }
  func.func @transform_2(%arg0: i32) -> (i32, i32) {
    %c0_i32 = arith.constant 0 : i32
    %c0_i32_0 = arith.constant 0 : i32
    %c0_i32_1 = arith.constant 0 : i32
    return %c0_i32, %c0_i32_0 : i32, i32
  }
  func.func @transform_3(%arg0: i32) -> (i32, i32, i32) {
    %c0_i32 = arith.constant 0 : i32
    %c0_i32_0 = arith.constant 0 : i32
    %c0_i32_1 = arith.constant 0 : i32
    return %arg0, %c0_i32, %c0_i32_0 : i32, i32, i32
  }
}

</mosaic_0001>

<bundles_post_ra>
// kernel: hubert_classifier_forward.1
= control target key start
LH: loop header
LB: loop body
LE: loop exit
PB: predicated region body
PF: predicated region fallthrough
CT: control target
= control target key end

     0   :  { %8 = vsyncpa [#allocation5], 0  ;;  %s8409_s0 = inlined_call_operand.vmem [shape: f32[2,63,10], index: 0, kind: input, shape index: {}]   ;;  %s8410_s1 = inlined_call_operand.vmem [shape: f32[32,128], index: 1, kind: input, shape index: {}]   ;;  %s8411_s2 = inlined_call_operand.vmem [shape: f32[784,128], index: 2, kind: input, shape index: {}]   ;;  %s8412_s3 = inlined_call_operand.hbm [shape: f32[2,1,128], index: 3, kind: output, shape index: {}]  }
   0x1   :  { %10 = vsyncpa [#allocation5 + $0x1], 0  ;;  %s7072_s12 = smov 0   ;;  %s7074_s13 = smov 0  }
   0x2   :  { %s7076_s14 = smov 0   ;;  %s7078_s15 = smov 0  }
   0x3 LB: > { %s7093_s16 = sadd.s32 4294967295, %s7033_s15   ;;  %s5628_s17 = sadd.s32 4294967294, %s7033_s15   ;;  %s7033_s15 = sphi %s7078_s15, %s8430_s15   ;;  %s7029_s14 = sphi %s7076_s14, %s8429_s14   ;;  %s7025_s13 = sphi %s7074_s13, %s8428_s13   ;;  %s7021_s12 = sphi %s7072_s12, %s8427_s12  }
   0x4   : > { %s7097_s18 = sadd.s32 1, %s7033_s15   ;;  %s91_s19 = sadd.s32 1, %s7029_s14 }
   0x5   : > { %s88_s20 = ssub.s32 %s7033_s15, %s7097_s18  ;;  %p101_p0 = scmp.ne.s32.totalorder %s7029_s14, %s7025_s13 }
   0x6   : > { %p89_p1 = scmp.eq.s32.totalorder %s88_s20, 0  ;;  %p102_p2 = scmp.eq.s32.totalorder %s7093_s16, 1 }
   0x7   : > { %p107_p3 = scmp.ne.s32.totalorder %s7025_s13, %s7021_s12  ;;  %p108_p4 = scmp.eq.s32.totalorder %s5628_s17, 1 }
   0x8   : > { %s7108_s21 = scalar_select %p89_p1, %s7029_s14, %s91_s19  }
   0x9   : > { %p7110_p5 = por %p102_p2, %p101_p0  ;;  %p7114_p6 = por %p108_p4, %p107_p3 }
   0xa   : > { %p5631_p7 = scmp.ge.s32.totalorder %s7033_s15, 1  ;;  %p140_p8 = scmp.lt.s32.totalorder %s7033_s15, 3 }
   0xc   : > { %p141_p9 = pnand %p5631_p7, %p140_p8 }
   0xd   : > { %p163_p10 = scmp.lt.s32.totalorder (!%p141_p9), %s7093_s16, 1  ;;  %s7036_s17 = smov (!%p141_p9), 96  }
   0xe   : > { %144 = sbr.rel (%p141_p9) target bundleno = 11129 (0x2b79), region = 32  ;;  %s7037_s19 = smov (!%p141_p9), 64  }
   0xf   : > { %s7038_s20 = smov (!%p141_p9), 88   ;;  %s7039_s24 = smov (!%p141_p9), 120  }
  0x10   : > { %s7040_s25 = smov (!%p141_p9), 56   ;;  %s7041_s26 = smov (!%p141_p9), 80  }
  0x11   : > { %s7042_s27 = smov (!%p141_p9), 112   ;;  %s7045_s30 = smov (!%p141_p9), 104  }
  0x12   : > { %s8417_s4 = smov (!%p141_p9), 40   ;;  %s8413_s6 = smov (!%p141_p9), 16  }
  0x13   : > { %v181_v0 = vld [vmem:[%s8411_s2 + $0x8] sm:$0x3]  ;;  %vm207_vm0 = vcmask 1041408   ;;  %v180_v1 = vld [vmem:[%s8411_s2] sm:$0xff]  ;;  %s164_s28 = scalar_select %p163_p10, %s7093_s16, 1  ;;  %vm182_vm1 = vcmask 80896  }
  0x14   : > { %6133 = vmatprep.subr.msk.mxu0 %vm207_vm0, %v181_v0  ;;  %6679 = vmatprep.subr.msk.mxu1 %vm207_vm0, %v181_v0  ;;  %v515_v10 = vld [vmem:[%s8411_s2 + $0x48] sm:$0xff]  ;;  %v514_v12 = vld [vmem:[%s8411_s2 + $0x40] sm:$0xff]  ;;  %v513_v15 = vld [vmem:[%s8411_s2 + $0x38] sm:$0xff]  ;;  %vm316_vm2 = vcmask 261120   ;;  %vm330_vm3 = vcmask 260096   ;;  %vm981_vm4 = vcmask 259072  }
  0x15   : > { %6134 = vmatpush3.msk.msra.mxu0 %vm207_vm0, %v181_v0  ;;  %6681 = vmatpush3.msk.msra.mxu1 %vm207_vm0, %v181_v0  ;;  %s5824_s29 = sshll.u32 %s164_s28, 6  ;;  %v721_v11 = vld [vmem:[%s8411_s2 + $0x68] sm:$0xff]  ;;  %v720_v13 = vld [vmem:[%s8411_s2 + $0x60] sm:$0xff]  ;;  %v719_v16 = vld [vmem:[%s8411_s2 + $0x58] sm:$0xff]  ;;  %vm1703_vm5 = vcmask 64512   ;;  %vm1809_vm6 = vcmask 244736  }
  0x16   : > { %6135 = vmatprep.subr.mxu0 %v180_v1  ;;  %6680 = vmatprep.subr.mxu1 %v180_v1  ;;  %s167_s5 = scalar_lea.vmem %s8409_s0, %s5824_s29  ;;  %v512_v19 = vld [vmem:[%s8411_s2 + $0x30] sm:$0xff]  ;;  %v7167_v24 = vld [vmem:[%s8411_s2 + $0x28] sm:$0xff]  ;;  %vm1819_vm7 = vcmask 242688   ;;  %vm1878_vm8 = vcmask 1045504   ;;  %s7043_s28 = smov 48   ;;  %vm2843_vm9 = vcmask 130048  }
  0x17   : > { %6136 = vmatpush3.msra.mxu0 %v180_v1  ;;  %6682 = vmatpush3.msra.mxu1 %v180_v1  ;;  %v172_v2 = vld [vmem:[%s167_s5] sm:$0xff]  ;;  %v173_v3 = vld [vmem:[%s167_s5 + $0x8] sm:$0xff]  ;;  %v174_v4 = vld [vmem:[%s167_s5 + $0x10] sm:$0xff]  ;;  %s7044_s29 = smov 72   ;;  %s8419_s7 = smov 24   ;;  %vm2848_vm10 = vcmask 195584  }
  0x18   : > { %6137 = vmatprep.mubr.msk.f32.mxu0 %vm182_vm1, %v172_v2  ;;  %v176_v5 = vld [vmem:[%s167_s5 + $0x20] sm:$0xff]  ;;  %v177_v6 = vld [vmem:[%s167_s5 + $0x28] sm:$0xff]  ;;  %v178_v7 = vld [vmem:[%s167_s5 + $0x30] sm:$0xff]  ;;  %6149 = vmatprep.subr.mxu1 %v515_v10  ;;  %vm3183_vm11 = vcmask 523264   ;;  %s8426_s9 = smov 24   ;;  %vm7050_vm12 = vmmov 0  }
  0x19   : > { %6138 = vmatmul.mubr.msk.f32.vlgmr.msra.gmra.mxu0 %vm182_vm1, %v173_v3  ;;  %6143 = vmatprep.mubr.msk.f32.mxu1 %vm182_vm1, %v176_v5  ;;  %v175_v8 = vld [vmem:[%s167_s5 + $0x18] sm:$0xff]  ;;  %v718_v20 = vld [vmem:[%s8411_s2 + $0x50] sm:$0xff] }
  0x1a   : > { %6140 = vmatprep.mubr.msk.f32.mxu0 %vm182_vm1, %v174_v4  ;;  %6144 = vmatmul.mubr.msk.f32.vlgmr.msra.gmra.mxu1 %vm182_vm1, %v177_v6  ;;  %v179_v9 = vld [vmem:[%s167_s5 + $0x38] sm:$0x7f]  ;;  %s8415_s5 = smov 8  }
  0x1b   : > { %6146 = vmatprep.mubr.msk.f32.mxu1 %vm182_vm1, %v178_v7  ;;  %6177 = vmatprep.subr.mxu0 %v721_v11 }
  0x1c   : > { %6150 = vmatpush3.msra.mxu1 %v515_v10  ;;  %6178 = vmatpush3.msra.mxu0 %v721_v11 }
  0x1d   : > { %6141 = vmatmul.mubr.msk.f32.gmra.mxu0 %vm182_vm1, %v175_v8  ;;  %6151 = vmatprep.subr.mxu1 %v514_v12 }
  0x1e   : > { %6147 = vmatmul.mubr.msk.f32.gmra.mxu1 %vm182_vm1, %v179_v9  ;;  %6179 = vmatprep.subr.mxu0 %v720_v13 }
  0x1f   : > { %6152 = vmatpush3.msra.mxu1 %v514_v12  ;;  %6180 = vmatpush3.msra.mxu0 %v720_v13 }
  0x20   : > { %6153 = vmatprep.subr.mxu1 %v513_v15  ;;  %6181 = vmatprep.subr.mxu0 %v719_v16 }
  0x21   : > { %6154 = vmatpush3.msra.mxu1 %v513_v15  ;;  %6182 = vmatpush3.msra.mxu0 %v719_v16 }
  0x22   : > { %6155 = vmatprep.subr.mxu1 %v512_v19  ;;  %6183 = vmatprep.subr.mxu0 %v718_v20 }
  0x23   : > { %6156 = vmatpush3.msra.mxu1 %v512_v19  ;;  %6184 = vmatpush3.msra.mxu0 %v718_v20 }
  0x24   : > { %6163 = vmatprep.subr.mxu1 %v7167_v24 }
  0xd9   : > { %v6139_v14 = vpop.f32.mrf.mxu0 }
  0xda   : > { %v6145_v17 = vpop.f32.mrf.mxu1  ;;  %v318_v25 = vsel %vm316_vm2, %v6139_v14, 0.0 }
  0xdb   : > { %v277_v18 = vpop.f32.mrf.mxu0  ;;  %v326_v36 = vsel %vm316_vm2, %v6145_v17, 0.0 }
  0xdc   : > { %v317_v21 = vsel %vm316_vm2, %v277_v18, 0.0  ;;  %v297_v23 = vpop.f32.mrf.mxu1 }
  0xdd   : > { %v6142_v22 = vpop.f32.mrf.mxu0  ;;  %v319_v26 = vadd.f32 %v318_v25, %v317_v21  ;;  %v324_v33 = vsel %vm316_vm2, %v297_v23, 0.0  ;;  %v389_v25 = vlaneseq }
  0xde   : > { %v6148_v30 = vpop.f32.mrf.mxu1  ;;  %v322_v31 = vsel %vm316_vm2, %v6142_v22, 0.0 }
  0xdf   : > { %v287_v27 = vpop.f32.mrf.mxu0  ;;  %v331_v40 = vsel %vm330_vm3, %v6148_v30, 0.0 }
  0xe0   : > { %v320_v28 = vsel %vm316_vm2, %v287_v27, 0.0  ;;  %v307_v35 = vpop.f32.mrf.mxu1 }
  0xe1   : > { %v321_v29 = vadd.f32 %v320_v28, %v319_v26  ;;  %v328_v38 = vsel %vm316_vm2, %v307_v35, 0.0  ;;  %v7185_v26 = vshrl.u32 %v389_v25, 7  ;;  %v7193_v28 = vld [vmem:[%s8410_s1] sm:$0xff] }
  0xe3   : > { %v323_v32 = vadd.f32 %v322_v31, %v321_v29  ;;  %v7196_v29 = vsub.s32 1, %v7185_v26 }
  0xe5   : > { %v325_v34 = vadd.f32 %v324_v33, %v323_v32  ;;  %v404_v32 = vrot.slane %v7193_v28, %v7196_v29 }
  0xe7   : > { %v327_v37 = vadd.f32 %v326_v36, %v325_v34 }
  0xe9   : > { %v329_v39 = vadd.f32 %v328_v38, %v327_v37 }
  0xeb   : > { %v332_v41 = vadd.f32 %v331_v40, %v329_v39 }
  0xed   : > { %v333_v42 = vrot.slane %v332_v41, 4 }
  0xef   : > { %v334_v43 = vadd.f32 %v333_v42, %v332_v41 }
  0xf1   : > { %v335_v44 = vrot.slane %v334_v43, 2 }
  0xf3   : > { %v336_v45 = vadd.f32 %v335_v44, %v334_v43 }
  0xf5   : > { %v337_v46 = vrot.slane %v336_v45, 1 }
  0xf7   : > { %v338_v47 = vadd.f32 %v337_v46, %v336_v45 }
  0xf9   : > { %v340_v48 = vmul.f32 0.015873017, %v338_v47 }
  0xfb   : > { %v341_v49 = vsub.f32 %v277_v18, %v340_v48  ;;  %v342_v50 = vsub.f32 %v6139_v14, %v340_v48  ;;  %v343_v51 = vsub.f32 %v287_v27, %v340_v48  ;;  %v344_v52 = vsub.f32 %v6142_v22, %v340_v48 }
  0xfc   : > { %v345_v53 = vsub.f32 %v297_v23, %v340_v48  ;;  %v346_v57 = vsub.f32 %v6145_v17, %v340_v48  ;;  %v347_v62 = vsub.f32 %v307_v35, %v340_v48  ;;  %v348_v2 = vsub.f32 %v6148_v30, %v340_v48 }
  0xfd   : > { %v349_v54 = vmul.f32 %v341_v49, %v341_v49  ;;  %v350_v55 = vmul.f32 %v342_v50, %v342_v50  ;;  %v351_v56 = vmul.f32 %v343_v51, %v343_v51  ;;  %v352_v58 = vmul.f32 %v344_v52, %v344_v52 }
  0xfe   : > { %v353_v63 = vmul.f32 %v345_v53, %v345_v53  ;;  %v354_v3 = vmul.f32 %v346_v57, %v346_v57  ;;  %v355_v6 = vmul.f32 %v347_v62, %v347_v62  ;;  %v356_v9 = vmul.f32 %v348_v2, %v348_v2 }
  0xff   : > { %v357_v59 = vsel %vm316_vm2, %v349_v54, 0.0  ;;  %v358_v60 = vsel %vm316_vm2, %v350_v55, 0.0  ;;  %v360_v0 = vsel %vm316_vm2, %v351_v56, 0.0  ;;  %v362_v4 = vsel %vm316_vm2, %v352_v58, 0.0 }
 0x100   : > { %v359_v61 = vadd.f32 %v358_v60, %v357_v59  ;;  %v364_v7 = vsel %vm316_vm2, %v353_v63, 0.0  ;;  %v366_v10 = vsel %vm316_vm2, %v354_v3, 0.0  ;;  %v368_v12 = vsel %vm316_vm2, %v355_v6, 0.0 }
 0x101   : > { %v370_v14 = vsel %vm330_vm3, %v356_v9, 0.0  ;;  %v7188_v27 = vsub.s32 0, %v7185_v26 }
 0x102   : > { %v361_v1 = vadd.f32 %v360_v0, %v359_v61 }
 0x103   : > { %v392_v30 = vrot.slane %v7193_v28, %v7188_v27 }
 0x104   : > { %v363_v5 = vadd.f32 %v362_v4, %v361_v1 }
 0x106   : > { %v365_v8 = vadd.f32 %v364_v7, %v363_v5 }
 0x108   : > { %v367_v11 = vadd.f32 %v366_v10, %v365_v8 }
 0x10a   : > { %v369_v13 = vadd.f32 %v368_v12, %v367_v11 }
 0x10c   : > { %v371_v15 = vadd.f32 %v370_v14, %v369_v13 }
 0x10e   : > { %v372_v16 = vrot.slane %v371_v15, 4 }
 0x110   : > { %v373_v17 = vadd.f32 %v372_v16, %v371_v15 }
 0x112   : > { %v374_v18 = vrot.slane %v373_v17, 2 }
 0x114   : > { %v375_v19 = vadd.f32 %v374_v18, %v373_v17 }
 0x116   : > { %v376_v20 = vrot.slane %v375_v19, 1 }
 0x118   : > { %v377_v21 = vadd.f32 %v376_v20, %v375_v19 }
 0x11a   : > { %v378_v22 = vmul.f32 0.015873017, %v377_v21 }
 0x11c   : > { %v379_v23 = vadd.f32 1e-05, %v378_v22 }
 0x11e   : > { %6742 = vrsqrt.f32 %v379_v23 }
 0x12b   : > { %v6743_v31 = vpop.eup %6742 }
 0x12c   : > { %v381_v33 = vmul.f32 %v6743_v31, %v341_v49  ;;  %v382_v34 = vmul.f32 %v6743_v31, %v342_v50  ;;  %v383_v35 = vmul.f32 %v6743_v31, %v343_v51  ;;  %v384_v36 = vmul.f32 %v6743_v31, %v344_v52 }
 0x12d   : > { %v385_v37 = vmul.f32 %v6743_v31, %v345_v53  ;;  %v386_v38 = vmul.f32 %v6743_v31, %v346_v57  ;;  %v387_v39 = vmul.f32 %v6743_v31, %v347_v62  ;;  %v388_v40 = vmul.f32 %v6743_v31, %v348_v2 }
 0x12e   : > { %v393_v41 = vmul.f32 %v392_v30, %v381_v33  ;;  %v394_v42 = vmul.f32 %v392_v30, %v382_v34  ;;  %v395_v43 = vmul.f32 %v392_v30, %v383_v35  ;;  %v396_v44 = vmul.f32 %v392_v30, %v384_v36 }
 0x12f   : > { %v397_v45 = vmul.f32 %v392_v30, %v385_v37  ;;  %v398_v46 = vmul.f32 %v392_v30, %v386_v38  ;;  %v399_v47 = vmul.f32 %v392_v30, %v387_v39  ;;  %v400_v48 = vmul.f32 %v392_v30, %v388_v40 }
 0x130   : > { %v7202_v54 = vadd.f32 %v404_v32, %v393_v41  ;;  %v7204_v55 = vadd.f32 %v404_v32, %v394_v42  ;;  %v7206_v49 = vadd.f32 %v404_v32, %v395_v43  ;;  %v7208_v50 = vadd.f32 %v404_v32, %v396_v44 }
 0x131   : > { %v7210_v51 = vadd.f32 %v404_v32, %v397_v45  ;;  %v7212_v52 = vadd.f32 %v404_v32, %v398_v46  ;;  %v7214_v53 = vadd.f32 %v404_v32, %v399_v47  ;;  %v7216_v56 = vadd.f32 %v404_v32, %v400_v48 }
 0x132   : > { %v413_v57 = vmul.f32 %v7202_v54, %v7202_v54  ;;  %v414_v58 = vmul.f32 %v7204_v55, %v7204_v55  ;;  %v415_v59 = vmul.f32 %v7206_v49, %v7206_v49  ;;  %v416_v60 = vmul.f32 %v7208_v50, %v7208_v50 }
 0x133   : > { %v417_v61 = vmul.f32 %v7210_v51, %v7210_v51  ;;  %v418_v62 = vmul.f32 %v7212_v52, %v7212_v52  ;;  %v419_v63 = vmul.f32 %v7214_v53, %v7214_v53  ;;  %v420_v0 = vmul.f32 %v7216_v56, %v7216_v56 }
 0x134   : > { %v421_v1 = vmul.f32 %v413_v57, %v7202_v54  ;;  %v422_v2 = vmul.f32 %v414_v58, %v7204_v55  ;;  %v423_v3 = vmul.f32 %v415_v59, %v7206_v49  ;;  %v424_v4 = vmul.f32 %v416_v60, %v7208_v50 }
 0x135   : > { %v425_v5 = vmul.f32 %v417_v61, %v7210_v51  ;;  %v426_v6 = vmul.f32 %v418_v62, %v7212_v52  ;;  %v427_v7 = vmul.f32 %v419_v63, %v7214_v53  ;;  %v428_v8 = vmul.f32 %v420_v0, %v7216_v56 }
 0x136   : > { %v429_v9 = vmul.f32 0.044715, %v421_v1  ;;  %v430_v10 = vmul.f32 0.044715, %v422_v2  ;;  %v431_v11 = vmul.f32 0.044715, %v423_v3 }
 0x137   : > { %v432_v12 = vmul.f32 0.044715, %v424_v4  ;;  %v433_v13 = vmul.f32 0.044715, %v425_v5  ;;  %v434_v14 = vmul.f32 0.044715, %v426_v6 }
 0x138   : > { %v435_v15 = vmul.f32 0.044715, %v427_v7  ;;  %v436_v16 = vmul.f32 0.044715, %v428_v8  ;;  %v437_v17 = vadd.f32 %v429_v9, %v7202_v54  ;;  %v438_v18 = vadd.f32 %v430_v10, %v7204_v55 }
 0x139   : > { %v439_v19 = vadd.f32 %v431_v11, %v7206_v49  ;;  %v440_v20 = vadd.f32 %v432_v12, %v7208_v50  ;;  %v441_v21 = vadd.f32 %v433_v13, %v7210_v51  ;;  %v442_v22 = vadd.f32 %v434_v14, %v7212_v52  ;;  %v501_v12 = vld [vmem:[%s8411_s2 + $0x18] sm:$0xff] }
 0x13a   : > { %v443_v23 = vadd.f32 %v435_v15, %v7214_v53  ;;  %v445_v25 = vmul.f32 0.7978846, %v437_v17  ;;  %v446_v30 = vmul.f32 0.7978846, %v438_v18  ;;  %v444_v31 = vadd.f32 %v436_v16, %v7216_v56  ;;  %v500_v15 = vld [vmem:[%s8411_s2 + $0x10] sm:$0xff]  ;;  %v834_v17 = vld [vmem:[%s8411_s2 + $0x88] sm:$0xff] }
 0x13b   : > { %v447_v32 = vmul.f32 0.7978846, %v439_v19  ;;  %v448_v33 = vmul.f32 0.7978846, %v440_v20  ;;  %v449_v34 = vmul.f32 0.7978846, %v441_v21 }
 0x13c   : > { %6744 = vtanh.f32 %v445_v25  ;;  %v450_v35 = vmul.f32 0.7978846, %v442_v22  ;;  %v451_v36 = vmul.f32 0.7978846, %v443_v23  ;;  %v452_v37 = vmul.f32 0.7978846, %v444_v31 }
 0x13d   : > { %6746 = vtanh.f32 %v446_v30  ;;  %v833_v19 = vld [vmem:[%s8411_s2 + $0x80] sm:$0xff]  ;;  %v832_v21 = vld [vmem:[%s8411_s2 + $0x78] sm:$0xff]  ;;  %v831_v23 = vld [vmem:[%s8411_s2 + $0x70] sm:$0xff] }
 0x13e   : > { %6748 = vtanh.f32 %v447_v32 }
 0x13f   : > { %6750 = vtanh.f32 %v448_v33 }
 0x140   : > { %6752 = vtanh.f32 %v449_v34 }
 0x141   : > { %6754 = vtanh.f32 %v450_v35 }
 0x142   : > { %6756 = vtanh.f32 %v451_v36 }
 0x143   : > { %6758 = vtanh.f32 %v452_v37 }
 0x149   : > { %v6745_v38 = vpop.eup %6744 }
 0x14a   : > { %v6747_v39 = vpop.eup %6746  ;;  %v461_v40 = vadd.f32 1.0, %v6745_v38 }
 0x14b   : > { %v6749_v41 = vpop.eup %6748  ;;  %v462_v42 = vadd.f32 1.0, %v6747_v39 }
 0x14c   : > { %v6751_v43 = vpop.eup %6750  ;;  %v463_v44 = vadd.f32 1.0, %v6749_v41  ;;  %v469_v45 = vmul.f32 0.5, %v461_v40 }
 0x14d   : > { %v6753_v46 = vpop.eup %6752  ;;  %v464_v47 = vadd.f32 1.0, %v6751_v43  ;;  %v470_v48 = vmul.f32 0.5, %v462_v42 }
 0x14e   : > { %v6755_v57 = vpop.eup %6754  ;;  %v465_v58 = vadd.f32 1.0, %v6753_v46  ;;  %v471_v59 = vmul.f32 0.5, %v463_v44  ;;  %v477_v60 = vmul.f32 %v469_v45, %v7202_v54 }
 0x14f   : > { %v6757_v61 = vpop.eup %6756  ;;  %v466_v62 = vadd.f32 1.0, %v6755_v57  ;;  %v472_v63 = vmul.f32 0.5, %v464_v47  ;;  %v478_v0 = vmul.f32 %v470_v48, %v7204_v55 }
 0x150   : > { %v6759_v1 = vpop.eup %6758  ;;  %v467_v2 = vadd.f32 1.0, %v6757_v61  ;;  %v473_v3 = vmul.f32 0.5, %v465_v58  ;;  %v479_v4 = vmul.f32 %v471_v59, %v7206_v49  ;;  %485 = vst.msk [vmem:[#allocation2] sm:$0xff] %vm316_vm2, %v477_v60 }
 0x151   : > { %v468_v5 = vadd.f32 1.0, %v6759_v1  ;;  %v474_v6 = vmul.f32 0.5, %v466_v62  ;;  %v480_v7 = vmul.f32 %v472_v63, %v7208_v50  ;;  %486 = vst.msk [vmem:[#allocation2 + $0x8] sm:$0xff] %vm316_vm2, %v478_v0 }
 0x152   : > { %v475_v8 = vmul.f32 0.5, %v467_v2  ;;  %v481_v54 = vmul.f32 %v473_v3, %v7210_v51  ;;  %487 = vst.msk [vmem:[#allocation2 + $0x10] sm:$0xff] %vm316_vm2, %v479_v4 }
 0x153   : > { %v476_v9 = vmul.f32 0.5, %v468_v5  ;;  %v482_v55 = vmul.f32 %v474_v6, %v7212_v52  ;;  %488 = vst.msk [vmem:[#allocation2 + $0x18] sm:$0xff] %vm316_vm2, %v480_v7 }
 0x154   : > { %v483_v49 = vmul.f32 %v475_v8, %v7214_v53  ;;  %489 = vst.msk [vmem:[#allocation2 + $0x20] sm:$0xff] %vm316_vm2, %v481_v54  ;;  %v502_v53 = vld [vmem:[%s8411_s2 + $0x20] sm:$0xff] }
 0x155   : > { %v484_v10 = vmul.f32 %v476_v9, %v7216_v56  ;;  %490 = vst.msk [vmem:[#allocation2 + $0x28] sm:$0xff] %vm316_vm2, %v482_v55 }
 0x156   : > { %491 = vst.msk [vmem:[#allocation2 + $0x30] sm:$0xff] %vm316_vm2, %v483_v49 }
 0x157   : > { %492 = vst.msk [vmem:[#allocation2 + $0x38] sm:$0x7f] %vm330_vm3, %v484_v10 }
 0x158   : > { %v505_v50 = vld [vmem:[#allocation2 + $0x1] ss:$2 sm:$0xff]  ;;  %v493_v16 = vld [vmem:[#allocation2] ss:$2 sm:$0xff] }
 0x159   : > { %6157 = vmatprep.mubr.msk.f32.mxu1 %vm316_vm2, %v505_v50  ;;  %v711_v51 = vld [vmem:[#allocation2 + $0x2] ss:$2 sm:$0xff]  ;;  %v824_v25 = vld [vmem:[#allocation2 + $0x3] ss:$2 sm:$0xff] }
 0x15a   : > { %6185 = vmatprep.mubr.msk.f32.mxu0 %vm316_vm2, %v711_v51  ;;  %v507_v52 = vld [vmem:[#allocation2 + $0x11] ss:$2 sm:$0xff]  ;;  %v495_v18 = vld [vmem:[#allocation2 + $0x10] ss:$2 sm:$0xff] }
 0x15b   : > { %6158 = vmatmul.mubr.msk.f32.vlgmr.msra.gmra.mxu1 %vm316_vm2, %v507_v52  ;;  %v713_v56 = vld [vmem:[#allocation2 + $0x12] ss:$2 sm:$0xff]  ;;  %v826_v30 = vld [vmem:[#allocation2 + $0x13] ss:$2 sm:$0xff] }
 0x15c   : > { %6186 = vmatmul.mubr.msk.f32.vlgmr.msra.gmra.mxu0 %vm316_vm2, %v713_v56  ;;  %v509_v11 = vld [vmem:[#allocation2 + $0x21] ss:$2 sm:$0xff]  ;;  %6164 = vmatpush3.msra.mxu1 %v7167_v24  ;;  %v497_v20 = vld [vmem:[#allocation2 + $0x20] ss:$2 sm:$0xff] }
 0x15d   : > { %6160 = vmatprep.mubr.msk.f32.mxu1 %vm316_vm2, %v509_v11  ;;  %v715_v13 = vld [vmem:[#allocation2 + $0x22] ss:$2 sm:$0xff]  ;;  %6165 = vmatprep.subr.mxu1 %v502_v53  ;;  %v828_v31 = vld [vmem:[#allocation2 + $0x23] ss:$2 sm:$0xff] }
 0x15e   : > { %6188 = vmatprep.mubr.msk.f32.mxu0 %vm316_vm2, %v715_v13  ;;  %6166 = vmatpush3.msra.mxu1 %v502_v53  ;;  %v511_v14 = vld [vmem:[#allocation2 + $0x31] ss:$2 sm:$0x3f]  ;;  %v717_v24 = vld [vmem:[#allocation2 + $0x32] ss:$2 sm:$0x3f] }
 0x15f   : > { %6161 = vmatmul.mubr.msk.f32.gmra.mxu1 %vm316_vm2, %v511_v14  ;;  %6167 = vmatprep.subr.mxu1 %v501_v12  ;;  %v499_v22 = vld [vmem:[#allocation2 + $0x30] ss:$2 sm:$0x3f]  ;;  %v830_v32 = vld [vmem:[#allocation2 + $0x33] ss:$2 sm:$0x3f] }
 0x160   : > { %6189 = vmatmul.mubr.msk.f32.gmra.mxu0 %vm316_vm2, %v717_v24  ;;  %6168 = vmatpush3.msra.mxu1 %v501_v12 }
 0x161   : > { %6171 = vmatprep.mubr.msk.f32.mxu1 %vm316_vm2, %v493_v16  ;;  %6169 = vmatprep.subr.mxu1 %v500_v15 }
 0x162   : > { %6170 = vmatpush3.msra.mxu1 %v500_v15 }
 0x163   : > { %6172 = vmatmul.mubr.msk.f32.vlgmr.msra.gmra.mxu1 %vm316_vm2, %v495_v18  ;;  %6191 = vmatprep.subr.mxu1 %v834_v17 }
 0x164   : > { %6174 = vmatprep.mubr.msk.f32.mxu1 %vm316_vm2, %v497_v20  ;;  %6192 = vmatpush3.msra.mxu1 %v834_v17 }
 0x165   : > { %6193 = vmatprep.subr.mxu1 %v833_v19 }
 0x166   : > { %6194 = vmatpush3.msra.mxu1 %v833_v19 }
 0x167   : > { %6175 = vmatmul.mubr.msk.f32.gmra.mxu1 %vm316_vm2, %v499_v22  ;;  %6195 = vmatprep.subr.mxu1 %v832_v21 }
 0x168   : > { %6196 = vmatpush3.msra.mxu1 %v832_v21  ;;  %6199 = vmatprep.mubr.msk.f32.mxu1 %vm316_vm2, %v824_v25 }
 0x169   : > { %6197 = vmatprep.subr.mxu1 %v831_v23 }
 0x16a   : > { %6198 = vmatpush3.msra.mxu1 %v831_v23 }
 0x16b   : > { %6200 = vmatmul.mubr.msk.f32.vlgmr.msra.gmra.mxu1 %vm316_vm2, %v826_v30 }
 0x16c   : > { %6202 = vmatprep.mubr.msk.f32.mxu1 %vm316_vm2, %v828_v31 }
 0x16f   : > { %6203 = vmatmul.mubr.msk.f32.gmra.mxu1 %vm316_vm2, %v830_v32 }
 0x21b   : > { %v6159_v33 = vpop.f32.mrf.mxu1 }
 0x21c   : > { %v6187_v37 = vpop.f32.mrf.mxu0 }
 0x21d   : > { %v594_v34 = vpop.f32.mrf.mxu1 }
 0x21e   : > { %v800_v41 = vpop.f32.mrf.mxu0 }
 0x21f   : > { %v6162_v35 = vpop.f32.mrf.mxu1 }
 0x220   : > { %v6190_v47 = vpop.f32.mrf.mxu0 }
 0x221   : > { %v604_v36 = vpop.f32.mrf.mxu1 }
 0x222   : > { %v810_v0 = vpop.f32.mrf.mxu0 }
 0x223   : > { %v6173_v38 = vpop.f32.mrf.mxu1 }
 0x224   : > { %v697_v40 = vadd.f32 %v6173_v38, %v6159_v33 }
 0x225   : > { %v691_v39 = vpop.f32.mrf.mxu1 }
 0x226   : > { %v692_v43 = vadd.f32 %v691_v39, %v594_v34  ;;  %v820_v46 = vadd.f32 %v6187_v37, %v697_v40 }
 0x227   : > { %v6176_v42 = vpop.f32.mrf.mxu1 }
 0x228   : > { %v707_v45 = vadd.f32 %v6176_v42, %v6162_v35  ;;  %v819_v59 = vadd.f32 %v800_v41, %v692_v43 }
 0x229   : > { %v701_v44 = vpop.f32.mrf.mxu1 }
 0x22a   : > { %v702_v57 = vadd.f32 %v701_v44, %v604_v36  ;;  %v822_v63 = vadd.f32 %v6190_v47, %v707_v45 }
 0x22b   : > { %v6201_v48 = vpop.f32.mrf.mxu1 }
 0x22c   : > { %v933_v58 = vadd.f32 %v6201_v48, %v820_v46  ;;  %v821_v5 = vadd.f32 %v810_v0, %v702_v57 }
 0x22d   : > { %v913_v60 = vpop.f32.mrf.mxu1 }
 0x22e   : > { %v937_v61 = vmul.f32 %v933_v58, %v933_v58  ;;  %v932_v62 = vadd.f32 %v913_v60, %v819_v59 }
 0x22f   : > { %v6204_v1 = vpop.f32.mrf.mxu1 }
 0x230   : > { %v941_v2 = vmul.f32 %v937_v61, %v933_v58  ;;  %v936_v3 = vmul.f32 %v932_v62, %v932_v62  ;;  %v935_v4 = vadd.f32 %v6204_v1, %v822_v63 }
 0x231   : > { %v923_v6 = vpop.f32.mrf.mxu1 }
 0x232   : > { %v945_v7 = vmul.f32 0.044715, %v941_v2  ;;  %v940_v8 = vmul.f32 %v936_v3, %v932_v62  ;;  %v939_v54 = vmul.f32 %v935_v4, %v935_v4  ;;  %v934_v9 = vadd.f32 %v923_v6, %v821_v5  ;;  %v1045_v5 = vld [vmem:[%s8411_s2 + $0xa8] sm:$0xff]  ;;  %v1044_v6 = vld [vmem:[%s8411_s2 + $0xa0] sm:$0xff] }
 0x233   : > { %6205 = vmatprep.subr.mxu0 %v1045_v5 }
 0x234   : > { %v949_v55 = vadd.f32 %v945_v7, %v933_v58  ;;  %v944_v49 = vmul.f32 0.044715, %v940_v8  ;;  %v943_v10 = vmul.f32 %v939_v54, %v935_v4  ;;  %v938_v50 = vmul.f32 %v934_v9, %v934_v9  ;;  %6206 = vmatpush3.msra.mxu0 %v1045_v5  ;;  %v1043_v7 = vld [vmem:[%s8411_s2 + $0x98] sm:$0xff]  ;;  %v1042_v8 = vld [vmem:[%s8411_s2 + $0x90] sm:$0xff]  ;;  %v1170_v54 = vld [vmem:[%s8411_s2 + $0xe8] sm:$0xff] }
 0x235   : > { %6207 = vmatprep.subr.mxu0 %v1044_v6  ;;  %6219 = vmatprep.subr.mxu1 %v1170_v54 }
 0x236   : > { %v948_v51 = vadd.f32 %v944_v49, %v932_v62  ;;  %v947_v52 = vmul.f32 0.044715, %v943_v10  ;;  %v942_v53 = vmul.f32 %v938_v50, %v934_v9  ;;  %v953_v56 = vmul.f32 0.7978846, %v949_v55  ;;  %6208 = vmatpush3.msra.mxu0 %v1044_v6  ;;  %6220 = vmatpush3.msra.mxu1 %v1170_v54 }
 0x237   : > { %6209 = vmatprep.subr.mxu0 %v1043_v7 }
 0x238   : > { %v951_v11 = vadd.f32 %v947_v52, %v935_v4  ;;  %v946_v12 = vmul.f32 0.044715, %v942_v53  ;;  %v952_v13 = vmul.f32 0.7978846, %v948_v51  ;;  %6760 = vtanh.f32 %v953_v56  ;;  %6210 = vmatpush3.msra.mxu0 %v1043_v7 }
 0x239   : > { %6211 = vmatprep.subr.mxu0 %v1042_v8 }
 0x23a   : > { %v950_v14 = vadd.f32 %v946_v12, %v934_v9  ;;  %6762 = vtanh.f32 %v952_v13  ;;  %v955_v15 = vmul.f32 0.7978846, %v951_v11  ;;  %6212 = vmatpush3.msra.mxu0 %v1042_v8 }
 0x23c   : > { %v954_v24 = vmul.f32 0.7978846, %v950_v14  ;;  %6764 = vtanh.f32 %v955_v15  ;;  %v7328_v14 = vsub.s32 2, %v7185_v26  ;;  %v7331_v15 = vsub.s32 3, %v7185_v26 }
 0x23e   : > { %6766 = vtanh.f32 %v954_v24  ;;  %v1029_v24 = vrot.slane %v7193_v28, %v7328_v14 }
 0x245   : > { %v6761_v16 = vpop.eup %6760 }
 0x246   : > { %v961_v17 = vadd.f32 1.0, %v6761_v16 }
 0x247   : > { %v6763_v18 = vpop.eup %6762 }
 0x248   : > { %v960_v19 = vadd.f32 1.0, %v6763_v18  ;;  %v965_v22 = vmul.f32 0.5, %v961_v17  ;;  %v1037_v18 = vrot.slane %v7193_v28, %v7331_v15 }
 0x249   : > { %v6765_v20 = vpop.eup %6764 }
 0x24a   : > { %v964_v21 = vmul.f32 0.5, %v960_v19  ;;  %v963_v23 = vadd.f32 1.0, %v6765_v20  ;;  %v969_v34 = vmul.f32 %v965_v22, %v933_v58 }
 0x24b   : > { %v6767_v25 = vpop.eup %6766 }
 0x24c   : > { %v968_v30 = vmul.f32 %v964_v21, %v932_v62  ;;  %v962_v31 = vadd.f32 1.0, %v6767_v25  ;;  %v967_v35 = vmul.f32 0.5, %v963_v23  ;;  %v975_v38 = vsel %vm316_vm2, %v969_v34, 0.0 }
 0x24e   : > { %v972_v32 = vsel %vm316_vm2, %v968_v30, 0.0  ;;  %v966_v33 = vmul.f32 0.5, %v962_v31  ;;  %v971_v39 = vmul.f32 %v967_v35, %v935_v4 }
 0x24f   : > { %973 = vadd.xlane.f32.xlu0 %v972_v32 }
 0x250   : > { %v970_v36 = vmul.f32 %v966_v33, %v934_v9  ;;  %v982_v40 = vsel %vm981_vm4, %v971_v39, 0.0 }
 0x252   : > { %v978_v37 = vsel %vm316_vm2, %v970_v36, 0.0 }
 0x253   : > { %979 = vadd.xlane.f32.xlu1 %v978_v37  ;;  %976 = vadd.xlane.f32.xlu0 %v975_v38  ;;  %v7035_v38 = vmov 0.0  }
 0x254   : > { %1148 = vst.msk [vmem:[#allocation3 + $0x8] sm:$0xff] %vm316_vm2, %v7035_v38  ;;  %1149 = vst.msk [vmem:[#allocation3 + $0x10] sm:$0xff] %vm316_vm2, %v7035_v38 }
 0x255   : > { %1147 = vst.msk [vmem:[#allocation3] sm:$0xff] %vm316_vm2, %v7035_v38  ;;  %1150 = vst.msk [vmem:[#allocation3 + $0x18] sm:$0xff] %vm316_vm2, %v7035_v38 }
 0x257   : > { %983 = vadd.xlane.f32.xlu1 %v982_v40  ;;  %v1168_v40 = vld [vmem:[%s8411_s2 + $0xd8] sm:$0xff] }
 0x2d8   : > { %v974_v41 = vpop.xlane.xlu0 %973 }
 0x2d9   : > { %v986_v42 = vmul.f32 0.03125, %v974_v41  ;;  %v1167_v41 = vld [vmem:[%s8411_s2 + $0xd0] sm:$0xff] }
 0x2db   : > { %v990_v43 = vsub.f32 %v968_v30, %v986_v42  ;;  %v1166_v42 = vld [vmem:[%s8411_s2 + $0xc8] sm:$0xff] }
 0x2dc   : > { %v980_v44 = vpop.xlane.xlu1 %979  ;;  %v977_v45 = vpop.xlane.xlu0 %976  ;;  %6233 = vmatprep.subr.mxu0 %v1166_v42 }
 0x2dd   : > { %v988_v46 = vmul.f32 0.03125, %v980_v44  ;;  %v987_v47 = vmul.f32 0.03125, %v977_v45  ;;  %v994_v48 = vmul.f32 %v990_v43, %v990_v43  ;;  %v1368_v44 = vld [vmem:[%s8411_s2 + $0x108] sm:$0xff]  ;;  %v1164_v45 = vld [vmem:[%s8411_s2 + $0xb8] sm:$0xff] }
 0x2df   : > { %v992_v57 = vsub.f32 %v970_v36, %v988_v46  ;;  %v991_v58 = vsub.f32 %v969_v34, %v987_v47  ;;  %v998_v59 = vsel %vm316_vm2, %v994_v48, 0.0  ;;  %v1163_v46 = vld [vmem:[%s8411_s2 + $0xb0] sm:$0xff]  ;;  %v7374_v47 = vsub.s32 4, %v7185_v26 }
 0x2e0   : > { %v984_v60 = vpop.xlane.xlu1 %983  ;;  %999 = vadd.xlane.f32.xlu0 %v998_v59 }
 0x2e1   : > { %v989_v61 = vmul.f32 0.03125, %v984_v60  ;;  %v996_v62 = vmul.f32 %v992_v57, %v992_v57  ;;  %v995_v63 = vmul.f32 %v991_v58, %v991_v58  ;;  %v1049_v48 = vrot.slane %v7193_v28, %v7374_v47 }
 0x2e3   : > { %v993_v0 = vsub.f32 %v971_v39, %v989_v61  ;;  %v1004_v1 = vsel %vm316_vm2, %v996_v62, 0.0  ;;  %v1001_v2 = vsel %vm316_vm2, %v995_v63, 0.0  ;;  %v1169_v39 = vld [vmem:[%s8411_s2 + $0xe0] sm:$0xff] }
 0x2e4   : > { %1005 = vadd.xlane.f32.xlu0 %v1004_v1  ;;  %1002 = vadd.xlane.f32.xlu1 %v1001_v2  ;;  %v1367_v63 = vld [vmem:[%s8411_s2 + $0x100] sm:$0xff]  ;;  %v1366_v2 = vld [vmem:[%s8411_s2 + $0xf8] sm:$0xff] }
 0x2e5   : > { %v997_v3 = vmul.f32 %v993_v0, %v993_v0  ;;  %6221 = vmatprep.subr.mxu1 %v1169_v39 }
 0x2e6   : > { %6222 = vmatpush3.msra.mxu1 %v1169_v39 }
 0x2e7   : > { %v1007_v4 = vsel %vm981_vm4, %v997_v3, 0.0  ;;  %6223 = vmatprep.subr.mxu1 %v1168_v40  ;;  %v1365_v3 = vld [vmem:[%s8411_s2 + $0xf0] sm:$0xff] }
 0x2e8   : > { %1008 = vadd.xlane.f32.xlu1 %v1007_v4  ;;  %6224 = vmatpush3.msra.mxu1 %v1168_v40 }
 0x2e9   : > { %6225 = vmatprep.subr.mxu1 %v1167_v41 }
 0x2ea   : > { %6226 = vmatpush3.msra.mxu1 %v1167_v41 }
 0x2eb   : > { %6247 = vmatprep.subr.mxu1 %v1368_v44 }
 0x369   : > { %v1000_v9 = vpop.xlane.xlu0 %999 }
 0x36a   : > { %v1010_v55 = vmul.f32 0.03125, %v1000_v9 }
 0x36c   : > { %v1014_v49 = vadd.f32 1e-05, %v1010_v55 }
 0x36d   : > { %v1003_v10 = vpop.xlane.xlu1 %1002  ;;  %v1006_v50 = vpop.xlane.xlu0 %1005 }
 0x36e   : > { %6768 = vrsqrt.f32 %v1014_v49  ;;  %v1011_v51 = vmul.f32 0.03125, %v1003_v10  ;;  %v1012_v52 = vmul.f32 0.03125, %v1006_v50 }
 0x370   : > { %v1015_v53 = vadd.f32 1e-05, %v1011_v51  ;;  %v1016_v56 = vadd.f32 1e-05, %v1012_v52  ;;  %v7420_v51 = vsub.s32 5, %v7185_v26 }
 0x371   : > { %v1009_v11 = vpop.xlane.xlu1 %1008 }
 0x372   : > { %6770 = vrsqrt.f32 %v1015_v53  ;;  %v1013_v12 = vmul.f32 0.03125, %v1009_v11 }
 0x373   : > { %6772 = vrsqrt.f32 %v1016_v56 }
 0x374   : > { %v1017_v13 = vadd.f32 1e-05, %v1013_v12  ;;  %v1473_v12 = vrot.slane %v7193_v28, %v7420_v51 }
 0x376   : > { %6774 = vrsqrt.f32 %v1017_v13 }
 0x37b   : > { %v6769_v16 = vpop.eup %6768 }
 0x37c   : > { %v1022_v17 = vmul.f32 %v6769_v16, %v990_v43  ;;  %v1165_v43 = vld [vmem:[%s8411_s2 + $0xc0] sm:$0xff] }
 0x37e   : > { %v1030_v19 = vmul.f32 %v1029_v24, %v1022_v17 }
 0x37f   : > { %v6771_v20 = vpop.eup %6770 }
 0x380   : > { %v6773_v21 = vpop.eup %6772  ;;  %v1023_v22 = vmul.f32 %v6771_v20, %v991_v58  ;;  %v1038_v23 = vadd.f32 %v1037_v18, %v1030_v19 }
 0x381   : > { %v1024_v25 = vmul.f32 %v6773_v21, %v992_v57 }
 0x382   : > { %6213 = vmatprep.mubr.msk.f32.mxu0 %vm316_vm2, %v1038_v23  ;;  %v1031_v30 = vmul.f32 %v1029_v24, %v1023_v22 }
 0x383   : > { %v6775_v31 = vpop.eup %6774  ;;  %v1032_v32 = vmul.f32 %v1029_v24, %v1024_v25 }
 0x384   : > { %v1039_v33 = vadd.f32 %v1037_v18, %v1031_v30  ;;  %v1025_v34 = vmul.f32 %v6775_v31, %v993_v0 }
 0x385   : > { %v1040_v35 = vadd.f32 %v1037_v18, %v1032_v32 }
 0x386   : > { %6214 = vmatmul.mubr.msk.f32.vlgmr.msra.gmra.mxu0 %vm316_vm2, %v1039_v33  ;;  %v1033_v36 = vmul.f32 %v1029_v24, %v1025_v34 }
 0x387   : > { %6216 = vmatprep.mubr.msk.f32.mxu0 %vm316_vm2, %v1040_v35  ;;  %6234 = vmatpush3.msra.mxu0 %v1166_v42 }
 0x388   : > { %v1041_v37 = vadd.f32 %v1037_v18, %v1033_v36  ;;  %6235 = vmatprep.subr.mxu0 %v1165_v43 }
 0x389   : > { %6236 = vmatpush3.msra.mxu0 %v1165_v43 }
 0x38a   : > { %6217 = vmatmul.mubr.msk.f32.gmra.mxu0 %vm316_vm2, %v1041_v37  ;;  %6237 = vmatprep.subr.mxu0 %v1164_v45 }
 0x38b   : > { %6238 = vmatpush3.msra.mxu0 %v1164_v45 }
 0x38c   : > { %6239 = vmatprep.subr.mxu0 %v1163_v46 }
 0x38d   : > { %6240 = vmatpush3.msra.mxu0 %v1163_v46 }
 0x446   : > { %v6215_v57 = vpop.f32.mrf.mxu0 }
 0x447   : > { %v7378_v58 = vadd.f32 %v6215_v57, %v1049_v48 }
 0x448   : > { %v1128_v59 = vpop.f32.mrf.mxu0 }
 0x449   : > { %1152 = vst.msk [vmem:[#allocation3 + $0x9] sm:$0xff] %vm316_vm2, %v7378_v58  ;;  %v7382_v60 = vadd.f32 %v1128_v59, %v1049_v48 }
 0x44a   : > { %v6218_v61 = vpop.f32.mrf.mxu0 }
 0x44b   : > { %1151 = vst.msk [vmem:[#allocation3 + $0x1] sm:$0xff] %vm316_vm2, %v7382_v60  ;;  %v7386_v62 = vadd.f32 %v6218_v61, %v1049_v48  ;;  %6227 = vmatprep.mubr.msk.f32.mxu1 %vm316_vm2, %v7382_v60 }
 0x44c   : > { %v1138_v0 = vpop.f32.mrf.mxu0  ;;  %6228 = vmatmul.mubr.msk.f32.vlgmr.msra.gmra.mxu1 %vm316_vm2, %v7378_v58 }
 0x44d   : > { %1154 = vst.msk [vmem:[#allocation3 + $0x19] sm:$0x3f] %vm981_vm4, %v7386_v62  ;;  %v7397_v1 = vadd.f32 %v1138_v0, %v1049_v48  ;;  %6248 = vmatpush3.msra.mxu1 %v1368_v44 }
 0x44e   : > { %6249 = vmatprep.subr.mxu1 %v1367_v63 }
 0x44f   : > { %1153 = vst.msk [vmem:[#allocation3 + $0x11] sm:$0xff] %vm316_vm2, %v7397_v1  ;;  %6230 = vmatprep.mubr.msk.f32.mxu1 %vm316_vm2, %v7397_v1  ;;  %6250 = vmatpush3.msra.mxu1 %v1367_v63 }
 0x450   : > { %6231 = vmatmul.mubr.msk.f32.gmra.mxu1 %vm316_vm2, %v7386_v62  ;;  %6251 = vmatprep.subr.mxu1 %v1366_v2 }
 0x451   : > { %6252 = vmatpush3.msra.mxu1 %v1366_v2 }
 0x452   : > { %v1155_v4 = vld [vmem:[#allocation3] sm:$0xff]  ;;  %v1156_v6 = vld [vmem:[#allocation3 + $0x8] sm:$0xff]  ;;  %6253 = vmatprep.subr.mxu1 %v1365_v3 }
 0x453   : > { %v1159_v5 = vld [vmem:[#allocation3 + $0x2] sm:$0xff]  ;;  %6241 = vmatprep.mubr.msk.f32.mxu0 %vm316_vm2, %v1155_v4  ;;  %6254 = vmatpush3.msra.mxu1 %v1365_v3 }
 0x454   : > { %6255 = vmatprep.mubr.msk.f32.mxu1 %vm316_vm2, %v1159_v5  ;;  %6242 = vmatmul.mubr.msk.f32.vlgmr.msra.gmra.mxu0 %vm316_vm2, %v1156_v6  ;;  %v1162_v55 = vld [vmem:[#allocation3 + $0x1a] sm:$0x3f] }
 0x456   : > { %v1157_v7 = vld [vmem:[#allocation3 + $0x10] sm:$0xff]  ;;  %v1158_v54 = vld [vmem:[#allocation3 + $0x18] sm:$0x3f] }
 0x457   : > { %v1160_v8 = vld [vmem:[#allocation3 + $0xa] sm:$0xff]  ;;  %6244 = vmatprep.mubr.msk.f32.mxu0 %vm316_vm2, %v1157_v7  ;;  %v1161_v9 = vld [vmem:[#allocation3 + $0x12] sm:$0xff] }
 0x458   : > { %6256 = vmatmul.mubr.msk.f32.vlgmr.msra.gmra.mxu1 %vm316_vm2, %v1160_v8  ;;  %6245 = vmatmul.mubr.msk.f32.gmra.mxu0 %vm316_vm2, %v1158_v54 }
 0x459   : > { %6258 = vmatprep.mubr.msk.f32.mxu1 %vm316_vm2, %v1161_v9 }
 0x45c   : > { %6259 = vmatmul.mubr.msk.f32.gmra.mxu1 %vm316_vm2, %v1162_v55 }
 0x50c   : > { %v6229_v49 = vpop.f32.mrf.mxu1 }
 0x50e   : > { %v1249_v10 = vpop.f32.mrf.mxu1 }
 0x510   : > { %v6232_v50 = vpop.f32.mrf.mxu1 }
 0x512   : > { %v1259_v53 = vpop.f32.mrf.mxu1 }
 0x514   : > { %v6243_v52 = vpop.f32.mrf.mxu0 }
 0x515   : > { %v1352_v56 = vadd.f32 %v6243_v52, %v6229_v49 }
 0x516   : > { %v1346_v11 = vpop.f32.mrf.mxu0 }
 0x517   : > { %v1347_v13 = vadd.f32 %v1346_v11, %v1249_v10 }
 0x518   : > { %v6257_v24 = vpop.f32.mrf.mxu1  ;;  %v6246_v17 = vpop.f32.mrf.mxu0 }
 0x519   : > { %v1467_v16 = vadd.f32 %v6257_v24, %v1352_v56  ;;  %v1362_v18 = vadd.f32 %v6246_v17, %v6232_v50 }
 0x51a   : > { %v1447_v19 = vpop.f32.mrf.mxu1  ;;  %v1356_v22 = vpop.f32.mrf.mxu0 }
 0x51b   : > { %v1475_v20 = vadd.f32 %v1473_v12, %v1467_v16  ;;  %v1466_v21 = vadd.f32 %v1447_v19, %v1347_v13  ;;  %v1357_v23 = vadd.f32 %v1356_v22, %v1259_v53 }
 0x51c   : > { %v6260_v25 = vpop.f32.mrf.mxu1 }
 0x51d   : > { %v1479_v30 = vmul.f32 %v1475_v20, %v1475_v20  ;;  %v1474_v31 = vadd.f32 %v1473_v12, %v1466_v21  ;;  %v1469_v32 = vadd.f32 %v6260_v25, %v1362_v18 }
 0x51e   : > { %v1457_v33 = vpop.f32.mrf.mxu1 }
 0x51f   : > { %v1483_v34 = vmul.f32 %v1479_v30, %v1475_v20  ;;  %v1478_v35 = vmul.f32 %v1474_v31, %v1474_v31  ;;  %v1477_v36 = vadd.f32 %v1473_v12, %v1469_v32  ;;  %v1468_v37 = vadd.f32 %v1457_v33, %v1357_v23 }
 0x521   : > { %v1487_v28 = vmul.f32 0.044715, %v1483_v34  ;;  %v1482_v39 = vmul.f32 %v1478_v35, %v1474_v31  ;;  %v1481_v40 = vmul.f32 %v1477_v36, %v1477_v36  ;;  %v1476_v41 = vadd.f32 %v1473_v12, %v1468_v37 }
 0x523   : > { %v1491_v42 = vadd.f32 %v1487_v28, %v1475_v20  ;;  %v1486_v43 = vmul.f32 0.044715, %v1482_v39  ;;  %v1485_v44 = vmul.f32 %v1481_v40, %v1477_v36  ;;  %v1480_v45 = vmul.f32 %v1476_v41, %v1476_v41 }
 0x525   : > { %v1490_v46 = vadd.f32 %v1486_v43, %v1474_v31  ;;  %v1489_v48 = vmul.f32 0.044715, %v1485_v44  ;;  %v1484_v57 = vmul.f32 %v1480_v45, %v1476_v41  ;;  %v1495_v59 = vmul.f32 0.7978846, %v1491_v42  ;;  %v1589_v44 = vld [vmem:[%s8411_s2 + $0x128] sm:$0xff]  ;;  %v1588_v45 = vld [vmem:[%s8411_s2 + $0x120] sm:$0xff] }
 0x526   : > { %6261 = vmatprep.subr.mxu0 %v1589_v44 }
 0x527   : > { %v1493_v61 = vadd.f32 %v1489_v48, %v1477_v36  ;;  %v1488_v63 = vmul.f32 0.044715, %v1484_v57  ;;  %6776 = vtanh.f32 %v1495_v59  ;;  %v1494_v0 = vmul.f32 0.7978846, %v1490_v46  ;;  %6262 = vmatpush3.msra.mxu0 %v1589_v44  ;;  %v1587_v46 = vld [vmem:[%s8411_s2 + $0x118] sm:$0xff]  ;;  %v1586_v48 = vld [vmem:[%s8411_s2 + $0x110] sm:$0xff] }
 0x528   : > { %6263 = vmatprep.subr.mxu0 %v1588_v45 }
 0x529   : > { %v1492_v2 = vadd.f32 %v1488_v63, %v1476_v41  ;;  %6778 = vtanh.f32 %v1494_v0  ;;  %v1497_v3 = vmul.f32 0.7978846, %v1493_v61  ;;  %6264 = vmatpush3.msra.mxu0 %v1588_v45 }
 0x52a   : > { %6265 = vmatprep.subr.mxu0 %v1587_v46 }
 0x52b   : > { %6780 = vtanh.f32 %v1497_v3  ;;  %v1496_v4 = vmul.f32 0.7978846, %v1492_v2  ;;  %6266 = vmatpush3.msra.mxu0 %v1587_v46 }
 0x52c   : > { %6267 = vmatprep.subr.mxu0 %v1586_v48 }
 0x52d   : > { %6782 = vtanh.f32 %v1496_v4  ;;  %6268 = vmatpush3.msra.mxu0 %v1586_v48 }
 0x534   : > { %v6777_v5 = vpop.eup %6776 }
 0x535   : > { %v1503_v6 = vadd.f32 1.0, %v6777_v5 }
 0x536   : > { %v6779_v7 = vpop.eup %6778 }
 0x537   : > { %v1507_v8 = vmul.f32 0.5, %v1503_v6  ;;  %v1502_v54 = vadd.f32 1.0, %v6779_v7 }
 0x538   : > { %v6781_v9 = vpop.eup %6780 }
 0x539   : > { %v1511_v55 = vmul.f32 %v1507_v8, %v1475_v20  ;;  %v1506_v49 = vmul.f32 0.5, %v1502_v54  ;;  %v1505_v10 = vadd.f32 1.0, %v6781_v9  ;;  %v7449_v54 = vsub.s32 6, %v7185_v26 }
 0x53a   : > { %v6783_v50 = vpop.eup %6782 }
 0x53b   : > { %v1515_v52 = vadd.f32 %v1511_v55, %v7378_v58  ;;  %v1510_v53 = vmul.f32 %v1506_v49, %v1474_v31  ;;  %v1509_v56 = vmul.f32 0.5, %v1505_v10  ;;  %v1504_v11 = vadd.f32 1.0, %v6783_v50  ;;  %v6970_v55 = vld [vmem:[%s8410_s1] sm:$0xff] }
 0x53c   : > { %v1573_v49 = vrot.slane %v6970_v55, %v7449_v54  ;;  %v7456_v10 = vsub.s32 7, %v7185_v26 }
 0x53d   : > { %v1521_v12 = vsel %vm316_vm2, %v1515_v52, 0.0  ;;  %v1514_v13 = vadd.f32 %v1510_v53, %v7382_v60  ;;  %v1513_v24 = vmul.f32 %v1509_v56, %v1477_v36  ;;  %v1508_v16 = vmul.f32 0.5, %v1504_v11 }
 0x53e   : > { %1522 = vadd.xlane.f32.xlu1 %v1521_v12  ;;  %v1581_v11 = vrot.slane %v6970_v55, %v7456_v10 }
 0x53f   : > { %v1518_v17 = vsel %vm316_vm2, %v1514_v13, 0.0  ;;  %v1517_v18 = vadd.f32 %v1513_v24, %v7386_v62  ;;  %v1512_v19 = vmul.f32 %v1508_v16, %v1476_v41 }
 0x540   : > { %1519 = vadd.xlane.f32.xlu0 %v1518_v17 }
 0x541   : > { %v1527_v20 = vsel %vm981_vm4, %v1517_v18, 0.0  ;;  %v1516_v58 = vadd.f32 %v1512_v19, %v7397_v1 }
 0x542   : > { %1528 = vadd.xlane.f32.xlu1 %v1527_v20 }
 0x543   : > { %v1524_v21 = vsel %vm316_vm2, %v1516_v58, 0.0 }
 0x544   : > { %1525 = vadd.xlane.f32.xlu0 %v1524_v21 }
 0x5c7   : > { %v1523_v22 = vpop.xlane.xlu1 %1522 }
 0x5c8   : > { %v1531_v23 = vmul.f32 0.03125, %v1523_v22  ;;  %v169_v22 = vld [vmem:[%s8410_s1 + $0x8] sm:$0xff] }
 0x5c9   : > { %v1520_v60 = vpop.xlane.xlu0 %1519 }
 0x5ca   : > { %v1535_v25 = vsub.f32 %v1515_v52, %v1531_v23  ;;  %v1530_v30 = vmul.f32 0.03125, %v1520_v60  ;;  %v1593_v60 = vrot.slane %v169_v22, %v7188_v27 }
 0x5cb   : > { %v1529_v31 = vpop.xlane.xlu1 %1528 }
 0x5cc   : > { %v1534_v32 = vsub.f32 %v1514_v13, %v1530_v30  ;;  %v1533_v33 = vmul.f32 0.03125, %v1529_v31  ;;  %v1539_v34 = vmul.f32 %v1535_v25, %v1535_v25 }
 0x5cd   : > { %v1526_v62 = vpop.xlane.xlu0 %1525 }
 0x5ce   : > { %v1537_v35 = vsub.f32 %v1517_v18, %v1533_v33  ;;  %v1532_v36 = vmul.f32 0.03125, %v1526_v62  ;;  %v1545_v37 = vsel %vm316_vm2, %v1539_v34, 0.0  ;;  %v1538_v28 = vmul.f32 %v1534_v32, %v1534_v32 }
 0x5cf   : > { %1546 = vadd.xlane.f32.xlu1 %v1545_v37 }
 0x5d0   : > { %v1536_v1 = vsub.f32 %v1516_v58, %v1532_v36  ;;  %v1542_v39 = vsel %vm316_vm2, %v1538_v28, 0.0  ;;  %v1541_v40 = vmul.f32 %v1537_v35, %v1537_v35 }
 0x5d1   : > { %1543 = vadd.xlane.f32.xlu0 %v1542_v39 }
 0x5d2   : > { %v1551_v41 = vsel %vm981_vm4, %v1541_v40, 0.0  ;;  %v1540_v42 = vmul.f32 %v1536_v1, %v1536_v1 }
 0x5d3   : > { %1552 = vadd.xlane.f32.xlu1 %v1551_v41 }
 0x5d4   : > { %v1548_v43 = vsel %vm316_vm2, %v1540_v42, 0.0 }
 0x5d5   : > { %1549 = vadd.xlane.f32.xlu0 %v1548_v43 }
 0x658   : > { %v1547_v57 = vpop.xlane.xlu1 %1546 }
 0x659   : > { %v1555_v59 = vmul.f32 0.03125, %v1547_v57 }
 0x65a   : > { %v1544_v61 = vpop.xlane.xlu0 %1543 }
 0x65b   : > { %v1559_v63 = vadd.f32 1e-05, %v1555_v59  ;;  %v1554_v0 = vmul.f32 0.03125, %v1544_v61 }
 0x65c   : > { %v1553_v2 = vpop.xlane.xlu1 %1552 }
 0x65d   : > { %6784 = vrsqrt.f32 %v1559_v63  ;;  %v1558_v3 = vadd.f32 1e-05, %v1554_v0  ;;  %v1557_v4 = vmul.f32 0.03125, %v1553_v2 }
 0x65e   : > { %v1550_v5 = vpop.xlane.xlu0 %1549 }
 0x65f   : > { %6786 = vrsqrt.f32 %v1558_v3  ;;  %v1561_v6 = vadd.f32 1e-05, %v1557_v4  ;;  %v1556_v7 = vmul.f32 0.03125, %v1550_v5 }
 0x661   : > { %6788 = vrsqrt.f32 %v1561_v6  ;;  %v1560_v8 = vadd.f32 1e-05, %v1556_v7 }
 0x663   : > { %6790 = vrsqrt.f32 %v1560_v8 }
 0x66a   : > { %v6785_v9 = vpop.eup %6784 }
 0x66b   : > { %v1567_v50 = vmul.f32 %v6785_v9, %v1535_v25 }
 0x66c   : > { %v6787_v52 = vpop.eup %6786 }
 0x66d   : > { %v1566_v53 = vmul.f32 %v6787_v52, %v1534_v32  ;;  %v1575_v12 = vmul.f32 %v1573_v49, %v1567_v50 }
 0x66e   : > { %v6789_v56 = vpop.eup %6788 }
 0x66f   : > { %v1574_v13 = vmul.f32 %v1573_v49, %v1566_v53  ;;  %v1569_v24 = vmul.f32 %v6789_v56, %v1537_v35  ;;  %v7461_v19 = vadd.f32 %v1581_v11, %v1575_v12 }
 0x670   : > { %v6791_v16 = vpop.eup %6790 }
 0x671   : > { %v7459_v17 = vadd.f32 %v1581_v11, %v1574_v13  ;;  %v1568_v18 = vmul.f32 %v6791_v16, %v1536_v1  ;;  %v1577_v20 = vmul.f32 %v1573_v49, %v1569_v24 }
 0x673   : > { %6269 = vmatprep.mubr.msk.f32.mxu0 %vm316_vm2, %v7459_v17  ;;  %v1576_v26 = vmul.f32 %v1573_v49, %v1568_v18  ;;  %v7469_v21 = vadd.f32 %v1581_v11, %v1577_v20 }
 0x674   : > { %6270 = vmatmul.mubr.msk.f32.vlgmr.msra.gmra.mxu0 %vm316_vm2, %v7461_v19 }
 0x675   : > { %v7467_v58 = vadd.f32 %v1581_v11, %v1576_v26 }
 0x677   : > { %6272 = vmatprep.mubr.msk.f32.mxu0 %vm316_vm2, %v7467_v58 }
 0x678   : > { %6273 = vmatmul.mubr.msk.f32.gmra.mxu0 %vm316_vm2, %v7469_v21 }
 0x734   : > { %v6271_v23 = vpop.f32.mrf.mxu0 }
 0x735   : > { %v7491_v62 = vadd.f32 %v6271_v23, %v1593_v60 }
 0x736   : > { %v1672_v25 = vpop.f32.mrf.mxu0 }
 0x737   : > { %v7479_v30 = vadd.f32 %v1672_v25, %v1593_v60 }
 0x738   : > { %v6274_v31 = vpop.f32.mrf.mxu0 }
 0x739   : > { %v7481_v32 = vadd.f32 %v6274_v31, %v1593_v60  ;;  %6283 = vmatprep.mubr.msk.f32.mxu1 %vm1703_vm5, %v7479_v30 }
 0x73a   : > { %v1682_v33 = vpop.f32.mrf.mxu0 }
 0x73b   : > { %v7485_v34 = vadd.f32 %v1682_v33, %v1593_v60  ;;  %1701 = vrot.lane.b32.xlu0 %v7481_v32, %s7036_s17 }
 0x73d   : > { %1699 = vrot.lane.b32.xlu1 %v7485_v34, %s7036_s17 }
 0x741   : > { %1697 = vrot.lane.b32.xlu1 %v7491_v62, %s7036_s17 }
 0x745   : > { %1695 = vrot.lane.b32.xlu1 %v7479_v30, %s7036_s17 }
 0x7ad   : > { %v1702_v35 = vpop.permute.xlu0 %1701 }
 0x7ae   : > { %6275 = vmatprep.subr.msk.mxu1 %vm1703_vm5, %v1702_v35 }
 0x7af   : > { %6276 = vmatpush3.xpose.msk.msra.mxu1 %vm1703_vm5, %v1702_v35  ;;  %v1700_v36 = vpop.permute.xlu1 %1699 }
 0x7b0   : > { %6277 = vmatprep.subr.msk.mxu1 %vm1703_vm5, %v1700_v36 }
 0x7b3   : > { %6278 = vmatpush3.xpose.msk.msra.mxu1 %vm1703_vm5, %v1700_v36  ;;  %v1698_v37 = vpop.permute.xlu1 %1697 }
 0x7b4   : > { %6279 = vmatprep.subr.msk.mxu1 %vm1703_vm5, %v1698_v37 }
 0x7b7   : > { %6280 = vmatpush3.xpose.msk.msra.mxu1 %vm1703_vm5, %v1698_v37  ;;  %v1696_v28 = vpop.permute.xlu1 %1695 }
 0x7b8   : > { %6281 = vmatprep.subr.msk.mxu1 %vm1703_vm5, %v1696_v28 }
 0x7bb   : > { %6282 = vmatpush3.xpose.msk.msra.mxu1 %vm1703_vm5, %v1696_v28 }
 0x7be   : > { %6284 = vmatmul.mubr.msk.f32.vlgmr.msra.gmra.mxu1 %vm1703_vm5, %v7491_v62 }
 0x7bf   : > { %6286 = vmatprep.mubr.msk.f32.mxu1 %vm1703_vm5, %v7485_v34 }
 0x7c2   : > { %6287 = vmatmul.mubr.msk.f32.gmra.mxu1 %vm1703_vm5, %v7481_v32 }
 0x87e   : > { %v6285_v1 = vpop.f32.mrf.mxu1 }
 0x87f   : > { %v1806_v39 = vmul.f32 0.35355338, %v6285_v1 }
 0x880   : > { %v1786_v40 = vpop.f32.mrf.mxu1 }
 0x881   : > { %v1805_v41 = vmul.f32 0.35355338, %v1786_v40  ;;  %v1813_v42 = vsel %vm1809_vm6, %v1806_v39, -inf }
 0x882   : > { %1814 = vmax.xlane.f32.xlu1 %v1813_v42  ;;  %v6288_v43 = vpop.f32.mrf.mxu1 }
 0x883   : > { %v1808_v44 = vmul.f32 0.35355338, %v6288_v43  ;;  %v1810_v45 = vsel %vm1809_vm6, %v1805_v41, -inf }
 0x884   : > { %1811 = vmax.xlane.f32.xlu0 %v1810_v45  ;;  %v1796_v46 = vpop.f32.mrf.mxu1 }
 0x885   : > { %v1807_v48 = vmul.f32 0.35355338, %v1796_v46  ;;  %v1820_v57 = vsel %vm1819_vm7, %v1808_v44, -inf }
 0x887   : > { %v1816_v59 = vsel %vm1809_vm6, %v1807_v48, -inf }
 0x888   : > { %1821 = vmax.xlane.f32.xlu0 %v1820_v57 }
 0x88c   : > { %1817 = vmax.xlane.f32.xlu0 %v1816_v59 }
 0x893   : > { %1859 = vrot.lane.b32.xlu1 %v7485_v34, %s7037_s19 }
 0x897   : > { %1857 = vrot.lane.b32.xlu1 %v7491_v62, %s7037_s19 }
 0x89b   : > { %1855 = vrot.lane.b32.xlu1 %v7479_v30, %s7037_s19 }
 0x8a2   : > { %1861 = vrot.lane.b32.xlu0 %v7481_v32, %s7037_s19 }
 0x90b   : > { %v1815_v61 = vpop.xlane.xlu1 %1814 }
 0x90c   : > { %v1824_v63 = vsub.f32 %v1806_v39, %v1815_v61 }
 0x90d   : > { %v1812_v0 = vpop.xlane.xlu0 %1811 }
 0x90e   : > { %v1829_v2 = vmul.f32 1.442695, %v1824_v63  ;;  %v1823_v3 = vsub.f32 %v1805_v41, %v1812_v0 }
 0x90f   : > { %v1860_v6 = vpop.permute.xlu1 %1859 }
 0x910   : > { %6792 = vpow2.f32 %v1829_v2  ;;  %v1827_v4 = vmul.f32 1.442695, %v1823_v3 }
 0x911   : > { %v1822_v5 = vpop.xlane.xlu0 %1821 }
 0x912   : > { %6794 = vpow2.f32 %v1827_v4  ;;  %v1826_v56 = vsub.f32 %v1808_v44, %v1822_v5 }
 0x913   : > { %v1858_v8 = vpop.permute.xlu1 %1857 }
 0x914   : > { %v1833_v12 = vmul.f32 1.442695, %v1826_v56 }
 0x915   : > { %v1818_v7 = vpop.xlane.xlu0 %1817 }
 0x916   : > { %v1825_v11 = vsub.f32 %v1807_v48, %v1818_v7  ;;  %6796 = vpow2.f32 %v1833_v12 }
 0x917   : > { %v1856_v52 = vpop.permute.xlu1 %1855 }
 0x918   : > { %v1831_v13 = vmul.f32 1.442695, %v1825_v11 }
 0x919   : > { %v1862_v9 = vpop.permute.xlu0 %1861 }
 0x91a   : > { %6289 = vmatprep.subr.msk.mxu0 %vm1878_vm8, %v1862_v9  ;;  %6798 = vpow2.f32 %v1831_v13 }
 0x91b   : > { %6290 = vmatpush3.msk.msra.mxu0 %vm1878_vm8, %v1862_v9 }
 0x91c   : > { %6291 = vmatprep.subr.mxu0 %v1860_v6 }
 0x91d   : > { %v6793_v55 = vpop.eup %6792  ;;  %6292 = vmatpush3.msra.mxu0 %v1860_v6 }
 0x91e   : > { %6293 = vmatprep.subr.mxu0 %v1858_v8  ;;  %v1838_v49 = vsel %vm1809_vm6, %v6793_v55, 0.0 }
 0x91f   : > { %v6795_v50 = vpop.eup %6794  ;;  %1839 = vadd.xlane.f32.xlu1 %v1838_v49  ;;  %6294 = vmatpush3.msra.mxu0 %v1858_v8 }
 0x920   : > { %6295 = vmatprep.subr.mxu0 %v1856_v52  ;;  %v1835_v53 = vsel %vm1809_vm6, %v6795_v50, 0.0 }
 0x921   : > { %1836 = vadd.xlane.f32.xlu0 %v1835_v53  ;;  %6296 = vmatpush3.msra.mxu0 %v1856_v52 }
 0x923   : > { %v6797_v24 = vpop.eup %6796 }
 0x924   : > { %v1844_v18 = vsel %vm1819_vm7, %v6797_v24, 0.0 }
 0x927   : > { %v6799_v16 = vpop.eup %6798 }
 0x928   : > { %v1841_v20 = vsel %vm1809_vm6, %v6799_v16, 0.0 }
 0x930   : > { %1978 = vrot.lane.b32.xlu1 %v7485_v34, %s7038_s20 }
 0x937   : > { %1980 = vrot.lane.b32.xlu0 %v7481_v32, %s7038_s20 }
 0x954   : > { %1845 = vadd.xlane.f32.xlu1 %v1844_v18 }
 0x956   : > { %1842 = vadd.xlane.f32.xlu0 %v1841_v20 }
 0x965   : > { %1974 = vrot.lane.b32.xlu1 %v7479_v30, %s7038_s20 }
 0x969   : > { %1968 = vrot.lane.b32.xlu1 %v7491_v62, %s7039_s24 }
 0x96c   : > { %1976 = vrot.lane.b32.xlu0 %v7491_v62, %s7038_s20 }
 0x96d   : > { %1972 = vrot.lane.b32.xlu1 %v7481_v32, %s7039_s24 }
 0x970   : > { %1966 = vrot.lane.b32.xlu0 %v7479_v30, %s7039_s24 }
 0x974   : > { %1970 = vrot.lane.b32.xlu0 %v7485_v34, %s7039_s24 }
 0x9a8   : > { %v1840_v26 = vpop.xlane.xlu1 %1839 }
 0x9a9   : > { %6800 = vrcp.f32 %v1840_v26 }
 0x9aa   : > { %v1837_v22 = vpop.xlane.xlu0 %1836 }
 0x9ab   : > { %6802 = vrcp.f32 %v1837_v22 }
 0x9ac   : > { %v1979_v35 = vpop.permute.xlu1 %1978 }
 0x9ae   : > { %v1981_v23 = vpop.permute.xlu0 %1980 }
 0x9af   : > { %6303 = vmatprep.subr.msk.mxu0 %vm1703_vm5, %v1981_v23 }
 0x9b6   : > { %v6801_v60 = vpop.eup %6800 }
 0x9b7   : > { %v1852_v33 = vmul.f32 %v6801_v60, %v6793_v55 }
 0x9b8   : > { %v6803_v25 = vpop.eup %6802 }
 0x9b9   : > { %v1851_v31 = vmul.f32 %v6803_v25, %v6795_v50 }
 0x9bb   : > { %6297 = vmatprep.mubr.msk.f32.mxu0 %vm1809_vm6, %v1851_v31 }
 0x9bc   : > { %6298 = vmatmul.mubr.msk.f32.vlgmr.msra.gmra.mxu0 %vm1809_vm6, %v1852_v33 }
 0x9bd   : > { %6304 = vmatpush3.xpose.msk.msra.mxu0 %vm1703_vm5, %v1981_v23 }
 0x9be   : > { %6305 = vmatprep.subr.msk.mxu0 %vm1703_vm5, %v1979_v35 }
 0x9c1   : > { %6306 = vmatpush3.xpose.msk.msra.mxu0 %vm1703_vm5, %v1979_v35 }
 0x9dd   : > { %v1846_v36 = vpop.xlane.xlu1 %1845 }
 0x9de   : > { %6804 = vrcp.f32 %v1846_v36 }
 0x9df   : > { %v1843_v37 = vpop.xlane.xlu0 %1842 }
 0x9e0   : > { %6806 = vrcp.f32 %v1843_v37 }
 0x9e1   : > { %v1975_v1 = vpop.permute.xlu1 %1974 }
 0x9e3   : > { %v1977_v28 = vpop.permute.xlu0 %1976 }
 0x9e4   : > { %6307 = vmatprep.subr.msk.mxu0 %vm1703_vm5, %v1977_v28 }
 0x9e5   : > { %6308 = vmatpush3.xpose.msk.msra.mxu0 %vm1703_vm5, %v1977_v28  ;;  %v1969_v44 = vpop.permute.xlu1 %1968 }
 0x9e6   : > { %6309 = vmatprep.subr.msk.mxu0 %vm1703_vm5, %v1975_v1 }
 0x9e7   : > { %v1967_v42 = vpop.permute.xlu0 %1966 }
 0x9e9   : > { %6310 = vmatpush3.xpose.msk.msra.mxu0 %vm1703_vm5, %v1975_v1  ;;  %v1973_v46 = vpop.permute.xlu1 %1972 }
 0x9eb   : > { %v6805_v39 = vpop.eup %6804  ;;  %v1971_v45 = vpop.permute.xlu0 %1970 }
 0x9ec   : > { %v1854_v43 = vmul.f32 %v6805_v39, %v6797_v24 }
 0x9ed   : > { %v6807_v40 = vpop.eup %6806 }
 0x9ee   : > { %v1853_v41 = vmul.f32 %v6807_v40, %v6799_v16 }
 0x9f0   : > { %6300 = vmatprep.mubr.msk.f32.mxu0 %vm1809_vm6, %v1853_v41 }
 0x9f1   : > { %6301 = vmatmul.mubr.msk.f32.gmra.mxu0 %vm1809_vm6, %v1854_v43 }
 0x9f2   : > { %6311 = vmatprep.mubr.msk.f32.mxu0 %vm1703_vm5, %v1967_v42 }
 0x9f5   : > { %6312 = vmatmul.mubr.msk.f32.vlgmr.msra.gmra.mxu0 %vm1703_vm5, %v1969_v44 }
 0x9f6   : > { %6314 = vmatprep.mubr.msk.f32.mxu0 %vm1703_vm5, %v1971_v45 }
 0x9f9   : > { %6315 = vmatmul.mubr.msk.f32.gmra.mxu0 %vm1703_vm5, %v1973_v46 }
 0xa7c   : > { %v7561_v48 = vpop.f32.mrf.mxu0 }
 0xa7e   : > { %v7563_v57 = vpop.f32.mrf.mxu0 }
 0xab1   : > { %v7565_v59 = vpop.f32.mrf.mxu0 }
 0xab3   : > { %v7567_v61 = vpop.f32.mrf.mxu0 }
 0xab5   : > { %v6313_v63 = vpop.f32.mrf.mxu0 }
 0xab6   : > { %v2084_v0 = vmul.f32 0.35355338, %v6313_v63 }
 0xab7   : > { %v2064_v2 = vpop.f32.mrf.mxu0 }
 0xab8   : > { %v2083_v3 = vmul.f32 0.35355338, %v2064_v2  ;;  %v2090_v4 = vsel %vm1809_vm6, %v2084_v0, -inf }
 0xab9   : > { %2091 = vmax.xlane.f32.xlu1 %v2090_v4  ;;  %v6316_v5 = vpop.f32.mrf.mxu0 }
 0xaba   : > { %v2086_v6 = vmul.f32 0.35355338, %v6316_v5  ;;  %v2087_v7 = vsel %vm1809_vm6, %v2083_v3, -inf }
 0xabb   : > { %2088 = vmax.xlane.f32.xlu0 %v2087_v7  ;;  %v2074_v8 = vpop.f32.mrf.mxu0 }
 0xabc   : > { %v2085_v9 = vmul.f32 0.35355338, %v2074_v8  ;;  %v2096_v55 = vsel %vm1819_vm7, %v2086_v6, -inf }
 0xabe   : > { %v2093_v49 = vsel %vm1809_vm6, %v2085_v9, -inf }
 0xabf   : > { %2097 = vmax.xlane.f32.xlu0 %v2096_v55 }
 0xac3   : > { %2094 = vmax.xlane.f32.xlu0 %v2093_v49 }
 0xaca   : > { %2135 = vrot.lane.b32.xlu1 %v7485_v34, %s7040_s25 }
 0xace   : > { %2133 = vrot.lane.b32.xlu1 %v7491_v62, %s7040_s25 }
 0xad2   : > { %2131 = vrot.lane.b32.xlu1 %v7479_v30, %s7040_s25 }
 0xad9   : > { %2137 = vrot.lane.b32.xlu0 %v7481_v32, %s7040_s25 }
 0xb42   : > { %v2092_v50 = vpop.xlane.xlu1 %2091 }
 0xb43   : > { %v2100_v52 = vsub.f32 %v2084_v0, %v2092_v50 }
 0xb44   : > { %v2089_v53 = vpop.xlane.xlu0 %2088 }
 0xb45   : > { %v2105_v56 = vmul.f32 1.442695, %v2100_v52  ;;  %v2099_v11 = vsub.f32 %v2083_v3, %v2089_v53 }
 0xb46   : > { %v2136_v24 = vpop.permute.xlu1 %2135 }
 0xb47   : > { %6808 = vpow2.f32 %v2105_v56  ;;  %v2103_v12 = vmul.f32 1.442695, %v2099_v11 }
 0xb48   : > { %v2098_v13 = vpop.xlane.xlu0 %2097 }
 0xb49   : > { %6810 = vpow2.f32 %v2103_v12  ;;  %v2102_v31 = vsub.f32 %v2086_v6, %v2098_v13 }
 0xb4a   : > { %v2134_v18 = vpop.permute.xlu1 %2133 }
 0xb4b   : > { %v2109_v35 = vmul.f32 1.442695, %v2102_v31 }
 0xb4c   : > { %v2095_v16 = vpop.xlane.xlu0 %2094 }
 0xb4d   : > { %v2101_v33 = vsub.f32 %v2085_v9, %v2095_v16  ;;  %6812 = vpow2.f32 %v2109_v35 }
 0xb4e   : > { %v2132_v60 = vpop.permute.xlu1 %2131 }
 0xb4f   : > { %v2107_v36 = vmul.f32 1.442695, %v2101_v33 }
 0xb50   : > { %v2138_v20 = vpop.permute.xlu0 %2137 }
 0xb51   : > { %6317 = vmatprep.subr.msk.mxu1 %vm1878_vm8, %v2138_v20  ;;  %6814 = vpow2.f32 %v2107_v36 }
 0xb52   : > { %6318 = vmatpush3.msk.msra.mxu1 %vm1878_vm8, %v2138_v20 }
 0xb53   : > { %6319 = vmatprep.subr.mxu1 %v2136_v24 }
 0xb54   : > { %v6809_v26 = vpop.eup %6808  ;;  %6320 = vmatpush3.msra.mxu1 %v2136_v24 }
 0xb55   : > { %6321 = vmatprep.subr.mxu1 %v2134_v18  ;;  %v2114_v22 = vsel %vm1809_vm6, %v6809_v26, 0.0 }
 0xb56   : > { %v6811_v23 = vpop.eup %6810  ;;  %2115 = vadd.xlane.f32.xlu1 %v2114_v22  ;;  %6322 = vmatpush3.msra.mxu1 %v2134_v18 }
 0xb57   : > { %6323 = vmatprep.subr.mxu1 %v2132_v60  ;;  %v2111_v25 = vsel %vm1809_vm6, %v6811_v23, 0.0 }
 0xb58   : > { %2112 = vadd.xlane.f32.xlu0 %v2111_v25  ;;  %6324 = vmatpush3.msra.mxu1 %v2132_v60 }
 0xb5a   : > { %v6813_v37 = vpop.eup %6812 }
 0xb5b   : > { %v2120_v1 = vsel %vm1819_vm7, %v6813_v37, 0.0 }
 0xb5e   : > { %v6815_v28 = vpop.eup %6814 }
 0xb5f   : > { %v2117_v39 = vsel %vm1809_vm6, %v6815_v28, 0.0 }
 0xb67   : > { %2253 = vrot.lane.b32.xlu1 %v7485_v34, %s7041_s26 }
 0xb6e   : > { %2255 = vrot.lane.b32.xlu0 %v7481_v32, %s7041_s26 }
 0xb8b   : > { %2121 = vadd.xlane.f32.xlu1 %v2120_v1 }
 0xb8d   : > { %2118 = vadd.xlane.f32.xlu0 %v2117_v39 }
 0xb9c   : > { %2249 = vrot.lane.b32.xlu1 %v7479_v30, %s7041_s26 }
 0xba0   : > { %2243 = vrot.lane.b32.xlu1 %v7491_v62, %s7042_s27 }
 0xba3   : > { %2251 = vrot.lane.b32.xlu0 %v7491_v62, %s7041_s26 }
 0xba4   : > { %2247 = vrot.lane.b32.xlu1 %v7481_v32, %s7042_s27 }
 0xba7   : > { %2241 = vrot.lane.b32.xlu0 %v7479_v30, %s7042_s27 }
 0xbab   : > { %2245 = vrot.lane.b32.xlu0 %v7485_v34, %s7042_s27 }
 0xbdf   : > { %v2116_v40 = vpop.xlane.xlu1 %2115 }
 0xbe0   : > { %6816 = vrcp.f32 %v2116_v40 }
 0xbe1   : > { %v2113_v41 = vpop.xlane.xlu0 %2112 }
 0xbe2   : > { %6818 = vrcp.f32 %v2113_v41 }
 0xbe3   : > { %v2254_v63 = vpop.permute.xlu1 %2253 }
 0xbe5   : > { %v2256_v42 = vpop.permute.xlu0 %2255 }
 0xbe6   : > { %6331 = vmatprep.subr.msk.mxu1 %vm1703_vm5, %v2256_v42 }
 0xbed   : > { %v6817_v43 = vpop.eup %6816 }
 0xbee   : > { %v2128_v46 = vmul.f32 %v6817_v43, %v6809_v26 }
 0xbef   : > { %v6819_v44 = vpop.eup %6818 }
 0xbf0   : > { %v2127_v45 = vmul.f32 %v6819_v44, %v6811_v23 }
 0xbf2   : > { %6325 = vmatprep.mubr.msk.f32.mxu1 %vm1809_vm6, %v2127_v45 }
 0xbf3   : > { %6326 = vmatmul.mubr.msk.f32.vlgmr.msra.gmra.mxu1 %vm1809_vm6, %v2128_v46 }
 0xbf4   : > { %6332 = vmatpush3.xpose.msk.msra.mxu1 %vm1703_vm5, %v2256_v42 }
 0xbf5   : > { %6333 = vmatprep.subr.msk.mxu1 %vm1703_vm5, %v2254_v63 }
 0xbf8   : > { %6334 = vmatpush3.xpose.msk.msra.mxu1 %vm1703_vm5, %v2254_v63 }
 0xc14   : > { %v2122_v0 = vpop.xlane.xlu1 %2121 }
 0xc15   : > { %6820 = vrcp.f32 %v2122_v0 }
 0xc16   : > { %v2119_v2 = vpop.xlane.xlu0 %2118 }
 0xc17   : > { %6822 = vrcp.f32 %v2119_v2 }
 0xc18   : > { %v2250_v4 = vpop.permute.xlu1 %2249 }
 0xc1a   : > { %v2252_v3 = vpop.permute.xlu0 %2251 }
 0xc1b   : > { %6335 = vmatprep.subr.msk.mxu1 %vm1703_vm5, %v2252_v3 }
 0xc1c   : > { %6336 = vmatpush3.xpose.msk.msra.mxu1 %vm1703_vm5, %v2252_v3  ;;  %v2244_v55 = vpop.permute.xlu1 %2243 }
 0xc1d   : > { %6337 = vmatprep.subr.msk.mxu1 %vm1703_vm5, %v2250_v4 }
 0xc1e   : > { %v2242_v8 = vpop.permute.xlu0 %2241 }
 0xc20   : > { %6338 = vmatpush3.xpose.msk.msra.mxu1 %vm1703_vm5, %v2250_v4  ;;  %v2248_v50 = vpop.permute.xlu1 %2247 }
 0xc22   : > { %v6821_v5 = vpop.eup %6820  ;;  %v2246_v49 = vpop.permute.xlu0 %2245 }
 0xc23   : > { %v2130_v9 = vmul.f32 %v6821_v5, %v6813_v37 }
 0xc24   : > { %v6823_v6 = vpop.eup %6822 }
 0xc25   : > { %v2129_v7 = vmul.f32 %v6823_v6, %v6815_v28 }
 0xc27   : > { %6328 = vmatprep.mubr.msk.f32.mxu1 %vm1809_vm6, %v2129_v7 }
 0xc28   : > { %6329 = vmatmul.mubr.msk.f32.gmra.mxu1 %vm1809_vm6, %v2130_v9 }
 0xc29   : > { %6339 = vmatprep.mubr.msk.f32.mxu1 %vm1703_vm5, %v2242_v8 }
 0xc2c   : > { %6340 = vmatmul.mubr.msk.f32.vlgmr.msra.gmra.mxu1 %vm1703_vm5, %v2244_v55 }
 0xc2d   : > { %6342 = vmatprep.mubr.msk.f32.mxu1 %vm1703_vm5, %v2246_v49 }
 0xc30   : > { %6343 = vmatmul.mubr.msk.f32.gmra.mxu1 %vm1703_vm5, %v2248_v50 }
 0xcb3   : > { %v7619_v52 = vpop.f32.mrf.mxu1 }
 0xcb5   : > { %v7621_v53 = vpop.f32.mrf.mxu1 }
 0xce8   : > { %v7623_v56 = vpop.f32.mrf.mxu1 }
 0xcea   : > { %v7625_v11 = vpop.f32.mrf.mxu1 }
 0xcec   : > { %v6341_v12 = vpop.f32.mrf.mxu1 }
 0xced   : > { %v2359_v13 = vmul.f32 0.35355338, %v6341_v12 }
 0xcee   : > { %v2339_v24 = vpop.f32.mrf.mxu1 }
 0xcef   : > { %v2358_v16 = vmul.f32 0.35355338, %v2339_v24  ;;  %v2365_v18 = vsel %vm1809_vm6, %v2359_v13, -inf }
 0xcf0   : > { %2366 = vmax.xlane.f32.xlu1 %v2365_v18  ;;  %v6344_v20 = vpop.f32.mrf.mxu1 }
 0xcf1   : > { %v2361_v26 = vmul.f32 0.35355338, %v6344_v20  ;;  %v2362_v22 = vsel %vm1809_vm6, %v2358_v16, -inf }
 0xcf2   : > { %2363 = vmax.xlane.f32.xlu0 %v2362_v22  ;;  %v2349_v23 = vpop.f32.mrf.mxu1 }
 0xcf3   : > { %v2360_v60 = vmul.f32 0.35355338, %v2349_v23  ;;  %v2371_v25 = vsel %vm1819_vm7, %v2361_v26, -inf }
 0xcf5   : > { %v2368_v31 = vsel %vm1809_vm6, %v2360_v60, -inf }
 0xcf6   : > { %2372 = vmax.xlane.f32.xlu0 %v2371_v25 }
 0xcfa   : > { %2369 = vmax.xlane.f32.xlu0 %v2368_v31 }
 0xd01   : > { %2410 = vrot.lane.b32.xlu1 %v7485_v34, %s7043_s28 }
 0xd05   : > { %2408 = vrot.lane.b32.xlu1 %v7491_v62, %s7043_s28 }
 0xd09   : > { %2406 = vrot.lane.b32.xlu1 %v7479_v30, %s7043_s28 }
 0xd10   : > { %2412 = vrot.lane.b32.xlu0 %v7481_v32, %s7043_s28 }
 0xd79   : > { %v2367_v33 = vpop.xlane.xlu1 %2366 }
 0xd7a   : > { %v2375_v35 = vsub.f32 %v2359_v13, %v2367_v33 }
 0xd7b   : > { %v2364_v36 = vpop.xlane.xlu0 %2363 }
 0xd7c   : > { %v2380_v37 = vmul.f32 1.442695, %v2375_v35  ;;  %v2374_v28 = vsub.f32 %v2358_v16, %v2364_v36 }
 0xd7d   : > { %v2411_v40 = vpop.permute.xlu1 %2410 }
 0xd7e   : > { %6824 = vpow2.f32 %v2380_v37  ;;  %v2378_v1 = vmul.f32 1.442695, %v2374_v28 }
 0xd7f   : > { %v2373_v39 = vpop.xlane.xlu0 %2372 }
 0xd80   : > { %6826 = vpow2.f32 %v2378_v1  ;;  %v2377_v2 = vsub.f32 %v2361_v26, %v2373_v39 }
 0xd81   : > { %v2409_v42 = vpop.permute.xlu1 %2408 }
 0xd82   : > { %v2384_v4 = vmul.f32 1.442695, %v2377_v2 }
 0xd83   : > { %v2370_v41 = vpop.xlane.xlu0 %2369 }
 0xd84   : > { %v2376_v3 = vsub.f32 %v2360_v60, %v2370_v41  ;;  %6828 = vpow2.f32 %v2384_v4 }
 0xd85   : > { %v2407_v63 = vpop.permute.xlu1 %2406 }
 0xd86   : > { %v2382_v5 = vmul.f32 1.442695, %v2376_v3 }
 0xd87   : > { %v2413_v43 = vpop.permute.xlu0 %2412 }
 0xd88   : > { %6345 = vmatprep.subr.msk.mxu0 %vm1878_vm8, %v2413_v43  ;;  %6830 = vpow2.f32 %v2382_v5 }
 0xd89   : > { %6346 = vmatpush3.msk.msra.mxu0 %vm1878_vm8, %v2413_v43 }
 0xd8a   : > { %6347 = vmatprep.subr.mxu0 %v2411_v40 }
 0xd8b   : > { %v6825_v44 = vpop.eup %6824  ;;  %6348 = vmatpush3.msra.mxu0 %v2411_v40 }
 0xd8c   : > { %6349 = vmatprep.subr.mxu0 %v2409_v42  ;;  %v2389_v45 = vsel %vm1809_vm6, %v6825_v44, 0.0 }
 0xd8d   : > { %v6827_v46 = vpop.eup %6826  ;;  %2390 = vadd.xlane.f32.xlu1 %v2389_v45  ;;  %6350 = vmatpush3.msra.mxu0 %v2409_v42 }
 0xd8e   : > { %6351 = vmatprep.subr.mxu0 %v2407_v63  ;;  %v2386_v0 = vsel %vm1809_vm6, %v6827_v46, 0.0 }
 0xd8f   : > { %2387 = vadd.xlane.f32.xlu0 %v2386_v0  ;;  %6352 = vmatpush3.msra.mxu0 %v2407_v63 }
 0xd91   : > { %v6829_v6 = vpop.eup %6828 }
 0xd92   : > { %v2395_v8 = vsel %vm1819_vm7, %v6829_v6, 0.0 }
 0xd95   : > { %v6831_v7 = vpop.eup %6830 }
 0xd96   : > { %v2392_v9 = vsel %vm1809_vm6, %v6831_v7, 0.0 }
 0xd9e   : > { %2528 = vrot.lane.b32.xlu1 %v7485_v34, %s7044_s29 }
 0xda5   : > { %2530 = vrot.lane.b32.xlu0 %v7481_v32, %s7044_s29 }
 0xdc2   : > { %2396 = vadd.xlane.f32.xlu1 %v2395_v8 }
 0xdc4   : > { %2393 = vadd.xlane.f32.xlu0 %v2392_v9 }
 0xdd3   : > { %2524 = vrot.lane.b32.xlu1 %v7479_v30, %s7044_s29 }
 0xdd7   : > { %2518 = vrot.lane.b32.xlu1 %v7491_v62, %s7045_s30 }
 0xdda   : > { %2526 = vrot.lane.b32.xlu0 %v7491_v62, %s7044_s29 }
 0xddb   : > { %2522 = vrot.lane.b32.xlu1 %v7481_v32, %s7045_s30 }
 0xdde   : > { %2516 = vrot.lane.b32.xlu0 %v7479_v30, %s7045_s30 }
 0xde2   : > { %2520 = vrot.lane.b32.xlu0 %v7485_v34, %s7045_s30 }
 0xe16   : > { %v2391_v55 = vpop.xlane.xlu1 %2390 }
 0xe17   : > { %6832 = vrcp.f32 %v2391_v55 }
 0xe18   : > { %v2388_v49 = vpop.xlane.xlu0 %2387 }
 0xe19   : > { %6834 = vrcp.f32 %v2388_v49 }
 0xe1a   : > { %v2529_v18 = vpop.permute.xlu1 %2528 }
 0xe1c   : > { %v2531_v50 = vpop.permute.xlu0 %2530 }
 0xe1d   : > { %6359 = vmatprep.subr.msk.mxu0 %vm1703_vm5, %v2531_v50 }
 0xe24   : > { %v6833_v12 = vpop.eup %6832 }
 0xe25   : > { %v2403_v16 = vmul.f32 %v6833_v12, %v6825_v44 }
 0xe26   : > { %v6835_v13 = vpop.eup %6834 }
 0xe27   : > { %v2402_v24 = vmul.f32 %v6835_v13, %v6827_v46 }
 0xe29   : > { %6353 = vmatprep.mubr.msk.f32.mxu0 %vm1809_vm6, %v2402_v24 }
 0xe2a   : > { %6354 = vmatmul.mubr.msk.f32.vlgmr.msra.gmra.mxu0 %vm1809_vm6, %v2403_v16 }
 0xe2b   : > { %6360 = vmatpush3.xpose.msk.msra.mxu0 %vm1703_vm5, %v2531_v50 }
 0xe2c   : > { %6361 = vmatprep.subr.msk.mxu0 %vm1703_vm5, %v2529_v18 }
 0xe2f   : > { %6362 = vmatpush3.xpose.msk.msra.mxu0 %vm1703_vm5, %v2529_v18 }
 0xe4b   : > { %v2397_v20 = vpop.xlane.xlu1 %2396 }
 0xe4c   : > { %6836 = vrcp.f32 %v2397_v20 }
 0xe4d   : > { %v2394_v26 = vpop.xlane.xlu0 %2393 }
 0xe4e   : > { %6838 = vrcp.f32 %v2394_v26 }
 0xe4f   : > { %v2525_v23 = vpop.permute.xlu1 %2524 }
 0xe51   : > { %v2527_v22 = vpop.permute.xlu0 %2526 }
 0xe52   : > { %6363 = vmatprep.subr.msk.mxu0 %vm1703_vm5, %v2527_v22 }
 0xe53   : > { %6364 = vmatpush3.xpose.msk.msra.mxu0 %vm1703_vm5, %v2527_v22  ;;  %v2519_v36 = vpop.permute.xlu1 %2518 }
 0xe54   : > { %6365 = vmatprep.subr.msk.mxu0 %vm1703_vm5, %v2525_v23 }
 0xe55   : > { %v2517_v33 = vpop.permute.xlu0 %2516 }
 0xe57   : > { %6366 = vmatpush3.xpose.msk.msra.mxu0 %vm1703_vm5, %v2525_v23  ;;  %v2523_v28 = vpop.permute.xlu1 %2522 }
 0xe59   : > { %v6837_v60 = vpop.eup %6836  ;;  %v2521_v37 = vpop.permute.xlu0 %2520 }
 0xe5a   : > { %v2405_v35 = vmul.f32 %v6837_v60, %v6829_v6 }
 0xe5b   : > { %v6839_v25 = vpop.eup %6838 }
 0xe5c   : > { %v2404_v31 = vmul.f32 %v6839_v25, %v6831_v7 }
 0xe5e   : > { %6356 = vmatprep.mubr.msk.f32.mxu0 %vm1809_vm6, %v2404_v31 }
 0xe5f   : > { %6357 = vmatmul.mubr.msk.f32.gmra.mxu0 %vm1809_vm6, %v2405_v35 }
 0xe60   : > { %6367 = vmatprep.mubr.msk.f32.mxu0 %vm1703_vm5, %v2517_v33 }
 0xe63   : > { %6368 = vmatmul.mubr.msk.f32.vlgmr.msra.gmra.mxu0 %vm1703_vm5, %v2519_v36 }
 0xe64   : > { %6370 = vmatprep.mubr.msk.f32.mxu0 %vm1703_vm5, %v2521_v37 }
 0xe67   : > { %6371 = vmatmul.mubr.msk.f32.gmra.mxu0 %vm1703_vm5, %v2523_v28 }
 0xeea   : > { %v6355_v1 = vpop.f32.mrf.mxu0 }
 0xeec   : > { %v2497_v39 = vpop.f32.mrf.mxu0 }
 0xf1f   : > { %v6358_v40 = vpop.f32.mrf.mxu0 }
 0xf21   : > { %v2507_v41 = vpop.f32.mrf.mxu0 }
 0xf23   : > { %v6369_v42 = vpop.f32.mrf.mxu0 }
 0xf24   : > { %v2634_v43 = vmul.f32 0.35355338, %v6369_v42 }
 0xf25   : > { %v2614_v44 = vpop.f32.mrf.mxu0 }
 0xf26   : > { %v2633_v45 = vmul.f32 0.35355338, %v2614_v44  ;;  %v2640_v46 = vsel %vm1809_vm6, %v2634_v43, -inf  ;;  %v2855_v44 = vld [vmem:[%s8411_s2 + $0x140] sm:$0xff] }
 0xf27   : > { %2641 = vmax.xlane.f32.xlu1 %v2640_v46  ;;  %v6372_v63 = vpop.f32.mrf.mxu0  ;;  %v2853_v46 = vld [vmem:[%s8411_s2 + $0x130] sm:$0xff] }
 0xf28   : > { %v2637_v0 = vsel %vm1809_vm6, %v2633_v45, -inf  ;;  %v2636_v4 = vmul.f32 0.35355338, %v6372_v63 }
 0xf29   : > { %2638 = vmax.xlane.f32.xlu0 %v2637_v0  ;;  %v2624_v2 = vpop.f32.mrf.mxu0 }
 0xf2a   : > { %v2635_v3 = vmul.f32 0.35355338, %v2624_v2  ;;  %v2646_v6 = vsel %vm1819_vm7, %v2636_v4, -inf }
 0xf2c   : > { %v2643_v5 = vsel %vm1809_vm6, %v2635_v3, -inf }
 0xf2d   : > { %2644 = vmax.xlane.f32.xlu0 %v2643_v5 }
 0xf31   : > { %2647 = vmax.xlane.f32.xlu0 %v2646_v6 }
 0xfb0   : > { %v2642_v7 = vpop.xlane.xlu1 %2641 }
 0xfb1   : > { %v2650_v8 = vsub.f32 %v2634_v43, %v2642_v7  ;;  %v2856_v43 = vld [vmem:[%s8411_s2 + $0x148] sm:$0xff] }
 0xfb2   : > { %v2639_v9 = vpop.xlane.xlu0 %2638 }
 0xfb3   : > { %v2655_v55 = vmul.f32 1.442695, %v2650_v8  ;;  %v2649_v49 = vsub.f32 %v2633_v45, %v2639_v9  ;;  %v2854_v45 = vld [vmem:[%s8411_s2 + $0x138] sm:$0xff] }
 0xfb5   : > { %6840 = vpow2.f32 %v2655_v55  ;;  %v2653_v50 = vmul.f32 1.442695, %v2649_v49 }
 0xfb6   : > { %v2645_v12 = vpop.xlane.xlu0 %2644 }
 0xfb7   : > { %6842 = vpow2.f32 %v2653_v50  ;;  %v2651_v13 = vsub.f32 %v2635_v3, %v2645_v12 }
 0xfb9   : > { %v2657_v24 = vmul.f32 1.442695, %v2651_v13 }
 0xfba   : > { %v2648_v16 = vpop.xlane.xlu0 %2647 }
 0xfbb   : > { %6844 = vpow2.f32 %v2657_v24  ;;  %v2652_v18 = vsub.f32 %v2636_v4, %v2648_v16 }
 0xfbd   : > { %v2659_v20 = vmul.f32 1.442695, %v2652_v18 }
 0xfbf   : > { %6846 = vpow2.f32 %v2659_v20 }
 0xfc2   : > { %v6841_v26 = vpop.eup %6840 }
 0xfc3   : > { %v2664_v22 = vsel %vm1809_vm6, %v6841_v26, 0.0 }
 0xfc4   : > { %v6843_v23 = vpop.eup %6842  ;;  %2665 = vadd.xlane.f32.xlu1 %v2664_v22 }
 0xfc5   : > { %v2661_v60 = vsel %vm1809_vm6, %v6843_v23, 0.0 }
 0xfc6   : > { %2662 = vadd.xlane.f32.xlu0 %v2661_v60 }
 0xfc8   : > { %v6845_v25 = vpop.eup %6844 }
 0xfc9   : > { %v2667_v31 = vsel %vm1809_vm6, %v6845_v25, 0.0 }
 0xfca   : > { %2668 = vadd.xlane.f32.xlu0 %v2667_v31 }
 0xfcc   : > { %v6847_v33 = vpop.eup %6846 }
 0xfcd   : > { %v2670_v35 = vsel %vm1819_vm7, %v6847_v33, 0.0 }
 0xfce   : > { %2671 = vadd.xlane.f32.xlu1 %v2670_v35 }
 0xfdf   : > { %2685 = vrot.lane.b32.xlu1 %v7485_v34, %s8417_s4 }
 0xfe0   : > { %2687 = vrot.lane.b32.xlu0 %v7481_v32, %s8417_s4 }
 0xfe3   : > { %2683 = vrot.lane.b32.xlu1 %v7491_v62, %s8417_s4 }
 0xfe4   : > { %2795 = vrot.lane.b32.xlu0 %v7621_v53, %s8415_s5 }
 0xfe7   : > { %2681 = vrot.lane.b32.xlu1 %v7479_v30, %s8417_s4 }
 0xfe8   : > { %2811 = vrot.lane.b32.xlu0 %v2497_v39, %s8413_s6 }
 0xfeb   : > { %2797 = vrot.lane.b32.xlu1 %v7619_v52, %s8415_s5 }
 0xfec   : > { %2799 = vrot.lane.b32.xlu0 %v7625_v11, %s8415_s5 }
 0xfef   : > { %2813 = vrot.lane.b32.xlu1 %v6355_v1, %s8413_s6 }
 0xff0   : > { %2815 = vrot.lane.b32.xlu0 %v2507_v41, %s8413_s6 }
 0xff3   : > { %2801 = vrot.lane.b32.xlu1 %v7623_v56, %s8415_s5 }
 0xff7   : > { %2817 = vrot.lane.b32.xlu1 %v6358_v40, %s8413_s6 }
0x104d   : > { %v2666_v30 = vpop.xlane.xlu1 %2665 }
0x104f   : > { %v2663_v32 = vpop.xlane.xlu0 %2662 }
0x1050   : > { %6848 = vrcp.f32 %v2663_v32 }
0x1051   : > { %6850 = vrcp.f32 %v2666_v30 }
0x1053   : > { %v2669_v34 = vpop.xlane.xlu0 %2668 }
0x1054   : > { %6852 = vrcp.f32 %v2669_v34 }
0x1057   : > { %v2672_v62 = vpop.xlane.xlu1 %2671  ;;  %v2688_v52 = vpop.permute.xlu0 %2687 }
0x1058   : > { %6854 = vrcp.f32 %v2672_v62  ;;  %6373 = vmatprep.subr.msk.mxu1 %vm1878_vm8, %v2688_v52 }
0x1059   : > { %6374 = vmatpush3.msk.msra.mxu1 %vm1878_vm8, %v2688_v52 }
0x105b   : > { %v2686_v53 = vpop.permute.xlu1 %2685  ;;  %v2796_v5 = vpop.permute.xlu0 %2795 }
0x105c   : > { %6375 = vmatprep.subr.mxu1 %v2686_v53  ;;  %v2839_v12 = vsel %vm1703_vm5, %v7563_v57, %v2796_v5 }
0x105d   : > { %v6849_v11 = vpop.eup %6848  ;;  %6376 = vmatpush3.msra.mxu1 %v2686_v53 }
0x105e   : > { %v2677_v56 = vmul.f32 %v6849_v11, %v6843_v23  ;;  %v6851_v37 = vpop.eup %6850 }
0x105f   : > { %v2684_v36 = vpop.permute.xlu1 %2683  ;;  %v2678_v39 = vmul.f32 %v6851_v37, %v6841_v26  ;;  %v2812_v7 = vpop.permute.xlu0 %2811 }
0x1060   : > { %6377 = vmatprep.subr.mxu1 %v2684_v36  ;;  %6381 = vmatprep.mubr.msk.f32.mxu1 %vm1809_vm6, %v2677_v56  ;;  %v2844_v13 = vsel %vm2843_vm9, %v2839_v12, %v2812_v7  ;;  %v3031_v12 = vld [vmem:[%s8411_s2 + $0x158] sm:$0xff] }
0x1061   : > { %6378 = vmatpush3.msra.mxu1 %v2684_v36  ;;  %v6853_v28 = vpop.eup %6852 }
0x1062   : > { %v2679_v41 = vmul.f32 %v6853_v28, %v6845_v25 }
0x1063   : > { %v2682_v1 = vpop.permute.xlu1 %2681  ;;  %v2800_v9 = vpop.permute.xlu0 %2799 }
0x1064   : > { %6379 = vmatprep.subr.mxu1 %v2682_v1  ;;  %v2841_v22 = vsel %vm1703_vm5, %v7567_v61, %v2800_v9  ;;  %v7750_v61 = vld [vmem:[%s8410_s1 + $0x8] sm:$0xff] }
0x1065   : > { %v6855_v40 = vpop.eup %6854  ;;  %6380 = vmatpush3.msra.mxu1 %v2682_v1  ;;  %v2860_v35 = vrot.slane %v7750_v61, %v7196_v29 }
0x1066   : > { %6382 = vmatmul.mubr.msk.f32.vlgmr.msra.gmra.mxu1 %vm1809_vm6, %v2678_v39  ;;  %v2680_v42 = vmul.f32 %v6855_v40, %v6847_v33  ;;  %6387 = vmatprep.subr.mxu1 %v2856_v43 }
0x1067   : > { %6384 = vmatprep.mubr.msk.f32.mxu1 %vm1809_vm6, %v2679_v41  ;;  %6388 = vmatpush3.msra.mxu1 %v2856_v43  ;;  %v2798_v4 = vpop.permute.xlu1 %2797  ;;  %v2816_v49 = vpop.permute.xlu0 %2815 }
0x1068   : > { %6389 = vmatprep.subr.mxu1 %v2855_v44  ;;  %v2840_v24 = vsel %vm1703_vm5, %v7561_v48, %v2798_v4  ;;  %v2846_v57 = vsel %vm2843_vm9, %v2841_v22, %v2816_v49  ;;  %v3033_v49 = vld [vmem:[%s8411_s2 + $0x168] sm:$0xff] }
0x1069   : > { %6390 = vmatpush3.msra.mxu1 %v2855_v44  ;;  %6401 = vmatprep.subr.mxu0 %v3033_v49 }
0x106a   : > { %6385 = vmatmul.mubr.msk.f32.gmra.mxu1 %vm1809_vm6, %v2680_v42  ;;  %6391 = vmatprep.subr.mxu1 %v2854_v45 }
0x106b   : > { %6392 = vmatpush3.msra.mxu1 %v2854_v45  ;;  %v2814_v6 = vpop.permute.xlu1 %2813  ;;  %6402 = vmatpush3.msra.mxu0 %v3033_v49 }
0x106c   : > { %6393 = vmatprep.subr.mxu1 %v2853_v46  ;;  %v2845_v18 = vsel %vm2843_vm9, %v2840_v24, %v2814_v6 }
0x106d   : > { %6394 = vmatpush3.msra.mxu1 %v2853_v46 }
0x106f   : > { %v2802_v8 = vpop.permute.xlu1 %2801 }
0x1070   : > { %v2842_v48 = vsel %vm1703_vm5, %v7565_v59, %v2802_v8 }
0x1073   : > { %v2818_v55 = vpop.permute.xlu1 %2817 }
0x1074   : > { %v2847_v25 = vsel %vm2843_vm9, %v2842_v48, %v2818_v55 }
0x1126   : > { %v6383_v63 = vpop.f32.mrf.mxu1 }
0x1127   : > { %2829 = vrot.lane.b32.xlu1 %v6383_v63, %s8419_s7 }
0x1128   : > { %v2772_v0 = vpop.f32.mrf.mxu1 }
0x1129   : > { %2827 = vrot.lane.b32.xlu0 %v2772_v0, %s8419_s7 }
0x112a   : > { %v6386_v2 = vpop.f32.mrf.mxu1 }
0x112b   : > { %2833 = vrot.lane.b32.xlu1 %v6386_v2, %s8419_s7 }
0x112c   : > { %v2782_v3 = vpop.f32.mrf.mxu1 }
0x112d   : > { %2831 = vrot.lane.b32.xlu0 %v2782_v3, %s8419_s7 }
0x1199   : > { %v2830_v50 = vpop.permute.xlu1 %2829 }
0x119a   : > { %v2850_v26 = vsel %vm2848_vm10, %v2845_v18, %v2830_v50  ;;  %v3032_v50 = vld [vmem:[%s8411_s2 + $0x160] sm:$0xff] }
0x119b   : > { %v2828_v16 = vpop.permute.xlu0 %2827  ;;  %6403 = vmatprep.subr.mxu0 %v3032_v50 }
0x119c   : > { %v2849_v20 = vsel %vm2848_vm10, %v2844_v13, %v2828_v16  ;;  %6404 = vmatpush3.msra.mxu0 %v3032_v50  ;;  %v3030_v13 = vld [vmem:[%s8411_s2 + $0x150] sm:$0xff] }
0x119d   : > { %6395 = vmatprep.mubr.msk.f32.mxu1 %vm316_vm2, %v2849_v20  ;;  %v2834_v23 = vpop.permute.xlu1 %2833  ;;  %6405 = vmatprep.subr.mxu0 %v3031_v12 }
0x119e   : > { %6396 = vmatmul.mubr.msk.f32.vlgmr.msra.gmra.mxu1 %vm316_vm2, %v2850_v26  ;;  %v2852_v33 = vsel %vm2848_vm10, %v2847_v25, %v2834_v23  ;;  %6406 = vmatpush3.msra.mxu0 %v3031_v12 }
0x119f   : > { %v2832_v60 = vpop.permute.xlu0 %2831  ;;  %6407 = vmatprep.subr.mxu0 %v3030_v13 }
0x11a0   : > { %v2851_v31 = vsel %vm2848_vm10, %v2846_v57, %v2832_v60  ;;  %6408 = vmatpush3.msra.mxu0 %v3030_v13 }
0x11a1   : > { %6398 = vmatprep.mubr.msk.f32.mxu1 %vm316_vm2, %v2851_v31 }
0x11a2   : > { %6399 = vmatmul.mubr.msk.f32.gmra.mxu1 %vm316_vm2, %v2852_v33 }
0x125e   : > { %v6397_v59 = vpop.f32.mrf.mxu1 }
0x125f   : > { %v2945_v32 = vadd.f32 %v6397_v59, %v2860_v35 }
0x1260   : > { %v2939_v30 = vpop.f32.mrf.mxu1 }
0x1261   : > { %v2959_v34 = vadd.f32 %v2945_v32, %v7461_v19  ;;  %v2940_v62 = vadd.f32 %v2939_v30, %v2860_v35 }
0x1262   : > { %v6400_v52 = vpop.f32.mrf.mxu1 }
0x1263   : > { %v2958_v53 = vadd.f32 %v2940_v62, %v7459_v17  ;;  %v2965_v11 = vsel %vm316_vm2, %v2959_v34, 0.0  ;;  %v2955_v36 = vadd.f32 %v6400_v52, %v2860_v35 }
0x1264   : > { %2966 = vadd.xlane.f32.xlu1 %v2965_v11  ;;  %v2949_v56 = vpop.f32.mrf.mxu1 }
0x1265   : > { %v2950_v37 = vadd.f32 %v2949_v56, %v2860_v35  ;;  %v2962_v28 = vsel %vm316_vm2, %v2958_v53, 0.0  ;;  %v2961_v39 = vadd.f32 %v2955_v36, %v7469_v21  ;;  %v3017_v35 = vrot.slane %v7750_v61, %v7328_v14 }
0x1266   : > { %2963 = vadd.xlane.f32.xlu0 %v2962_v28 }
0x1267   : > { %v2960_v1 = vadd.f32 %v2950_v37, %v7467_v58  ;;  %v2971_v19 = vsel %vm981_vm4, %v2961_v39, 0.0 }
0x1269   : > { %v2968_v40 = vsel %vm316_vm2, %v2960_v1, 0.0 }
0x126a   : > { %2969 = vadd.xlane.f32.xlu0 %v2968_v40 }
0x126e   : > { %2972 = vadd.xlane.f32.xlu0 %v2971_v19 }
0x12ed   : > { %v2967_v17 = vpop.xlane.xlu1 %2966 }
0x12ee   : > { %v2975_v41 = vmul.f32 0.03125, %v2967_v17  ;;  %v3178_v17 = vld [vmem:[%s8411_s2 + $0x1a8] sm:$0xff] }
0x12ef   : > { %v2964_v42 = vpop.xlane.xlu0 %2963  ;;  %6415 = vmatprep.subr.mxu1 %v3178_v17 }
0x12f0   : > { %v2979_v43 = vsub.f32 %v2959_v34, %v2975_v41  ;;  %v2974_v44 = vmul.f32 0.03125, %v2964_v42  ;;  %v3025_v34 = vrot.slane %v7750_v61, %v7331_v15  ;;  %6416 = vmatpush3.msra.mxu1 %v3178_v17  ;;  %v3177_v41 = vld [vmem:[%s8411_s2 + $0x1a0] sm:$0xff]  ;;  %v3176_v42 = vld [vmem:[%s8411_s2 + $0x198] sm:$0xff] }
0x12f1   : > { %6417 = vmatprep.subr.mxu1 %v3177_v41 }
0x12f2   : > { %v2978_v45 = vsub.f32 %v2958_v53, %v2974_v44  ;;  %v2983_v46 = vmul.f32 %v2979_v43, %v2979_v43  ;;  %6418 = vmatpush3.msra.mxu1 %v3177_v41  ;;  %v3174_v44 = vld [vmem:[%s8411_s2 + $0x188] sm:$0xff] }
0x12f3   : > { %v2970_v63 = vpop.xlane.xlu0 %2969  ;;  %6419 = vmatprep.subr.mxu1 %v3176_v42 }
0x12f4   : > { %v2976_v0 = vmul.f32 0.03125, %v2970_v63  ;;  %v2989_v2 = vsel %vm316_vm2, %v2983_v46, 0.0  ;;  %v2982_v58 = vmul.f32 %v2978_v45, %v2978_v45  ;;  %6420 = vmatpush3.msra.mxu1 %v3176_v42  ;;  %v3172_v46 = vld [vmem:[%s8411_s2 + $0x178] sm:$0xff]  ;;  %v3171_v63 = vld [vmem:[%s8411_s2 + $0x170] sm:$0xff] }
0x12f5   : > { %2990 = vadd.xlane.f32.xlu1 %v2989_v2 }
0x12f6   : > { %v2980_v21 = vsub.f32 %v2960_v1, %v2976_v0  ;;  %v2986_v3 = vsel %vm316_vm2, %v2982_v58, 0.0  ;;  %v3037_v0 = vrot.slane %v7750_v61, %v7374_v47 }
0x12f7   : > { %2987 = vadd.xlane.f32.xlu0 %v2986_v3  ;;  %v2973_v4 = vpop.xlane.xlu0 %2972 }
0x12f8   : > { %v2977_v5 = vmul.f32 0.03125, %v2973_v4  ;;  %v2984_v6 = vmul.f32 %v2980_v21, %v2980_v21 }
0x12fa   : > { %v2981_v7 = vsub.f32 %v2961_v39, %v2977_v5  ;;  %v2992_v8 = vsel %vm316_vm2, %v2984_v6, 0.0 }
0x12fb   : > { %2993 = vadd.xlane.f32.xlu0 %v2992_v8 }
0x12fc   : > { %v2985_v9 = vmul.f32 %v2981_v7, %v2981_v7 }
0x12fe   : > { %v2995_v55 = vsel %vm981_vm4, %v2985_v9, 0.0 }
0x12ff   : > { %2996 = vadd.xlane.f32.xlu1 %v2995_v55 }
0x137e   : > { %v2991_v24 = vpop.xlane.xlu1 %2990 }
0x137f   : > { %v2999_v16 = vmul.f32 0.03125, %v2991_v24 }
0x1380   : > { %v2988_v18 = vpop.xlane.xlu0 %2987 }
0x1381   : > { %v3003_v20 = vadd.f32 1e-05, %v2999_v16  ;;  %v2998_v26 = vmul.f32 0.03125, %v2988_v18 }
0x1383   : > { %6856 = vrsqrt.f32 %v3003_v20  ;;  %v3002_v22 = vadd.f32 1e-05, %v2998_v26 }
0x1384   : > { %v2994_v23 = vpop.xlane.xlu0 %2993 }
0x1385   : > { %6858 = vrsqrt.f32 %v3002_v22  ;;  %v3000_v57 = vmul.f32 0.03125, %v2994_v23 }
0x1387   : > { %v3004_v48 = vadd.f32 1e-05, %v3000_v57 }
0x1388   : > { %v2997_v60 = vpop.xlane.xlu1 %2996 }
0x1389   : > { %6860 = vrsqrt.f32 %v3004_v48  ;;  %v3001_v25 = vmul.f32 0.03125, %v2997_v60 }
0x138b   : > { %v3005_v31 = vadd.f32 1e-05, %v3001_v25 }
0x138d   : > { %6862 = vrsqrt.f32 %v3005_v31 }
0x1390   : > { %v6857_v33 = vpop.eup %6856 }
0x1391   : > { %v3011_v59 = vmul.f32 %v6857_v33, %v2979_v43  ;;  %v3175_v43 = vld [vmem:[%s8411_s2 + $0x190] sm:$0xff] }
0x1392   : > { %v6859_v32 = vpop.eup %6858  ;;  %6421 = vmatprep.subr.mxu1 %v3175_v43 }
0x1393   : > { %v3010_v30 = vmul.f32 %v6859_v32, %v2978_v45  ;;  %v3019_v62 = vmul.f32 %v3017_v35, %v3011_v59  ;;  %6422 = vmatpush3.msra.mxu1 %v3175_v43  ;;  %v3173_v45 = vld [vmem:[%s8411_s2 + $0x180] sm:$0xff]  ;;  %v3182_v43 = vrot.slane %v7750_v61, %v7420_v51 }
0x1394   : > { %6423 = vmatprep.subr.mxu1 %v3174_v44 }
0x1395   : > { %v3018_v52 = vmul.f32 %v3017_v35, %v3010_v30  ;;  %v7784_v36 = vadd.f32 %v3025_v34, %v3019_v62  ;;  %6424 = vmatpush3.msra.mxu1 %v3174_v44 }
0x1396   : > { %v6861_v53 = vpop.eup %6860  ;;  %6425 = vmatprep.subr.mxu1 %v3173_v45 }
0x1397   : > { %v7782_v11 = vadd.f32 %v3025_v34, %v3018_v52  ;;  %v3012_v56 = vmul.f32 %v6861_v53, %v2980_v21  ;;  %6426 = vmatpush3.msra.mxu1 %v3173_v45 }
0x1398   : > { %6427 = vmatprep.subr.mxu1 %v3172_v46 }
0x1399   : > { %6409 = vmatprep.mubr.msk.f32.mxu0 %vm316_vm2, %v7782_v11  ;;  %v3020_v37 = vmul.f32 %v3017_v35, %v3012_v56  ;;  %6428 = vmatpush3.msra.mxu1 %v3172_v46 }
0x139a   : > { %v6863_v28 = vpop.eup %6862  ;;  %6410 = vmatmul.mubr.msk.f32.vlgmr.msra.gmra.mxu0 %vm316_vm2, %v7784_v36  ;;  %6429 = vmatprep.subr.mxu1 %v3171_v63 }
0x139b   : > { %v7790_v1 = vadd.f32 %v3025_v34, %v3020_v37  ;;  %v3013_v39 = vmul.f32 %v6863_v28, %v2981_v7  ;;  %6430 = vmatpush3.msra.mxu1 %v3171_v63 }
0x139d   : > { %6412 = vmatprep.mubr.msk.f32.mxu0 %vm316_vm2, %v7790_v1  ;;  %v3021_v40 = vmul.f32 %v3017_v35, %v3013_v39 }
0x139f   : > { %v7794_v19 = vadd.f32 %v3025_v34, %v3021_v40 }
0x13a1   : > { %6413 = vmatmul.mubr.msk.f32.gmra.mxu0 %vm316_vm2, %v7794_v19 }
0x145a   : > { %v6411_v2 = vpop.f32.mrf.mxu0 }
0x145b   : > { %v3122_v58 = vadd.f32 %v6411_v2, %v3037_v0 }
0x145c   : > { %v3116_v21 = vpop.f32.mrf.mxu0 }
0x145d   : > { %v3136_v3 = vmul.f32 %v3122_v58, %v3122_v58  ;;  %v3117_v4 = vadd.f32 %v3116_v21, %v3037_v0 }
0x145f   : > { %v3140_v5 = vmul.f32 %v3136_v3, %v3122_v58  ;;  %v3135_v6 = vmul.f32 %v3117_v4, %v3117_v4 }
0x1461   : > { %v3144_v7 = vmul.f32 0.044715, %v3140_v5  ;;  %v3139_v8 = vmul.f32 %v3135_v6, %v3117_v4  ;;  %v6414_v9 = vpop.f32.mrf.mxu0 }
0x1462   : > { %v3132_v55 = vadd.f32 %v6414_v9, %v3037_v0 }
0x1463   : > { %v3148_v49 = vadd.f32 %v3144_v7, %v3122_v58  ;;  %v3143_v50 = vmul.f32 0.044715, %v3139_v8  ;;  %v3126_v12 = vpop.f32.mrf.mxu0 }
0x1464   : > { %v3138_v13 = vmul.f32 %v3132_v55, %v3132_v55  ;;  %v3127_v24 = vadd.f32 %v3126_v12, %v3037_v0 }
0x1465   : > { %v3152_v16 = vmul.f32 0.7978846, %v3148_v49  ;;  %v3147_v18 = vadd.f32 %v3143_v50, %v3117_v4 }
0x1466   : > { %v3142_v20 = vmul.f32 %v3138_v13, %v3132_v55  ;;  %v3137_v26 = vmul.f32 %v3127_v24, %v3127_v24 }
0x1467   : > { %6864 = vtanh.f32 %v3152_v16  ;;  %v3151_v22 = vmul.f32 0.7978846, %v3147_v18 }
0x1468   : > { %v3146_v23 = vmul.f32 0.044715, %v3142_v20  ;;  %v3141_v57 = vmul.f32 %v3137_v26, %v3127_v24 }
0x1469   : > { %6866 = vtanh.f32 %v3151_v22 }
0x146a   : > { %v3150_v48 = vadd.f32 %v3146_v23, %v3132_v55  ;;  %v3145_v60 = vmul.f32 0.044715, %v3141_v57 }
0x146c   : > { %v3154_v25 = vmul.f32 0.7978846, %v3150_v48  ;;  %v3149_v31 = vadd.f32 %v3145_v60, %v3127_v24 }
0x146e   : > { %6868 = vtanh.f32 %v3154_v25  ;;  %v3153_v33 = vmul.f32 0.7978846, %v3149_v31 }
0x1470   : > { %6870 = vtanh.f32 %v3153_v33  ;;  %v3356_v33 = vld [vmem:[%s8411_s2 + $0x1c8] sm:$0xff] }
0x1471   : > { %6437 = vmatprep.subr.mxu0 %v3356_v33 }
0x1472   : > { %6438 = vmatpush3.msra.mxu0 %v3356_v33 }
0x1474   : > { %v6865_v35 = vpop.eup %6864 }
0x1475   : > { %v3160_v59 = vadd.f32 1.0, %v6865_v35  ;;  %v3355_v35 = vld [vmem:[%s8411_s2 + $0x1c0] sm:$0xff] }
0x1476   : > { %v6867_v32 = vpop.eup %6866  ;;  %6439 = vmatprep.subr.mxu0 %v3355_v35 }
0x1477   : > { %v3159_v30 = vadd.f32 1.0, %v6867_v32  ;;  %v3164_v34 = vmul.f32 0.5, %v3160_v59  ;;  %v3354_v59 = vld [vmem:[%s8411_s2 + $0x1b8] sm:$0xff]  ;;  %6440 = vmatpush3.msra.mxu0 %v3355_v35  ;;  %v3353_v32 = vld [vmem:[%s8411_s2 + $0x1b0] sm:$0xff] }
0x1478   : > { %6441 = vmatprep.subr.mxu0 %v3354_v59 }
0x1479   : > { %v3163_v62 = vmul.f32 0.5, %v3159_v30  ;;  %v3168_v56 = vmul.f32 %v3164_v34, %v3122_v58  ;;  %6442 = vmatpush3.msra.mxu0 %v3354_v59 }
0x147a   : > { %6443 = vmatprep.subr.mxu0 %v3353_v32 }
0x147b   : > { %v6869_v52 = vpop.eup %6868  ;;  %v3167_v53 = vmul.f32 %v3163_v62, %v3117_v4  ;;  %6444 = vmatpush3.msra.mxu0 %v3353_v32 }
0x147c   : > { %v3162_v37 = vadd.f32 1.0, %v6869_v52 }
0x147d   : > { %v6871_v28 = vpop.eup %6870  ;;  %6431 = vmatprep.mubr.msk.f32.mxu1 %vm3183_vm11, %v3167_v53 }
0x147e   : > { %6432 = vmatmul.mubr.msk.f32.vlgmr.msra.gmra.mxu1 %vm3183_vm11, %v3168_v56  ;;  %v3161_v39 = vadd.f32 1.0, %v6871_v28  ;;  %v3166_v40 = vmul.f32 0.5, %v3162_v37 }
0x1480   : > { %v3165_v17 = vmul.f32 0.5, %v3161_v39  ;;  %v3170_v42 = vmul.f32 %v3166_v40, %v3132_v55 }
0x1482   : > { %v3169_v41 = vmul.f32 %v3165_v17, %v3127_v24 }
0x1484   : > { %6434 = vmatprep.mubr.msk.f32.mxu1 %vm3183_vm11, %v3169_v41 }
0x1485   : > { %6435 = vmatmul.mubr.msk.f32.gmra.mxu1 %vm3183_vm11, %v3170_v42 }
0x153e   : > { %v6433_v44 = vpop.f32.mrf.mxu1 }
0x153f   : > { %v3268_v45 = vadd.f32 %v6433_v44, %v3182_v43 }
0x1540   : > { %v3262_v46 = vpop.f32.mrf.mxu1 }
0x1541   : > { %v3282_v63 = vadd.f32 %v3268_v45, %v7784_v36  ;;  %v3263_v0 = vadd.f32 %v3262_v46, %v3182_v43 }
0x1543   : > { %v3281_v2 = vadd.f32 %v3263_v0, %v7782_v11  ;;  %v3288_v58 = vsel %vm316_vm2, %v3282_v63, 0.0 }
0x1544   : > { %3289 = vadd.xlane.f32.xlu1 %v3288_v58 }
0x1545   : > { %v6436_v21 = vpop.f32.mrf.mxu1  ;;  %v3285_v3 = vsel %vm316_vm2, %v3281_v2, 0.0 }
0x1546   : > { %v3278_v4 = vadd.f32 %v6436_v21, %v3182_v43  ;;  %3286 = vadd.xlane.f32.xlu0 %v3285_v3 }
0x1547   : > { %v3272_v5 = vpop.f32.mrf.mxu1 }
0x1548   : > { %v3284_v6 = vadd.f32 %v3278_v4, %v7794_v19  ;;  %v3273_v7 = vadd.f32 %v3272_v5, %v3182_v43  ;;  %v3340_v43 = vrot.slane %v7750_v61, %v7449_v54 }
0x154a   : > { %v3283_v8 = vadd.f32 %v3273_v7, %v7790_v1  ;;  %v3294_v9 = vsel %vm981_vm4, %v3284_v6, 0.0 }
0x154b   : > { %3295 = vadd.xlane.f32.xlu1 %v3294_v9 }
0x154c   : > { %v3291_v36 = vsel %vm316_vm2, %v3283_v8, 0.0 }
0x154d   : > { %3292 = vadd.xlane.f32.xlu0 %v3291_v36  ;;  %v7877_v36 = vld [vmem:[%s8410_s1 + $0x10] sm:$0xff] }
0x15cd   : > { %v3290_v11 = vpop.xlane.xlu1 %3289 }
0x15ce   : > { %v3298_v55 = vmul.f32 0.03125, %v3290_v11 }
0x15cf   : > { %v3287_v49 = vpop.xlane.xlu0 %3286 }
0x15d0   : > { %v3302_v50 = vsub.f32 %v3282_v63, %v3298_v55  ;;  %v3297_v12 = vmul.f32 0.03125, %v3287_v49  ;;  %v3348_v63 = vrot.slane %v7750_v61, %v7456_v10  ;;  %v3360_v55 = vrot.slane %v7877_v36, %v7188_v27 }
0x15d2   : > { %v3301_v13 = vsub.f32 %v3281_v2, %v3297_v12  ;;  %v3306_v24 = vmul.f32 %v3302_v50, %v3302_v50 }
0x15d4   : > { %v3296_v16 = vpop.xlane.xlu1 %3295  ;;  %v3312_v18 = vsel %vm316_vm2, %v3306_v24, 0.0  ;;  %v3305_v19 = vmul.f32 %v3301_v13, %v3301_v13 }
0x15d5   : > { %v3300_v20 = vmul.f32 0.03125, %v3296_v16  ;;  %3313 = vadd.xlane.f32.xlu1 %v3312_v18 }
0x15d6   : > { %v3293_v1 = vpop.xlane.xlu0 %3292  ;;  %v3309_v26 = vsel %vm316_vm2, %v3305_v19, 0.0 }
0x15d7   : > { %v3304_v22 = vsub.f32 %v3284_v6, %v3300_v20  ;;  %v3299_v23 = vmul.f32 0.03125, %v3293_v1  ;;  %3310 = vadd.xlane.f32.xlu0 %v3309_v26 }
0x15d9   : > { %v3303_v57 = vsub.f32 %v3283_v8, %v3299_v23  ;;  %v3308_v48 = vmul.f32 %v3304_v22, %v3304_v22 }
0x15db   : > { %v3318_v60 = vsel %vm981_vm4, %v3308_v48, 0.0  ;;  %v3307_v25 = vmul.f32 %v3303_v57, %v3303_v57 }
0x15dc   : > { %3319 = vadd.xlane.f32.xlu1 %v3318_v60 }
0x15dd   : > { %v3315_v31 = vsel %vm316_vm2, %v3307_v25, 0.0 }
0x15de   : > { %3316 = vadd.xlane.f32.xlu0 %v3315_v31 }
0x165e   : > { %v3314_v30 = vpop.xlane.xlu1 %3313 }
0x165f   : > { %v3322_v34 = vmul.f32 0.03125, %v3314_v30 }
0x1660   : > { %v3311_v62 = vpop.xlane.xlu0 %3310 }
0x1661   : > { %v3326_v52 = vadd.f32 1e-05, %v3322_v34  ;;  %v3321_v53 = vmul.f32 0.03125, %v3311_v62 }
0x1663   : > { %6872 = vrsqrt.f32 %v3326_v52  ;;  %v3325_v56 = vadd.f32 1e-05, %v3321_v53 }
0x1665   : > { %6874 = vrsqrt.f32 %v3325_v56  ;;  %v3320_v37 = vpop.xlane.xlu1 %3319 }
0x1666   : > { %v3324_v28 = vmul.f32 0.03125, %v3320_v37 }
0x1667   : > { %v3317_v39 = vpop.xlane.xlu0 %3316 }
0x1668   : > { %v3328_v40 = vadd.f32 1e-05, %v3324_v28  ;;  %v3323_v17 = vmul.f32 0.03125, %v3317_v39 }
0x166a   : > { %6876 = vrsqrt.f32 %v3328_v40  ;;  %v3327_v41 = vadd.f32 1e-05, %v3323_v17 }
0x166c   : > { %6878 = vrsqrt.f32 %v3327_v41 }
0x1670   : > { %v6873_v42 = vpop.eup %6872 }
0x1671   : > { %v3334_v44 = vmul.f32 %v6873_v42, %v3302_v50 }
0x1672   : > { %v6875_v45 = vpop.eup %6874 }
0x1673   : > { %v3333_v46 = vmul.f32 %v6875_v45, %v3301_v13  ;;  %v3342_v0 = vmul.f32 %v3340_v43, %v3334_v44 }
0x1675   : > { %v3341_v2 = vmul.f32 %v3340_v43, %v3333_v46  ;;  %v7860_v3 = vadd.f32 %v3348_v63, %v3342_v0 }
0x1677   : > { %v6877_v58 = vpop.eup %6876  ;;  %v7858_v21 = vadd.f32 %v3348_v63, %v3341_v2 }
0x1678   : > { %v3336_v4 = vmul.f32 %v6877_v58, %v3304_v22 }
0x1679   : > { %v6879_v5 = vpop.eup %6878  ;;  %6445 = vmatprep.mubr.msk.f32.mxu0 %vm316_vm2, %v7858_v21 }
0x167a   : > { %6446 = vmatmul.mubr.msk.f32.vlgmr.msra.gmra.mxu0 %vm316_vm2, %v7860_v3  ;;  %v3335_v6 = vmul.f32 %v6879_v5, %v3303_v57  ;;  %v3344_v7 = vmul.f32 %v3340_v43, %v3336_v4 }
0x167c   : > { %v3343_v8 = vmul.f32 %v3340_v43, %v3335_v6  ;;  %v7868_v61 = vadd.f32 %v3348_v63, %v3344_v7 }
0x167e   : > { %v7866_v9 = vadd.f32 %v3348_v63, %v3343_v8 }
0x1680   : > { %6448 = vmatprep.mubr.msk.f32.mxu0 %vm316_vm2, %v7866_v9 }
0x1681   : > { %6449 = vmatmul.mubr.msk.f32.gmra.mxu0 %vm316_vm2, %v7868_v61 }
0x173a   : > { %v6447_v11 = vpop.f32.mrf.mxu0 }
0x173b   : > { %v7893_v18 = vadd.f32 %v6447_v11, %v3360_v55 }
0x173c   : > { %v3439_v49 = vpop.f32.mrf.mxu0 }
0x173d   : > { %v7881_v50 = vadd.f32 %v3439_v49, %v3360_v55 }
0x173f   : > { %6459 = vmatprep.mubr.msk.f32.mxu0 %vm1703_vm5, %v7881_v50 }
0x1741   : > { %v6450_v12 = vpop.f32.mrf.mxu0 }
0x1742   : > { %v7885_v13 = vadd.f32 %v6450_v12, %v3360_v55 }
0x1743   : > { %v3449_v24 = vpop.f32.mrf.mxu0 }
0x1744   : > { %v7887_v16 = vadd.f32 %v3449_v24, %v3360_v55  ;;  %3468 = vrot.lane.b32.xlu0 %v7885_v13, %s7036_s17 }
0x1746   : > { %3466 = vrot.lane.b32.xlu1 %v7887_v16, %s7036_s17 }
0x174a   : > { %3464 = vrot.lane.b32.xlu1 %v7893_v18, %s7036_s17 }
0x174e   : > { %3462 = vrot.lane.b32.xlu1 %v7881_v50, %s7036_s17  ;;  %s8423_s17 = smov 40  }
0x17b6   : > { %v3469_v19 = vpop.permute.xlu0 %3468 }
0x17b7   : > { %6451 = vmatprep.subr.msk.mxu0 %vm1703_vm5, %v3469_v19 }
0x17b8   : > { %6452 = vmatpush3.xpose.msk.msra.mxu0 %vm1703_vm5, %v3469_v19  ;;  %v3467_v20 = vpop.permute.xlu1 %3466 }
0x17b9   : > { %6453 = vmatprep.subr.msk.mxu0 %vm1703_vm5, %v3467_v20 }
0x17bc   : > { %6454 = vmatpush3.xpose.msk.msra.mxu0 %vm1703_vm5, %v3467_v20  ;;  %v3465_v1 = vpop.permute.xlu1 %3464 }
0x17bd   : > { %6455 = vmatprep.subr.msk.mxu0 %vm1703_vm5, %v3465_v1 }
0x17c0   : > { %6456 = vmatpush3.xpose.msk.msra.mxu0 %vm1703_vm5, %v3465_v1  ;;  %v3463_v26 = vpop.permute.xlu1 %3462 }
0x17c1   : > { %6457 = vmatprep.subr.msk.mxu0 %vm1703_vm5, %v3463_v26 }
0x17c4   : > { %6458 = vmatpush3.xpose.msk.msra.mxu0 %vm1703_vm5, %v3463_v26 }
0x17c7   : > { %6460 = vmatmul.mubr.msk.f32.vlgmr.msra.gmra.mxu0 %vm1703_vm5, %v7893_v18 }
0x17c8   : > { %6462 = vmatprep.mubr.msk.f32.mxu0 %vm1703_vm5, %v7887_v16 }
0x17cb   : > { %6463 = vmatmul.mubr.msk.f32.gmra.mxu0 %vm1703_vm5, %v7885_v13 }
0x1887   : > { %v6461_v22 = vpop.f32.mrf.mxu0 }
0x1888   : > { %v3572_v23 = vmul.f32 0.35355338, %v6461_v22 }
0x1889   : > { %v3552_v57 = vpop.f32.mrf.mxu0 }
0x188a   : > { %v3571_v48 = vmul.f32 0.35355338, %v3552_v57  ;;  %v3578_v60 = vsel %vm1809_vm6, %v3572_v23, -inf }
0x188b   : > { %3579 = vmax.xlane.f32.xlu1 %v3578_v60  ;;  %v6464_v25 = vpop.f32.mrf.mxu0 }
0x188c   : > { %v3574_v31 = vmul.f32 0.35355338, %v6464_v25  ;;  %v3575_v33 = vsel %vm1809_vm6, %v3571_v48, -inf }
0x188d   : > { %3576 = vmax.xlane.f32.xlu0 %v3575_v33  ;;  %v3562_v35 = vpop.f32.mrf.mxu0 }
0x188e   : > { %v3573_v59 = vmul.f32 0.35355338, %v3562_v35  ;;  %v3584_v32 = vsel %vm1819_vm7, %v3574_v31, -inf }
0x1890   : > { %v3581_v30 = vsel %vm1809_vm6, %v3573_v59, -inf }
0x1891   : > { %3585 = vmax.xlane.f32.xlu0 %v3584_v32 }
0x1895   : > { %3582 = vmax.xlane.f32.xlu0 %v3581_v30 }
0x189c   : > { %3623 = vrot.lane.b32.xlu1 %v7887_v16, %s7037_s19 }
0x18a0   : > { %3621 = vrot.lane.b32.xlu1 %v7893_v18, %s7037_s19 }
0x18a4   : > { %3619 = vrot.lane.b32.xlu1 %v7881_v50, %s7037_s19 }
0x18ab   : > { %3625 = vrot.lane.b32.xlu0 %v7885_v13, %s7037_s19  ;;  %s8424_s19 = smov 8  }
0x1914   : > { %v3580_v34 = vpop.xlane.xlu1 %3579 }
0x1915   : > { %v3588_v62 = vsub.f32 %v3572_v23, %v3580_v34 }
0x1916   : > { %v3577_v52 = vpop.xlane.xlu0 %3576 }
0x1917   : > { %v3593_v53 = vmul.f32 1.442695, %v3588_v62  ;;  %v3587_v56 = vsub.f32 %v3571_v48, %v3577_v52 }
0x1918   : > { %v3624_v39 = vpop.permute.xlu1 %3623 }
0x1919   : > { %6880 = vpow2.f32 %v3593_v53  ;;  %v3591_v37 = vmul.f32 1.442695, %v3587_v56 }
0x191a   : > { %v3586_v28 = vpop.xlane.xlu0 %3585 }
0x191b   : > { %6882 = vpow2.f32 %v3591_v37  ;;  %v3590_v63 = vsub.f32 %v3574_v31, %v3586_v28 }
0x191c   : > { %v3622_v17 = vpop.permute.xlu1 %3621 }
0x191d   : > { %v3597_v2 = vmul.f32 1.442695, %v3590_v63 }
0x191e   : > { %v3583_v40 = vpop.xlane.xlu0 %3582 }
0x191f   : > { %v3589_v0 = vsub.f32 %v3573_v59, %v3583_v40  ;;  %6884 = vpow2.f32 %v3597_v2 }
0x1920   : > { %v3620_v45 = vpop.permute.xlu1 %3619 }
0x1921   : > { %v3595_v58 = vmul.f32 1.442695, %v3589_v0 }
0x1922   : > { %v3626_v41 = vpop.permute.xlu0 %3625 }
0x1923   : > { %6465 = vmatprep.subr.msk.mxu1 %vm1878_vm8, %v3626_v41  ;;  %6886 = vpow2.f32 %v3595_v58 }
0x1924   : > { %6466 = vmatpush3.msk.msra.mxu1 %vm1878_vm8, %v3626_v41 }
0x1925   : > { %6467 = vmatprep.subr.mxu1 %v3624_v39 }
0x1926   : > { %v6881_v42 = vpop.eup %6880  ;;  %6468 = vmatpush3.msra.mxu1 %v3624_v39 }
0x1927   : > { %6469 = vmatprep.subr.mxu1 %v3622_v17  ;;  %v3602_v43 = vsel %vm1809_vm6, %v6881_v42, 0.0 }
0x1928   : > { %v6883_v44 = vpop.eup %6882  ;;  %3603 = vadd.xlane.f32.xlu1 %v3602_v43  ;;  %6470 = vmatpush3.msra.mxu1 %v3622_v17 }
0x1929   : > { %6471 = vmatprep.subr.mxu1 %v3620_v45  ;;  %v3599_v46 = vsel %vm1809_vm6, %v6883_v44, 0.0 }
0x192a   : > { %3600 = vadd.xlane.f32.xlu0 %v3599_v46  ;;  %6472 = vmatpush3.msra.mxu1 %v3620_v45 }
0x192c   : > { %v6885_v4 = vpop.eup %6884 }
0x192d   : > { %v3608_v6 = vsel %vm1819_vm7, %v6885_v4, 0.0 }
0x1930   : > { %v6887_v5 = vpop.eup %6886 }
0x1931   : > { %v3605_v7 = vsel %vm1809_vm6, %v6887_v5, 0.0 }
0x1939   : > { %3741 = vrot.lane.b32.xlu1 %v7887_v16, %s7038_s20 }
0x1940   : > { %3743 = vrot.lane.b32.xlu0 %v7885_v13, %s7038_s20 }
0x195d   : > { %3609 = vadd.xlane.f32.xlu1 %v3608_v6 }
0x195f   : > { %3606 = vadd.xlane.f32.xlu0 %v3605_v7 }
0x196e   : > { %3737 = vrot.lane.b32.xlu1 %v7881_v50, %s7038_s20 }
0x1972   : > { %3731 = vrot.lane.b32.xlu1 %v7893_v18, %s7039_s24 }
0x1975   : > { %3739 = vrot.lane.b32.xlu0 %v7893_v18, %s7038_s20  ;;  %s8425_s20 = smov 16  }
0x1976   : > { %3735 = vrot.lane.b32.xlu1 %v7885_v13, %s7039_s24 }
0x1979   : > { %3729 = vrot.lane.b32.xlu0 %v7881_v50, %s7039_s24 }
0x197d   : > { %3733 = vrot.lane.b32.xlu0 %v7887_v16, %s7039_s24 }
0x19b1   : > { %v3604_v8 = vpop.xlane.xlu1 %3603 }
0x19b2   : > { %6888 = vrcp.f32 %v3604_v8 }
0x19b3   : > { %v3601_v11 = vpop.xlane.xlu0 %3600 }
0x19b4   : > { %6890 = vrcp.f32 %v3601_v11 }
0x19b5   : > { %v3742_v20 = vpop.permute.xlu1 %3741 }
0x19b7   : > { %v3744_v55 = vpop.permute.xlu0 %3743 }
0x19b8   : > { %6479 = vmatprep.subr.msk.mxu1 %vm1703_vm5, %v3744_v55 }
0x19bf   : > { %v6889_v49 = vpop.eup %6888 }
0x19c0   : > { %v3616_v19 = vmul.f32 %v6889_v49, %v6881_v42 }
0x19c1   : > { %v6891_v12 = vpop.eup %6890 }
0x19c2   : > { %v3615_v24 = vmul.f32 %v6891_v12, %v6883_v44 }
0x19c4   : > { %6473 = vmatprep.mubr.msk.f32.mxu1 %vm1809_vm6, %v3615_v24 }
0x19c5   : > { %6474 = vmatmul.mubr.msk.f32.vlgmr.msra.gmra.mxu1 %vm1809_vm6, %v3616_v19 }
0x19c6   : > { %6480 = vmatpush3.xpose.msk.msra.mxu1 %vm1703_vm5, %v3744_v55 }
0x19c7   : > { %6481 = vmatprep.subr.msk.mxu1 %vm1703_vm5, %v3742_v20 }
0x19ca   : > { %6482 = vmatpush3.xpose.msk.msra.mxu1 %vm1703_vm5, %v3742_v20 }
0x19e6   : > { %v3610_v1 = vpop.xlane.xlu1 %3609 }
0x19e7   : > { %6892 = vrcp.f32 %v3610_v1 }
0x19e8   : > { %v3607_v26 = vpop.xlane.xlu0 %3606 }
0x19e9   : > { %6894 = vrcp.f32 %v3607_v26 }
0x19ea   : > { %v3738_v23 = vpop.permute.xlu1 %3737 }
0x19ec   : > { %v3740_v22 = vpop.permute.xlu0 %3739 }
0x19ed   : > { %6483 = vmatprep.subr.msk.mxu1 %vm1703_vm5, %v3740_v22 }
0x19ee   : > { %6484 = vmatpush3.xpose.msk.msra.mxu1 %vm1703_vm5, %v3740_v22  ;;  %v3732_v33 = vpop.permute.xlu1 %3731 }
0x19ef   : > { %6485 = vmatprep.subr.msk.mxu1 %vm1703_vm5, %v3738_v23 }
0x19f0   : > { %v3730_v25 = vpop.permute.xlu0 %3729 }
0x19f2   : > { %6486 = vmatpush3.xpose.msk.msra.mxu1 %vm1703_vm5, %v3738_v23  ;;  %v3736_v59 = vpop.permute.xlu1 %3735 }
0x19f4   : > { %v6893_v57 = vpop.eup %6892  ;;  %v3734_v35 = vpop.permute.xlu0 %3733 }
0x19f5   : > { %v3618_v31 = vmul.f32 %v6893_v57, %v6885_v4 }
0x19f6   : > { %v6895_v48 = vpop.eup %6894 }
0x19f7   : > { %v3617_v60 = vmul.f32 %v6895_v48, %v6887_v5 }
0x19f9   : > { %6476 = vmatprep.mubr.msk.f32.mxu1 %vm1809_vm6, %v3617_v60 }
0x19fa   : > { %6477 = vmatmul.mubr.msk.f32.gmra.mxu1 %vm1809_vm6, %v3618_v31 }
0x19fb   : > { %6487 = vmatprep.mubr.msk.f32.mxu1 %vm1703_vm5, %v3730_v25 }
0x19fe   : > { %6488 = vmatmul.mubr.msk.f32.vlgmr.msra.gmra.mxu1 %vm1703_vm5, %v3732_v33 }
0x19ff   : > { %6490 = vmatprep.mubr.msk.f32.mxu1 %vm1703_vm5, %v3734_v35 }
0x1a02   : > { %6491 = vmatmul.mubr.msk.f32.gmra.mxu1 %vm1703_vm5, %v3736_v59 }
0x1a85   : > { %v7963_v32 = vpop.f32.mrf.mxu1 }
0x1a87   : > { %v7965_v30 = vpop.f32.mrf.mxu1 }
0x1aba   : > { %v7967_v34 = vpop.f32.mrf.mxu1 }
0x1abc   : > { %v7969_v62 = vpop.f32.mrf.mxu1 }
0x1abe   : > { %v6489_v52 = vpop.f32.mrf.mxu1 }
0x1abf   : > { %v3847_v53 = vmul.f32 0.35355338, %v6489_v52 }
0x1ac0   : > { %v3827_v56 = vpop.f32.mrf.mxu1 }
0x1ac1   : > { %v3846_v37 = vmul.f32 0.35355338, %v3827_v56  ;;  %v3853_v28 = vsel %vm1809_vm6, %v3847_v53, -inf }
0x1ac2   : > { %3854 = vmax.xlane.f32.xlu1 %v3853_v28  ;;  %v6492_v39 = vpop.f32.mrf.mxu1 }
0x1ac3   : > { %v3849_v40 = vmul.f32 0.35355338, %v6492_v39  ;;  %v3850_v17 = vsel %vm1809_vm6, %v3846_v37, -inf }
0x1ac4   : > { %3851 = vmax.xlane.f32.xlu0 %v3850_v17  ;;  %v3837_v41 = vpop.f32.mrf.mxu1 }
0x1ac5   : > { %v3848_v42 = vmul.f32 0.35355338, %v3837_v41  ;;  %v3859_v43 = vsel %vm1819_vm7, %v3849_v40, -inf }
0x1ac7   : > { %v3856_v44 = vsel %vm1809_vm6, %v3848_v42, -inf }
0x1ac8   : > { %3860 = vmax.xlane.f32.xlu0 %v3859_v43 }
0x1acc   : > { %3857 = vmax.xlane.f32.xlu0 %v3856_v44 }
0x1ad3   : > { %3898 = vrot.lane.b32.xlu1 %v7887_v16, %s7040_s25 }
0x1ad7   : > { %3896 = vrot.lane.b32.xlu1 %v7893_v18, %s7040_s25 }
0x1adb   : > { %3894 = vrot.lane.b32.xlu1 %v7881_v50, %s7040_s25 }
0x1ae2   : > { %3900 = vrot.lane.b32.xlu0 %v7885_v13, %s7040_s25 }
0x1b4b   : > { %v3855_v45 = vpop.xlane.xlu1 %3854 }
0x1b4c   : > { %v3863_v46 = vsub.f32 %v3847_v53, %v3855_v45 }
0x1b4d   : > { %v3852_v63 = vpop.xlane.xlu0 %3851 }
0x1b4e   : > { %v3868_v0 = vmul.f32 1.442695, %v3863_v46  ;;  %v3862_v2 = vsub.f32 %v3846_v37, %v3852_v63 }
0x1b4f   : > { %v3899_v5 = vpop.permute.xlu1 %3898 }
0x1b50   : > { %6896 = vpow2.f32 %v3868_v0  ;;  %v3866_v58 = vmul.f32 1.442695, %v3862_v2 }
0x1b51   : > { %v3861_v4 = vpop.xlane.xlu0 %3860 }
0x1b52   : > { %6898 = vpow2.f32 %v3866_v58  ;;  %v3865_v19 = vsub.f32 %v3849_v40, %v3861_v4 }
0x1b53   : > { %v3897_v7 = vpop.permute.xlu1 %3896 }
0x1b54   : > { %v3872_v1 = vmul.f32 1.442695, %v3865_v19 }
0x1b55   : > { %v3858_v6 = vpop.xlane.xlu0 %3857 }
0x1b56   : > { %v3864_v20 = vsub.f32 %v3848_v42, %v3858_v6  ;;  %6900 = vpow2.f32 %v3872_v1 }
0x1b57   : > { %v3895_v12 = vpop.permute.xlu1 %3894 }
0x1b58   : > { %v3870_v26 = vmul.f32 1.442695, %v3864_v20 }
0x1b59   : > { %v3901_v8 = vpop.permute.xlu0 %3900 }
0x1b5a   : > { %6493 = vmatprep.subr.msk.mxu0 %vm1878_vm8, %v3901_v8  ;;  %6902 = vpow2.f32 %v3870_v26 }
0x1b5b   : > { %6494 = vmatpush3.msk.msra.mxu0 %vm1878_vm8, %v3901_v8 }
0x1b5c   : > { %6495 = vmatprep.subr.mxu0 %v3899_v5 }
0x1b5d   : > { %v6897_v11 = vpop.eup %6896  ;;  %6496 = vmatpush3.msra.mxu0 %v3899_v5 }
0x1b5e   : > { %6497 = vmatprep.subr.mxu0 %v3897_v7  ;;  %v3877_v55 = vsel %vm1809_vm6, %v6897_v11, 0.0 }
0x1b5f   : > { %v6899_v49 = vpop.eup %6898  ;;  %3878 = vadd.xlane.f32.xlu1 %v3877_v55  ;;  %6498 = vmatpush3.msra.mxu0 %v3897_v7 }
0x1b60   : > { %6499 = vmatprep.subr.mxu0 %v3895_v12  ;;  %v3874_v24 = vsel %vm1809_vm6, %v6899_v49, 0.0 }
0x1b61   : > { %3875 = vadd.xlane.f32.xlu0 %v3874_v24  ;;  %6500 = vmatpush3.msra.mxu0 %v3895_v12 }
0x1b63   : > { %v6901_v22 = vpop.eup %6900 }
0x1b64   : > { %v3883_v57 = vsel %vm1819_vm7, %v6901_v22, 0.0 }
0x1b67   : > { %v6903_v23 = vpop.eup %6902 }
0x1b68   : > { %v3880_v48 = vsel %vm1809_vm6, %v6903_v23, 0.0 }
0x1b70   : > { %4016 = vrot.lane.b32.xlu1 %v7887_v16, %s7041_s26 }
0x1b77   : > { %4018 = vrot.lane.b32.xlu0 %v7885_v13, %s7041_s26 }
0x1b94   : > { %3884 = vadd.xlane.f32.xlu1 %v3883_v57 }
0x1b96   : > { %3881 = vadd.xlane.f32.xlu0 %v3880_v48 }
0x1ba5   : > { %4012 = vrot.lane.b32.xlu1 %v7881_v50, %s7041_s26 }
0x1ba9   : > { %4006 = vrot.lane.b32.xlu1 %v7893_v18, %s7042_s27 }
0x1bac   : > { %4014 = vrot.lane.b32.xlu0 %v7893_v18, %s7041_s26 }
0x1bad   : > { %4010 = vrot.lane.b32.xlu1 %v7885_v13, %s7042_s27 }
0x1bb0   : > { %4004 = vrot.lane.b32.xlu0 %v7881_v50, %s7042_s27 }
0x1bb4   : > { %4008 = vrot.lane.b32.xlu0 %v7887_v16, %s7042_s27 }
0x1be8   : > { %v3879_v60 = vpop.xlane.xlu1 %3878 }
0x1be9   : > { %6904 = vrcp.f32 %v3879_v60 }
0x1bea   : > { %v3876_v25 = vpop.xlane.xlu0 %3875 }
0x1beb   : > { %6906 = vrcp.f32 %v3876_v25 }
0x1bec   : > { %v4017_v53 = vpop.permute.xlu1 %4016 }
0x1bee   : > { %v4019_v31 = vpop.permute.xlu0 %4018 }
0x1bef   : > { %6507 = vmatprep.subr.msk.mxu0 %vm1703_vm5, %v4019_v31 }
0x1bf6   : > { %v6905_v33 = vpop.eup %6904 }
0x1bf7   : > { %v3891_v52 = vmul.f32 %v6905_v33, %v6897_v11 }
0x1bf8   : > { %v6907_v35 = vpop.eup %6906 }
0x1bf9   : > { %v3890_v59 = vmul.f32 %v6907_v35, %v6899_v49 }
0x1bfb   : > { %6501 = vmatprep.mubr.msk.f32.mxu0 %vm1809_vm6, %v3890_v59 }
0x1bfc   : > { %6502 = vmatmul.mubr.msk.f32.vlgmr.msra.gmra.mxu0 %vm1809_vm6, %v3891_v52 }
0x1bfd   : > { %6508 = vmatpush3.xpose.msk.msra.mxu0 %vm1703_vm5, %v4019_v31 }
0x1bfe   : > { %6509 = vmatprep.subr.msk.mxu0 %vm1703_vm5, %v4017_v53 }
0x1c01   : > { %6510 = vmatpush3.xpose.msk.msra.mxu0 %vm1703_vm5, %v4017_v53 }
0x1c1d   : > { %v3885_v56 = vpop.xlane.xlu1 %3884 }
0x1c1e   : > { %6908 = vrcp.f32 %v3885_v56 }
0x1c1f   : > { %v3882_v37 = vpop.xlane.xlu0 %3881 }
0x1c20   : > { %6910 = vrcp.f32 %v3882_v37 }
0x1c21   : > { %v4013_v39 = vpop.permute.xlu1 %4012 }
0x1c23   : > { %v4015_v28 = vpop.permute.xlu0 %4014 }
0x1c24   : > { %6511 = vmatprep.subr.msk.mxu0 %vm1703_vm5, %v4015_v28 }
0x1c25   : > { %6512 = vmatpush3.xpose.msk.msra.mxu0 %vm1703_vm5, %v4015_v28  ;;  %v4007_v44 = vpop.permute.xlu1 %4006 }
0x1c26   : > { %6513 = vmatprep.subr.msk.mxu0 %vm1703_vm5, %v4013_v39 }
0x1c27   : > { %v4005_v42 = vpop.permute.xlu0 %4004 }
0x1c29   : > { %6514 = vmatpush3.xpose.msk.msra.mxu0 %vm1703_vm5, %v4013_v39  ;;  %v4011_v46 = vpop.permute.xlu1 %4010 }
0x1c2b   : > { %v6909_v40 = vpop.eup %6908  ;;  %v4009_v45 = vpop.permute.xlu0 %4008 }
0x1c2c   : > { %v3893_v43 = vmul.f32 %v6909_v40, %v6901_v22 }
0x1c2d   : > { %v6911_v17 = vpop.eup %6910 }
0x1c2e   : > { %v3892_v41 = vmul.f32 %v6911_v17, %v6903_v23 }
0x1c30   : > { %6504 = vmatprep.mubr.msk.f32.mxu0 %vm1809_vm6, %v3892_v41 }
0x1c31   : > { %6505 = vmatmul.mubr.msk.f32.gmra.mxu0 %vm1809_vm6, %v3893_v43 }
0x1c32   : > { %6515 = vmatprep.mubr.msk.f32.mxu0 %vm1703_vm5, %v4005_v42 }
0x1c35   : > { %6516 = vmatmul.mubr.msk.f32.vlgmr.msra.gmra.mxu0 %vm1703_vm5, %v4007_v44 }
0x1c36   : > { %6518 = vmatprep.mubr.msk.f32.mxu0 %vm1703_vm5, %v4009_v45 }
0x1c39   : > { %6519 = vmatmul.mubr.msk.f32.gmra.mxu0 %vm1703_vm5, %v4011_v46 }
0x1cbc   : > { %v8021_v63 = vpop.f32.mrf.mxu0 }
0x1cbe   : > { %v8023_v0 = vpop.f32.mrf.mxu0 }
0x1cf1   : > { %v8025_v2 = vpop.f32.mrf.mxu0 }
0x1cf3   : > { %v8027_v58 = vpop.f32.mrf.mxu0 }
0x1cf5   : > { %v6517_v4 = vpop.f32.mrf.mxu0 }
0x1cf6   : > { %v4122_v5 = vmul.f32 0.35355338, %v6517_v4 }
0x1cf7   : > { %v4102_v6 = vpop.f32.mrf.mxu0 }
0x1cf8   : > { %v4121_v7 = vmul.f32 0.35355338, %v4102_v6  ;;  %v4128_v8 = vsel %vm1809_vm6, %v4122_v5, -inf }
0x1cf9   : > { %4129 = vmax.xlane.f32.xlu1 %v4128_v8  ;;  %v6520_v11 = vpop.f32.mrf.mxu0 }
0x1cfa   : > { %v4124_v55 = vmul.f32 0.35355338, %v6520_v11  ;;  %v4125_v49 = vsel %vm1809_vm6, %v4121_v7, -inf }
0x1cfb   : > { %4126 = vmax.xlane.f32.xlu0 %v4125_v49  ;;  %v4112_v12 = vpop.f32.mrf.mxu0 }
0x1cfc   : > { %v4123_v24 = vmul.f32 0.35355338, %v4112_v12  ;;  %v4134_v19 = vsel %vm1819_vm7, %v4124_v55, -inf }
0x1cfe   : > { %v4131_v20 = vsel %vm1809_vm6, %v4123_v24, -inf }
0x1cff   : > { %4135 = vmax.xlane.f32.xlu0 %v4134_v19 }
0x1d03   : > { %4132 = vmax.xlane.f32.xlu0 %v4131_v20 }
0x1d0a   : > { %4173 = vrot.lane.b32.xlu1 %v7887_v16, %s7043_s28 }
0x1d0e   : > { %4171 = vrot.lane.b32.xlu1 %v7893_v18, %s7043_s28 }
0x1d12   : > { %4169 = vrot.lane.b32.xlu1 %v7881_v50, %s7043_s28 }
0x1d19   : > { %4175 = vrot.lane.b32.xlu0 %v7885_v13, %s7043_s28 }
0x1d82   : > { %v4130_v1 = vpop.xlane.xlu1 %4129 }
0x1d83   : > { %v4138_v26 = vsub.f32 %v4122_v5, %v4130_v1 }
0x1d84   : > { %v4127_v22 = vpop.xlane.xlu0 %4126 }
0x1d85   : > { %v4143_v23 = vmul.f32 1.442695, %v4138_v26  ;;  %v4137_v57 = vsub.f32 %v4121_v7, %v4127_v22 }
0x1d86   : > { %v4174_v25 = vpop.permute.xlu1 %4173 }
0x1d87   : > { %6912 = vpow2.f32 %v4143_v23  ;;  %v4141_v48 = vmul.f32 1.442695, %v4137_v57 }
0x1d88   : > { %v4136_v60 = vpop.xlane.xlu0 %4135 }
0x1d89   : > { %6914 = vpow2.f32 %v4141_v48  ;;  %v4140_v28 = vsub.f32 %v4124_v55, %v4136_v60 }
0x1d8a   : > { %v4172_v33 = vpop.permute.xlu1 %4171 }
0x1d8b   : > { %v4147_v40 = vmul.f32 1.442695, %v4140_v28 }
0x1d8c   : > { %v4133_v31 = vpop.xlane.xlu0 %4132 }
0x1d8d   : > { %v4139_v39 = vsub.f32 %v4123_v24, %v4133_v31  ;;  %6916 = vpow2.f32 %v4147_v40 }
0x1d8e   : > { %v4170_v56 = vpop.permute.xlu1 %4169 }
0x1d8f   : > { %v4145_v17 = vmul.f32 1.442695, %v4139_v39 }
0x1d90   : > { %v4176_v35 = vpop.permute.xlu0 %4175 }
0x1d91   : > { %6521 = vmatprep.subr.msk.mxu1 %vm1878_vm8, %v4176_v35  ;;  %6918 = vpow2.f32 %v4145_v17 }
0x1d92   : > { %6522 = vmatpush3.msk.msra.mxu1 %vm1878_vm8, %v4176_v35 }
0x1d93   : > { %6523 = vmatprep.subr.mxu1 %v4174_v25 }
0x1d94   : > { %v6913_v59 = vpop.eup %6912  ;;  %6524 = vmatpush3.msra.mxu1 %v4174_v25 }
0x1d95   : > { %6525 = vmatprep.subr.mxu1 %v4172_v33  ;;  %v4152_v52 = vsel %vm1809_vm6, %v6913_v59, 0.0 }
0x1d96   : > { %v6915_v53 = vpop.eup %6914  ;;  %4153 = vadd.xlane.f32.xlu1 %v4152_v52  ;;  %6526 = vmatpush3.msra.mxu1 %v4172_v33 }
0x1d97   : > { %6527 = vmatprep.subr.mxu1 %v4170_v56  ;;  %v4149_v37 = vsel %vm1809_vm6, %v6915_v53, 0.0 }
0x1d98   : > { %4150 = vadd.xlane.f32.xlu0 %v4149_v37  ;;  %6528 = vmatpush3.msra.mxu1 %v4170_v56 }
0x1d9a   : > { %v6917_v41 = vpop.eup %6916 }
0x1d9b   : > { %v4158_v43 = vsel %vm1819_vm7, %v6917_v41, 0.0 }
0x1d9e   : > { %v6919_v42 = vpop.eup %6918 }
0x1d9f   : > { %v4155_v44 = vsel %vm1809_vm6, %v6919_v42, 0.0 }
0x1da7   : > { %4291 = vrot.lane.b32.xlu1 %v7887_v16, %s7044_s29 }
0x1dae   : > { %4293 = vrot.lane.b32.xlu0 %v7885_v13, %s7044_s29 }
0x1dcb   : > { %4159 = vadd.xlane.f32.xlu1 %v4158_v43 }
0x1dcd   : > { %4156 = vadd.xlane.f32.xlu0 %v4155_v44 }
0x1ddc   : > { %4287 = vrot.lane.b32.xlu1 %v7881_v50, %s7044_s29 }
0x1de0   : > { %4281 = vrot.lane.b32.xlu1 %v7893_v18, %s7045_s30 }
0x1de3   : > { %4289 = vrot.lane.b32.xlu0 %v7893_v18, %s7044_s29 }
0x1de4   : > { %4285 = vrot.lane.b32.xlu1 %v7885_v13, %s7045_s30 }
0x1de7   : > { %4279 = vrot.lane.b32.xlu0 %v7881_v50, %s7045_s30 }
0x1deb   : > { %4283 = vrot.lane.b32.xlu0 %v7887_v16, %s7045_s30  ;;  %s7051_s30 = smov [#allocation4]  }
0x1e1f   : > { %v4154_v45 = vpop.xlane.xlu1 %4153 }
0x1e20   : > { %6920 = vrcp.f32 %v4154_v45 }
0x1e21   : > { %v4151_v46 = vpop.xlane.xlu0 %4150 }
0x1e22   : > { %6922 = vrcp.f32 %v4151_v46 }
0x1e23   : > { %v4292_v11 = vpop.permute.xlu1 %4291 }
0x1e25   : > { %v4294_v4 = vpop.permute.xlu0 %4293 }
0x1e26   : > { %6535 = vmatprep.subr.msk.mxu1 %vm1703_vm5, %v4294_v4 }
0x1e2d   : > { %v6921_v5 = vpop.eup %6920 }
0x1e2e   : > { %v4166_v8 = vmul.f32 %v6921_v5, %v6913_v59 }
0x1e2f   : > { %v6923_v6 = vpop.eup %6922 }
0x1e30   : > { %v4165_v7 = vmul.f32 %v6923_v6, %v6915_v53 }
0x1e32   : > { %6529 = vmatprep.mubr.msk.f32.mxu1 %vm1809_vm6, %v4165_v7 }
0x1e33   : > { %6530 = vmatmul.mubr.msk.f32.vlgmr.msra.gmra.mxu1 %vm1809_vm6, %v4166_v8 }
0x1e34   : > { %6536 = vmatpush3.xpose.msk.msra.mxu1 %vm1703_vm5, %v4294_v4 }
0x1e35   : > { %6537 = vmatprep.subr.msk.mxu1 %vm1703_vm5, %v4292_v11 }
0x1e38   : > { %6538 = vmatpush3.xpose.msk.msra.mxu1 %vm1703_vm5, %v4292_v11 }
0x1e54   : > { %v4160_v55 = vpop.xlane.xlu1 %4159 }
0x1e55   : > { %6924 = vrcp.f32 %v4160_v55 }
0x1e56   : > { %v4157_v49 = vpop.xlane.xlu0 %4156 }
0x1e57   : > { %6926 = vrcp.f32 %v4157_v49 }
0x1e58   : > { %v4288_v24 = vpop.permute.xlu1 %4287 }
0x1e5a   : > { %v4290_v12 = vpop.permute.xlu0 %4289 }
0x1e5b   : > { %6539 = vmatprep.subr.msk.mxu1 %vm1703_vm5, %v4290_v12 }
0x1e5c   : > { %6540 = vmatpush3.xpose.msk.msra.mxu1 %vm1703_vm5, %v4290_v12  ;;  %v4282_v23 = vpop.permute.xlu1 %4281 }
0x1e5d   : > { %6541 = vmatprep.subr.msk.mxu1 %vm1703_vm5, %v4288_v24 }
0x1e5e   : > { %v4280_v26 = vpop.permute.xlu0 %4279 }
0x1e60   : > { %6542 = vmatpush3.xpose.msk.msra.mxu1 %vm1703_vm5, %v4288_v24  ;;  %v4286_v48 = vpop.permute.xlu1 %4285 }
0x1e62   : > { %v6925_v19 = vpop.eup %6924  ;;  %v4284_v57 = vpop.permute.xlu0 %4283 }
0x1e63   : > { %v4168_v22 = vmul.f32 %v6925_v19, %v6917_v41 }
0x1e64   : > { %v6927_v20 = vpop.eup %6926 }
0x1e65   : > { %v4167_v1 = vmul.f32 %v6927_v20, %v6919_v42 }
0x1e67   : > { %6532 = vmatprep.mubr.msk.f32.mxu1 %vm1809_vm6, %v4167_v1 }
0x1e68   : > { %6533 = vmatmul.mubr.msk.f32.gmra.mxu1 %vm1809_vm6, %v4168_v22 }
0x1e69   : > { %6543 = vmatprep.mubr.msk.f32.mxu1 %vm1703_vm5, %v4280_v26 }
0x1e6c   : > { %6544 = vmatmul.mubr.msk.f32.vlgmr.msra.gmra.mxu1 %vm1703_vm5, %v4282_v23 }
0x1e6d   : > { %6546 = vmatprep.mubr.msk.f32.mxu1 %vm1703_vm5, %v4284_v57 }
0x1e70   : > { %6547 = vmatmul.mubr.msk.f32.gmra.mxu1 %vm1703_vm5, %v4286_v48 }
0x1ef3   : > { %v6531_v60 = vpop.f32.mrf.mxu1 }
0x1ef5   : > { %v4260_v25 = vpop.f32.mrf.mxu1 }
0x1f28   : > { %v6534_v31 = vpop.f32.mrf.mxu1 }
0x1f2a   : > { %v4270_v33 = vpop.f32.mrf.mxu1 }
0x1f2c   : > { %v6545_v35 = vpop.f32.mrf.mxu1 }
0x1f2d   : > { %v4397_v59 = vmul.f32 0.35355338, %v6545_v35 }
0x1f2e   : > { %v4377_v52 = vpop.f32.mrf.mxu1 }
0x1f2f   : > { %v4396_v53 = vmul.f32 0.35355338, %v4377_v52  ;;  %v4403_v56 = vsel %vm1809_vm6, %v4397_v59, -inf  ;;  %v4617_v52 = vld [vmem:[%s8411_s2 + $0x1e8] sm:$0xff] }
0x1f30   : > { %4404 = vmax.xlane.f32.xlu1 %v4403_v56  ;;  %v6548_v37 = vpop.f32.mrf.mxu1  ;;  %v4615_v56 = vld [vmem:[%s8411_s2 + $0x1d8] sm:$0xff] }
0x1f31   : > { %v4400_v28 = vsel %vm1809_vm6, %v4396_v53, -inf  ;;  %v4399_v17 = vmul.f32 0.35355338, %v6548_v37  ;;  %v4614_v37 = vld [vmem:[%s8411_s2 + $0x1d0] sm:$0xff] }
0x1f32   : > { %4401 = vmax.xlane.f32.xlu0 %v4400_v28  ;;  %v4387_v39 = vpop.f32.mrf.mxu1 }
0x1f33   : > { %v4398_v40 = vmul.f32 0.35355338, %v4387_v39  ;;  %v4409_v42 = vsel %vm1819_vm7, %v4399_v17, -inf }
0x1f35   : > { %v4406_v41 = vsel %vm1809_vm6, %v4398_v40, -inf }
0x1f36   : > { %4407 = vmax.xlane.f32.xlu0 %v4406_v41 }
0x1f3a   : > { %4410 = vmax.xlane.f32.xlu0 %v4409_v42 }
0x1fb9   : > { %v4405_v43 = vpop.xlane.xlu1 %4404 }
0x1fba   : > { %v4413_v44 = vsub.f32 %v4397_v59, %v4405_v43 }
0x1fbb   : > { %v4402_v45 = vpop.xlane.xlu0 %4401 }
0x1fbc   : > { %v4418_v46 = vmul.f32 1.442695, %v4413_v44  ;;  %v4412_v4 = vsub.f32 %v4396_v53, %v4402_v45  ;;  %v4616_v53 = vld [vmem:[%s8411_s2 + $0x1e0] sm:$0xff] }
0x1fbe   : > { %6928 = vpow2.f32 %v4418_v46  ;;  %v4416_v5 = vmul.f32 1.442695, %v4412_v4 }
0x1fbf   : > { %v4408_v6 = vpop.xlane.xlu0 %4407 }
0x1fc0   : > { %6930 = vpow2.f32 %v4416_v5  ;;  %v4414_v7 = vsub.f32 %v4398_v40, %v4408_v6 }
0x1fc2   : > { %v4420_v8 = vmul.f32 1.442695, %v4414_v7 }
0x1fc3   : > { %v4411_v11 = vpop.xlane.xlu0 %4410 }
0x1fc4   : > { %6932 = vpow2.f32 %v4420_v8  ;;  %v4415_v55 = vsub.f32 %v4399_v17, %v4411_v11 }
0x1fc6   : > { %v4422_v49 = vmul.f32 1.442695, %v4415_v55 }
0x1fc8   : > { %6934 = vpow2.f32 %v4422_v49 }
0x1fcb   : > { %v6929_v12 = vpop.eup %6928 }
0x1fcc   : > { %v4427_v24 = vsel %vm1809_vm6, %v6929_v12, 0.0 }
0x1fcd   : > { %v6931_v19 = vpop.eup %6930  ;;  %4428 = vadd.xlane.f32.xlu1 %v4427_v24 }
0x1fce   : > { %v4424_v20 = vsel %vm1809_vm6, %v6931_v19, 0.0 }
0x1fcf   : > { %4425 = vadd.xlane.f32.xlu0 %v4424_v20 }
0x1fd1   : > { %v6933_v1 = vpop.eup %6932 }
0x1fd2   : > { %v4430_v26 = vsel %vm1809_vm6, %v6933_v1, 0.0 }
0x1fd3   : > { %4431 = vadd.xlane.f32.xlu0 %v4430_v26 }
0x1fd5   : > { %v6935_v22 = vpop.eup %6934 }
0x1fd6   : > { %v4433_v23 = vsel %vm1819_vm7, %v6935_v22, 0.0 }
0x1fd7   : > { %4434 = vadd.xlane.f32.xlu1 %v4433_v23 }
0x1fe8   : > { %4448 = vrot.lane.b32.xlu1 %v7887_v16, %s8423_s17 }
0x1fe9   : > { %4450 = vrot.lane.b32.xlu0 %v7885_v13, %s8423_s17 }
0x1fec   : > { %4446 = vrot.lane.b32.xlu1 %v7893_v18, %s8423_s17 }
0x1fed   : > { %4558 = vrot.lane.b32.xlu0 %v8023_v0, %s8424_s19 }
0x1ff0   : > { %4444 = vrot.lane.b32.xlu1 %v7881_v50, %s8423_s17  ;;  %s161_s17 = sand.u32 1, %s7025_s13  }
0x1ff1   : > { %4574 = vrot.lane.b32.xlu0 %v4260_v25, %s8425_s20  ;;  %s5561_s28 = scalar_lea.sflag [#allocation5], %s161_s17 }
0x1ff4   : > { %4560 = vrot.lane.b32.xlu1 %v8021_v63, %s8424_s19 }
0x1ff5   : > { %4562 = vrot.lane.b32.xlu0 %v8027_v58, %s8424_s19 }
0x1ff8   : > { %4576 = vrot.lane.b32.xlu1 %v6531_v60, %s8425_s20 }
0x1ff9   : > { %4578 = vrot.lane.b32.xlu0 %v4270_v33, %s8425_s20 }
0x1ffc   : > { %4564 = vrot.lane.b32.xlu1 %v8025_v2, %s8424_s19  ;;  %s5821_s19 = sshll.u32 %s7093_s16, 4  ;;  %s6977_s16 = sshll.u32 %s7051_s30, 4  ;;  %s6978_s16 = int_to_ptr.vmem [resolvable:$false] %s6977_s16 }
0x1ffd   : > { %s8374_s27 = scalar_lea.hbm %s8412_s3, %s5821_s19  ;;  %s6979_s8 = scalar_lea.vmem %s6978_s16, 32 }
0x2000   : > { %4580 = vrot.lane.b32.xlu1 %v6534_v31, %s8425_s20 }
0x2056   : > { %v4429_v50 = vpop.xlane.xlu1 %4428 }
0x2058   : > { %v4426_v13 = vpop.xlane.xlu0 %4425 }
0x2059   : > { %6936 = vrcp.f32 %v4426_v13 }
0x205a   : > { %6938 = vrcp.f32 %v4429_v50 }
0x205c   : > { %v4432_v16 = vpop.xlane.xlu0 %4431 }
0x205d   : > { %6940 = vrcp.f32 %v4432_v16 }
0x2060   : > { %v4435_v18 = vpop.xlane.xlu1 %4434  ;;  %v4451_v63 = vpop.permute.xlu0 %4450 }
0x2061   : > { %6942 = vrcp.f32 %v4435_v18  ;;  %6549 = vmatprep.subr.msk.mxu0 %vm1878_vm8, %v4451_v63 }
0x2062   : > { %6550 = vmatpush3.msk.msra.mxu0 %vm1878_vm8, %v4451_v63 }
0x2064   : > { %v4449_v0 = vpop.permute.xlu1 %4448  ;;  %v4559_v42 = vpop.permute.xlu0 %4558 }
0x2065   : > { %6551 = vmatprep.subr.mxu0 %v4449_v0  ;;  %v4602_v7 = vsel %vm1703_vm5, %v7965_v30, %v4559_v42 }
0x2066   : > { %v6937_v58 = vpop.eup %6936  ;;  %6552 = vmatpush3.msra.mxu0 %v4449_v0 }
0x2067   : > { %v4440_v2 = vmul.f32 %v6937_v58, %v6931_v19  ;;  %v6939_v48 = vpop.eup %6938 }
0x2068   : > { %v4447_v57 = vpop.permute.xlu1 %4446  ;;  %v4441_v31 = vmul.f32 %v6939_v48, %v6929_v12  ;;  %v4575_v44 = vpop.permute.xlu0 %4574 }
0x2069   : > { %6553 = vmatprep.subr.mxu0 %v4447_v57  ;;  %6557 = vmatprep.mubr.msk.f32.mxu0 %vm1809_vm6, %v4440_v2  ;;  %v4606_v8 = vsel %vm2843_vm9, %v4602_v7, %v4575_v44  ;;  %v4791_v7 = vld [vmem:[%s8411_s2 + $0x1f0] sm:$0xff] }
0x206a   : > { %6554 = vmatpush3.msra.mxu0 %v4447_v57  ;;  %v6941_v60 = vpop.eup %6940 }
0x206b   : > { %v4442_v35 = vmul.f32 %v6941_v60, %v6933_v1 }
0x206c   : > { %v4445_v25 = vpop.permute.xlu1 %4444  ;;  %v4563_v46 = vpop.permute.xlu0 %4562 }
0x206d   : > { %6555 = vmatprep.subr.mxu0 %v4445_v25  ;;  %v4604_v19 = vsel %vm1703_vm5, %v7969_v62, %v4563_v46  ;;  %v4621_v62 = vrot.slane %v7877_v36, %v7196_v29 }
0x206e   : > { %v6943_v33 = vpop.eup %6942  ;;  %6556 = vmatpush3.msra.mxu0 %v4445_v25 }
0x206f   : > { %6558 = vmatmul.mubr.msk.f32.vlgmr.msra.gmra.mxu0 %vm1809_vm6, %v4441_v31  ;;  %v4443_v59 = vmul.f32 %v6943_v33, %v6935_v22  ;;  %6563 = vmatprep.subr.mxu0 %v4617_v52 }
0x2070   : > { %6560 = vmatprep.mubr.msk.f32.mxu0 %vm1809_vm6, %v4442_v35  ;;  %6564 = vmatpush3.msra.mxu0 %v4617_v52  ;;  %v4561_v41 = vpop.permute.xlu1 %4560  ;;  %v4579_v5 = vpop.permute.xlu0 %4578 }
0x2071   : > { %6565 = vmatprep.subr.mxu0 %v4616_v53  ;;  %v4603_v11 = vsel %vm1703_vm5, %v7963_v32, %v4561_v41  ;;  %v4608_v30 = vsel %vm2843_vm9, %v4604_v19, %v4579_v5  ;;  %v4793_v5 = vld [vmem:[%s8411_s2 + $0x200] sm:$0xff] }
0x2072   : > { %6566 = vmatpush3.msra.mxu0 %v4616_v53 }
0x2073   : > { %6561 = vmatmul.mubr.msk.f32.gmra.mxu0 %vm1809_vm6, %v4443_v59  ;;  %6567 = vmatprep.subr.mxu0 %v4615_v56 }
0x2074   : > { %6568 = vmatpush3.msra.mxu0 %v4615_v56  ;;  %v4577_v43 = vpop.permute.xlu1 %4576 }
0x2075   : > { %6569 = vmatprep.subr.mxu0 %v4614_v37  ;;  %v4607_v49 = vsel %vm2843_vm9, %v4603_v11, %v4577_v43 }
0x2076   : > { %6570 = vmatpush3.msra.mxu0 %v4614_v37 }
0x2078   : > { %v4565_v45 = vpop.permute.xlu1 %4564 }
0x2079   : > { %v4605_v32 = vsel %vm1703_vm5, %v7967_v34, %v4565_v45 }
0x207c   : > { %v4581_v4 = vpop.permute.xlu1 %4580 }
0x207d   : > { %v4609_v26 = vsel %vm2843_vm9, %v4605_v32, %v4581_v4  ;;  %v4794_v4 = vld [vmem:[%s8411_s2 + $0x208] sm:$0xff] }
0x207e   : > { %6577 = vmatprep.subr.mxu1 %v4794_v4 }
0x207f   : > { %6578 = vmatpush3.msra.mxu1 %v4794_v4 }
0x2080   : > { %6579 = vmatprep.subr.mxu1 %v4793_v5 }
0x2081   : > { %6580 = vmatpush3.msra.mxu1 %v4793_v5 }
0x212f   : > { %v6559_v28 = vpop.f32.mrf.mxu0 }
0x2130   : > { %4592 = vrot.lane.b32.xlu1 %v6559_v28, %s8426_s9 }
0x2131   : > { %v4535_v39 = vpop.f32.mrf.mxu0 }
0x2132   : > { %4590 = vrot.lane.b32.xlu0 %v4535_v39, %s8426_s9 }
0x2133   : > { %v6562_v40 = vpop.f32.mrf.mxu0 }
0x2134   : > { %4596 = vrot.lane.b32.xlu1 %v6562_v40, %s8426_s9 }
0x2135   : > { %v4545_v17 = vpop.f32.mrf.mxu0 }
0x2136   : > { %4594 = vrot.lane.b32.xlu0 %v4545_v17, %s8426_s9 }
0x21a2   : > { %v4593_v6 = vpop.permute.xlu1 %4592 }
0x21a3   : > { %v4611_v24 = vsel %vm2848_vm10, %v4607_v49, %v4593_v6  ;;  %v4792_v6 = vld [vmem:[%s8411_s2 + $0x1f8] sm:$0xff] }
0x21a4   : > { %v4591_v55 = vpop.permute.xlu0 %4590  ;;  %6581 = vmatprep.subr.mxu1 %v4792_v6 }
0x21a5   : > { %v4610_v12 = vsel %vm2848_vm10, %v4606_v8, %v4591_v55  ;;  %6582 = vmatpush3.msra.mxu1 %v4792_v6 }
0x21a6   : > { %6571 = vmatprep.mubr.msk.f32.mxu0 %vm316_vm2, %v4610_v12  ;;  %v4597_v20 = vpop.permute.xlu1 %4596  ;;  %6583 = vmatprep.subr.mxu1 %v4791_v7 }
0x21a7   : > { %6572 = vmatmul.mubr.msk.f32.vlgmr.msra.gmra.mxu0 %vm316_vm2, %v4611_v24  ;;  %v4613_v23 = vsel %vm2848_vm10, %v4609_v26, %v4597_v20  ;;  %6584 = vmatpush3.msra.mxu1 %v4791_v7 }
0x21a8   : > { %v4595_v1 = vpop.permute.xlu0 %4594 }
0x21a9   : > { %v4612_v22 = vsel %vm2848_vm10, %v4608_v30, %v4595_v1 }
0x21aa   : > { %6574 = vmatprep.mubr.msk.f32.mxu0 %vm316_vm2, %v4612_v22 }
0x21ab   : > { %6575 = vmatmul.mubr.msk.f32.gmra.mxu0 %vm316_vm2, %v4613_v23  ;;  %v8178_v23 = vld [vmem:[%s8410_s1 + $0x10] sm:$0xff] }
0x2267   : > { %v6573_v13 = vpop.f32.mrf.mxu0 }
0x2268   : > { %v4706_v50 = vadd.f32 %v6573_v13, %v4621_v62 }
0x2269   : > { %v4700_v16 = vpop.f32.mrf.mxu0 }
0x226a   : > { %v4720_v18 = vadd.f32 %v4706_v50, %v7860_v3  ;;  %v4701_v34 = vadd.f32 %v4700_v16, %v4621_v62 }
0x226b   : > { %v6576_v63 = vpop.f32.mrf.mxu0 }
0x226c   : > { %v4719_v0 = vadd.f32 %v4701_v34, %v7858_v21  ;;  %v4726_v58 = vsel %vm316_vm2, %v4720_v18, 0.0  ;;  %v4716_v57 = vadd.f32 %v6576_v63, %v4621_v62  ;;  %v4786_v34 = vrot.slane %v8178_v23, %v7331_v15 }
0x226d   : > { %4727 = vadd.xlane.f32.xlu1 %v4726_v58  ;;  %v4710_v2 = vpop.f32.mrf.mxu0 }
0x226e   : > { %v4711_v48 = vadd.f32 %v4710_v2, %v4621_v62  ;;  %v4723_v60 = vsel %vm316_vm2, %v4719_v0, 0.0  ;;  %v4722_v25 = vadd.f32 %v4716_v57, %v7868_v61  ;;  %v4778_v62 = vrot.slane %v8178_v23, %v7328_v14 }
0x226f   : > { %4724 = vadd.xlane.f32.xlu0 %v4723_v60 }
0x2270   : > { %v4721_v36 = vadd.f32 %v4711_v48, %v7866_v9  ;;  %v4732_v3 = vsel %vm981_vm4, %v4722_v25, 0.0 }
0x2272   : > { %v4729_v31 = vsel %vm316_vm2, %v4721_v36, 0.0 }
0x2273   : > { %4730 = vadd.xlane.f32.xlu0 %v4729_v31  ;;  %v4939_v31 = vld [vmem:[%s8411_s2 + $0x248] sm:$0xff] }
0x2274   : > { %6591 = vmatprep.subr.mxu0 %v4939_v31 }
0x2275   : > { %6592 = vmatpush3.msra.mxu0 %v4939_v31  ;;  %v4943_v31 = vrot.slane %v8178_v23, %v7420_v51 }
0x2277   : > { %4733 = vadd.xlane.f32.xlu0 %v4732_v3  ;;  %v4938_v3 = vld [vmem:[%s8411_s2 + $0x240] sm:$0xff] }
0x2278   : > { %6593 = vmatprep.subr.mxu0 %v4938_v3 }
0x2279   : > { %6594 = vmatpush3.msra.mxu0 %v4938_v3 }
0x22f6   : > { %v4728_v21 = vpop.xlane.xlu1 %4727 }
0x22f7   : > { %v4736_v33 = vmul.f32 0.03125, %v4728_v21  ;;  %v4937_v21 = vld [vmem:[%s8411_s2 + $0x238] sm:$0xff] }
0x22f8   : > { %v4725_v35 = vpop.xlane.xlu0 %4724  ;;  %6595 = vmatprep.subr.mxu0 %v4937_v21 }
0x22f9   : > { %v4740_v59 = vsub.f32 %v4720_v18, %v4736_v33  ;;  %v4735_v52 = vmul.f32 0.03125, %v4725_v35  ;;  %6596 = vmatpush3.msra.mxu0 %v4937_v21  ;;  %v4936_v33 = vld [vmem:[%s8411_s2 + $0x230] sm:$0xff]  ;;  %v4935_v35 = vld [vmem:[%s8411_s2 + $0x228] sm:$0xff] }
0x22fa   : > { %6597 = vmatprep.subr.mxu0 %v4936_v33 }
0x22fb   : > { %v4739_v53 = vsub.f32 %v4719_v0, %v4735_v52  ;;  %v4744_v56 = vmul.f32 %v4740_v59, %v4740_v59  ;;  %6598 = vmatpush3.msra.mxu0 %v4936_v33  ;;  %v4933_v52 = vld [vmem:[%s8411_s2 + $0x218] sm:$0xff] }
0x22fc   : > { %v4731_v37 = vpop.xlane.xlu0 %4730  ;;  %6599 = vmatprep.subr.mxu0 %v4935_v35 }
0x22fd   : > { %v4737_v28 = vmul.f32 0.03125, %v4731_v37  ;;  %v4750_v39 = vsel %vm316_vm2, %v4744_v56, 0.0  ;;  %v4743_v9 = vmul.f32 %v4739_v53, %v4739_v53  ;;  %6600 = vmatpush3.msra.mxu0 %v4935_v35  ;;  %v4798_v56 = vrot.slane %v8178_v23, %v7374_v47 }
0x22fe   : > { %4751 = vadd.xlane.f32.xlu1 %v4750_v39 }
0x22ff   : > { %v4741_v61 = vsub.f32 %v4721_v36, %v4737_v28  ;;  %v4747_v40 = vsel %vm316_vm2, %v4743_v9, 0.0 }
0x2300   : > { %4748 = vadd.xlane.f32.xlu0 %v4747_v40  ;;  %v4734_v17 = vpop.xlane.xlu0 %4733 }
0x2301   : > { %v4738_v41 = vmul.f32 0.03125, %v4734_v17  ;;  %v4745_v42 = vmul.f32 %v4741_v61, %v4741_v61 }
0x2303   : > { %v4742_v43 = vsub.f32 %v4722_v25, %v4738_v41  ;;  %v4753_v44 = vsel %vm316_vm2, %v4745_v42, 0.0 }
0x2304   : > { %4754 = vadd.xlane.f32.xlu0 %v4753_v44 }
0x2305   : > { %v4746_v45 = vmul.f32 %v4742_v43, %v4742_v43 }
0x2307   : > { %v4756_v46 = vsel %vm981_vm4, %v4746_v45, 0.0 }
0x2308   : > { %4757 = vadd.xlane.f32.xlu1 %v4756_v46 }
0x2387   : > { %v4752_v8 = vpop.xlane.xlu1 %4751 }
0x2388   : > { %v4760_v11 = vmul.f32 0.03125, %v4752_v8 }
0x2389   : > { %v4749_v55 = vpop.xlane.xlu0 %4748 }
0x238a   : > { %v4764_v49 = vadd.f32 1e-05, %v4760_v11  ;;  %v4759_v12 = vmul.f32 0.03125, %v4749_v55 }
0x238c   : > { %6944 = vrsqrt.f32 %v4764_v49  ;;  %v4763_v24 = vadd.f32 1e-05, %v4759_v12 }
0x238d   : > { %v4755_v19 = vpop.xlane.xlu0 %4754 }
0x238e   : > { %6946 = vrsqrt.f32 %v4763_v24  ;;  %v4761_v20 = vmul.f32 0.03125, %v4755_v19 }
0x2390   : > { %v4765_v30 = vadd.f32 1e-05, %v4761_v20 }
0x2391   : > { %v4758_v32 = vpop.xlane.xlu1 %4757 }
0x2392   : > { %6948 = vrsqrt.f32 %v4765_v30  ;;  %v4762_v1 = vmul.f32 0.03125, %v4758_v32 }
0x2394   : > { %v4766_v26 = vadd.f32 1e-05, %v4762_v1 }
0x2396   : > { %6950 = vrsqrt.f32 %v4766_v26 }
0x2399   : > { %v6945_v22 = vpop.eup %6944 }
0x239a   : > { %v4772_v13 = vmul.f32 %v6945_v22, %v4740_v59  ;;  %v4934_v59 = vld [vmem:[%s8411_s2 + $0x220] sm:$0xff] }
0x239b   : > { %v6947_v50 = vpop.eup %6946  ;;  %6601 = vmatprep.subr.mxu0 %v4934_v59 }
0x239c   : > { %v4771_v16 = vmul.f32 %v6947_v50, %v4739_v53  ;;  %v4780_v18 = vmul.f32 %v4778_v62, %v4772_v13  ;;  %6602 = vmatpush3.msra.mxu0 %v4934_v59  ;;  %v4932_v53 = vld [vmem:[%s8411_s2 + $0x210] sm:$0xff] }
0x239d   : > { %6603 = vmatprep.subr.mxu0 %v4933_v52 }
0x239e   : > { %v4779_v63 = vmul.f32 %v4778_v62, %v4771_v16  ;;  %v8186_v57 = vadd.f32 %v4786_v34, %v4780_v18  ;;  %6604 = vmatpush3.msra.mxu0 %v4933_v52 }
0x239f   : > { %v6949_v0 = vpop.eup %6948  ;;  %6605 = vmatprep.subr.mxu0 %v4932_v53 }
0x23a0   : > { %v8184_v58 = vadd.f32 %v4786_v34, %v4779_v63  ;;  %v4773_v2 = vmul.f32 %v6949_v0, %v4741_v61  ;;  %6606 = vmatpush3.msra.mxu0 %v4932_v53 }
0x23a1   : > { %6649 = vmatprep.subr.mxu0 %v7035_v38 }
0x23a2   : > { %6585 = vmatprep.mubr.msk.f32.mxu1 %vm316_vm2, %v8184_v58  ;;  %v4781_v48 = vmul.f32 %v4778_v62, %v4773_v2 }
0x23a3   : > { %v6951_v60 = vpop.eup %6950  ;;  %6586 = vmatmul.mubr.msk.f32.vlgmr.msra.gmra.mxu1 %vm316_vm2, %v8186_v57 }
0x23a4   : > { %v8192_v14 = vadd.f32 %v4786_v34, %v4781_v48  ;;  %v4774_v36 = vmul.f32 %v6951_v60, %v4742_v43 }
0x23a6   : > { %6588 = vmatprep.mubr.msk.f32.mxu1 %vm316_vm2, %v8192_v14  ;;  %v4782_v15 = vmul.f32 %v4778_v62, %v4774_v36 }
0x23a8   : > { %v8196_v25 = vadd.f32 %v4786_v34, %v4782_v15 }
0x23aa   : > { %6589 = vmatmul.mubr.msk.f32.gmra.mxu1 %vm316_vm2, %v8196_v25 }
0x2463   : > { %v6587_v37 = vpop.f32.mrf.mxu1 }
0x2464   : > { %v4883_v28 = vadd.f32 %v6587_v37, %v4798_v56 }
0x2465   : > { %v4877_v39 = vpop.f32.mrf.mxu1 }
0x2466   : > { %v4897_v9 = vmul.f32 %v4883_v28, %v4883_v28  ;;  %v4878_v61 = vadd.f32 %v4877_v39, %v4798_v56 }
0x2468   : > { %v4901_v40 = vmul.f32 %v4897_v9, %v4883_v28  ;;  %v4896_v17 = vmul.f32 %v4878_v61, %v4878_v61 }
0x246a   : > { %v4905_v41 = vmul.f32 0.044715, %v4901_v40  ;;  %v4900_v42 = vmul.f32 %v4896_v17, %v4878_v61  ;;  %v6590_v43 = vpop.f32.mrf.mxu1 }
0x246b   : > { %v4893_v44 = vadd.f32 %v6590_v43, %v4798_v56 }
0x246c   : > { %v4909_v45 = vadd.f32 %v4905_v41, %v4883_v28  ;;  %v4904_v46 = vmul.f32 0.044715, %v4900_v42  ;;  %v4887_v4 = vpop.f32.mrf.mxu1 }
0x246d   : > { %v4899_v5 = vmul.f32 %v4893_v44, %v4893_v44  ;;  %v4888_v6 = vadd.f32 %v4887_v4, %v4798_v56 }
0x246e   : > { %v4913_v7 = vmul.f32 0.7978846, %v4909_v45  ;;  %v4908_v8 = vadd.f32 %v4904_v46, %v4878_v61 }
0x246f   : > { %v4903_v11 = vmul.f32 %v4899_v5, %v4893_v44  ;;  %v4898_v47 = vmul.f32 %v4888_v6, %v4888_v6 }
0x2470   : > { %6952 = vtanh.f32 %v4913_v7  ;;  %v4912_v55 = vmul.f32 0.7978846, %v4908_v8 }
0x2471   : > { %v4907_v49 = vmul.f32 0.044715, %v4903_v11  ;;  %v4902_v12 = vmul.f32 %v4898_v47, %v4888_v6 }
0x2472   : > { %6954 = vtanh.f32 %v4912_v55 }
0x2473   : > { %v4911_v24 = vadd.f32 %v4907_v49, %v4893_v44  ;;  %v4906_v19 = vmul.f32 0.044715, %v4902_v12 }
0x2475   : > { %v4915_v20 = vmul.f32 0.7978846, %v4911_v24  ;;  %v4910_v30 = vadd.f32 %v4906_v19, %v4888_v6 }
0x2477   : > { %6956 = vtanh.f32 %v4915_v20  ;;  %v4914_v32 = vmul.f32 0.7978846, %v4910_v30 }
0x2479   : > { %6958 = vtanh.f32 %v4914_v32 }
0x247d   : > { %v6953_v1 = vpop.eup %6952 }
0x247e   : > { %v4921_v26 = vadd.f32 1.0, %v6953_v1 }
0x247f   : > { %v6955_v22 = vpop.eup %6954 }
0x2480   : > { %v4920_v62 = vadd.f32 1.0, %v6955_v22  ;;  %v4925_v13 = vmul.f32 0.5, %v4921_v26 }
0x2482   : > { %v4924_v50 = vmul.f32 0.5, %v4920_v62  ;;  %v4929_v34 = vmul.f32 %v4925_v13, %v4883_v28 }
0x2484   : > { %v6957_v16 = vpop.eup %6956  ;;  %v4928_v18 = vmul.f32 %v4924_v50, %v4878_v61 }
0x2485   : > { %v4923_v63 = vadd.f32 1.0, %v6957_v16 }
0x2486   : > { %v6959_v0 = vpop.eup %6958  ;;  %6607 = vmatprep.mubr.msk.f32.mxu0 %vm3183_vm11, %v4928_v18 }
0x2487   : > { %6608 = vmatmul.mubr.msk.f32.vlgmr.msra.gmra.mxu0 %vm3183_vm11, %v4929_v34  ;;  %v4922_v2 = vadd.f32 1.0, %v6959_v0  ;;  %v4927_v48 = vmul.f32 0.5, %v4923_v63  ;;  %v5100_v0 = vrot.slane %v8178_v23, %v7449_v54 }
0x2489   : > { %v4926_v60 = vmul.f32 0.5, %v4922_v2  ;;  %v4931_v15 = vmul.f32 %v4927_v48, %v4893_v44 }
0x248b   : > { %v4930_v36 = vmul.f32 %v4926_v60, %v4888_v6 }
0x248d   : > { %6610 = vmatprep.mubr.msk.f32.mxu0 %vm3183_vm11, %v4930_v36  ;;  %v5108_v36 = vrot.slane %v8178_v23, %v7456_v10 }
0x248e   : > { %6611 = vmatmul.mubr.msk.f32.gmra.mxu0 %vm3183_vm11, %v4931_v15 }
0x248f   : > { %6657 = vmatprep.mubr.msk.f32.mxu0 %vm7050_vm12, %v7035_v38 }
0x2547   : > { %v6609_v3 = vpop.f32.mrf.mxu0 }
0x2548   : > { %v5028_v21 = vadd.f32 %v6609_v3, %v4943_v31 }
0x2549   : > { %v5022_v33 = vpop.f32.mrf.mxu0 }
0x254a   : > { %v5042_v35 = vadd.f32 %v5028_v21, %v8186_v57  ;;  %v5023_v59 = vadd.f32 %v5022_v33, %v4943_v31 }
0x254c   : > { %v5041_v52 = vadd.f32 %v5023_v59, %v8184_v58  ;;  %v5048_v53 = vsel %vm316_vm2, %v5042_v35, 0.0 }
0x254d   : > { %5049 = vadd.xlane.f32.xlu1 %v5048_v53 }
0x254e   : > { %v6612_v56 = vpop.f32.mrf.mxu0  ;;  %v5045_v37 = vsel %vm316_vm2, %v5041_v52, 0.0 }
0x254f   : > { %v5038_v28 = vadd.f32 %v6612_v56, %v4943_v31  ;;  %5046 = vadd.xlane.f32.xlu0 %v5045_v37 }
0x2550   : > { %v5032_v39 = vpop.f32.mrf.mxu0 }
0x2551   : > { %v5044_v9 = vadd.f32 %v5038_v28, %v8196_v25  ;;  %v5033_v51 = vadd.f32 %v5032_v39, %v4943_v31 }
0x2553   : > { %v5043_v61 = vadd.f32 %v5033_v51, %v8192_v14  ;;  %v5054_v40 = vsel %vm981_vm4, %v5044_v9, 0.0 }
0x2554   : > { %5055 = vadd.xlane.f32.xlu1 %v5054_v40 }
0x2555   : > { %v5051_v57 = vsel %vm316_vm2, %v5043_v61, 0.0 }
0x2556   : > { %5052 = vadd.xlane.f32.xlu0 %v5051_v57 }
0x25d6   : > { %v5050_v58 = vpop.xlane.xlu1 %5049 }
0x25d7   : > { %v5058_v17 = vmul.f32 0.03125, %v5050_v58 }
0x25d8   : > { %v5047_v41 = vpop.xlane.xlu0 %5046 }
0x25d9   : > { %v5062_v42 = vsub.f32 %v5042_v35, %v5058_v17  ;;  %v5057_v43 = vmul.f32 0.03125, %v5047_v41 }
0x25db   : > { %v5061_v44 = vsub.f32 %v5041_v52, %v5057_v43  ;;  %v5066_v45 = vmul.f32 %v5062_v42, %v5062_v42 }
0x25dd   : > { %v5056_v46 = vpop.xlane.xlu1 %5055  ;;  %v5072_v4 = vsel %vm316_vm2, %v5066_v45, 0.0  ;;  %v5065_v25 = vmul.f32 %v5061_v44, %v5061_v44 }
0x25de   : > { %v5060_v5 = vmul.f32 0.03125, %v5056_v46  ;;  %5073 = vadd.xlane.f32.xlu1 %v5072_v4 }
0x25df   : > { %v5053_v14 = vpop.xlane.xlu0 %5052  ;;  %v5069_v6 = vsel %vm316_vm2, %v5065_v25, 0.0 }
0x25e0   : > { %v5064_v7 = vsub.f32 %v5044_v9, %v5060_v5  ;;  %v5059_v8 = vmul.f32 0.03125, %v5053_v14  ;;  %5070 = vadd.xlane.f32.xlu0 %v5069_v6 }
0x25e2   : > { %v5063_v11 = vsub.f32 %v5043_v61, %v5059_v8  ;;  %v5068_v47 = vmul.f32 %v5064_v7, %v5064_v7 }
0x25e4   : > { %v5078_v55 = vsel %vm981_vm4, %v5068_v47, 0.0  ;;  %v5067_v49 = vmul.f32 %v5063_v11, %v5063_v11 }
0x25e5   : > { %5079 = vadd.xlane.f32.xlu1 %v5078_v55 }
0x25e6   : > { %v5075_v12 = vsel %vm316_vm2, %v5067_v49, 0.0 }
0x25e7   : > { %5076 = vadd.xlane.f32.xlu0 %v5075_v12 }
0x2667   : > { %v5074_v24 = vpop.xlane.xlu1 %5073 }
0x2668   : > { %v5082_v19 = vmul.f32 0.03125, %v5074_v24  ;;  %v5167_v24 = vld [vmem:[%s8411_s2 + $0x268] sm:$0xff] }
0x2669   : > { %v5071_v20 = vpop.xlane.xlu0 %5070  ;;  %6613 = vmatprep.subr.mxu1 %v5167_v24 }
0x266a   : > { %v5086_v30 = vadd.f32 1e-05, %v5082_v19  ;;  %v5081_v32 = vmul.f32 0.03125, %v5071_v20  ;;  %v5166_v19 = vld [vmem:[%s8411_s2 + $0x260] sm:$0xff]  ;;  %6614 = vmatpush3.msra.mxu1 %v5167_v24  ;;  %v5165_v20 = vld [vmem:[%s8411_s2 + $0x258] sm:$0xff] }
0x266b   : > { %6615 = vmatprep.subr.mxu1 %v5166_v19 }
0x266c   : > { %6960 = vrsqrt.f32 %v5086_v30  ;;  %v5085_v1 = vadd.f32 1e-05, %v5081_v32  ;;  %6616 = vmatpush3.msra.mxu1 %v5166_v19  ;;  %v5164_v30 = vld [vmem:[%s8411_s2 + $0x250] sm:$0xff]  ;;  %v5280_v32 = vld [vmem:[%s8411_s2 + $0x2a8] sm:$0xff] }
0x266d   : > { %6617 = vmatprep.subr.mxu1 %v5165_v20 }
0x266e   : > { %6962 = vrsqrt.f32 %v5085_v1  ;;  %v5080_v26 = vpop.xlane.xlu1 %5079  ;;  %6618 = vmatpush3.msra.mxu1 %v5165_v20 }
0x266f   : > { %v5084_v22 = vmul.f32 0.03125, %v5080_v26  ;;  %6619 = vmatprep.subr.mxu1 %v5164_v30 }
0x2670   : > { %v5077_v62 = vpop.xlane.xlu0 %5076  ;;  %6620 = vmatpush3.msra.mxu1 %v5164_v30 }
0x2671   : > { %v5088_v13 = vadd.f32 1e-05, %v5084_v22  ;;  %v5083_v50 = vmul.f32 0.03125, %v5077_v62  ;;  %6627 = vmatprep.subr.mxu1 %v5280_v32 }
0x2673   : > { %6964 = vrsqrt.f32 %v5088_v13  ;;  %v5087_v16 = vadd.f32 1e-05, %v5083_v50 }
0x2675   : > { %6966 = vrsqrt.f32 %v5087_v16 }
0x2679   : > { %v6961_v18 = vpop.eup %6960 }
0x267a   : > { %v5094_v63 = vmul.f32 %v6961_v18, %v5062_v42 }
0x267b   : > { %v6963_v34 = vpop.eup %6962 }
0x267c   : > { %v5093_v2 = vmul.f32 %v6963_v34, %v5061_v44  ;;  %v5102_v60 = vmul.f32 %v5100_v0, %v5094_v63 }
0x267e   : > { %v5101_v48 = vmul.f32 %v5100_v0, %v5093_v2  ;;  %v5110_v59 = vadd.f32 %v5108_v36, %v5102_v60 }
0x2680   : > { %v6965_v15 = vpop.eup %6964  ;;  %v5109_v3 = vadd.f32 %v5108_v36, %v5101_v48  ;;  %v5114_v54 = vsel %vm316_vm2, %v5110_v59, 0.0 }
0x2681   : > { %v5096_v31 = vmul.f32 %v6965_v15, %v5064_v7  ;;  %v5278_v15 = vld [vmem:[%s8411_s2 + $0x298] sm:$0xff] }
0x2682   : > { %v6967_v21 = vpop.eup %6966  ;;  %v5113_v53 = vsel %vm316_vm2, %v5109_v3, 0.0 }
0x2683   : > { %v5095_v33 = vmul.f32 %v6967_v21, %v5063_v11  ;;  %v5104_v35 = vmul.f32 %v5100_v0, %v5096_v31  ;;  %v5115_v28 = vadd.f32 %v5114_v54, %v5113_v53  ;;  %v5276_v21 = vld [vmem:[%s8411_s2 + $0x288] sm:$0xff] }
0x2685   : > { %v5103_v52 = vmul.f32 %v5100_v0, %v5095_v33  ;;  %v5112_v37 = vadd.f32 %v5108_v36, %v5104_v35  ;;  %v5275_v33 = vld [vmem:[%s8411_s2 + $0x280] sm:$0xff]  ;;  %v5274_v35 = vld [vmem:[%s8411_s2 + $0x278] sm:$0xff] }
0x2687   : > { %v5111_v56 = vadd.f32 %v5108_v36, %v5103_v52  ;;  %v5118_v10 = vsel %vm981_vm4, %v5112_v37, 0.0  ;;  %v5279_v36 = vld [vmem:[%s8411_s2 + $0x2a0] sm:$0xff]  ;;  %v8300_v52 = vld [vmem:[%s8410_s1 + $0x18] sm:$0xff] }
0x2688   : > { %v5171_v53 = vrot.slane %v8300_v52, %v7188_v27  ;;  %v5398_v27 = vld [vmem:[%s8411_s2 + $0x2c8] sm:$0xff] }
0x2689   : > { %v5116_v39 = vsel %vm316_vm2, %v5111_v56, 0.0  ;;  %6650 = vmatpush3.msra.mxu0 %v5398_v27 }
0x268a   : > { %v5117_v9 = vadd.f32 %v5116_v39, %v5115_v28  ;;  %6651 = vmatprep.subr.mxu0 %v7035_v38 }
0x268c   : > { %v5119_v23 = vadd.f32 %v5118_v10, %v5117_v9 }
0x268e   : > { %5120 = vadd.xlane.f32.xlu0 %v5119_v23 }
0x2717   : > { %v5121_v51 = vpop.xlane.xlu0 %5120 }
0x2718   : > { %v5122_v61 = vrot.slane %v5121_v51, 4 }
0x271a   : > { %v5123_v40 = vadd.f32 %v5122_v61, %v5121_v51 }
0x271c   : > { %v5124_v57 = vrot.slane %v5123_v40, 2 }
0x271e   : > { %v5125_v58 = vadd.f32 %v5124_v57, %v5123_v40 }
0x2720   : > { %v5126_v17 = vrot.slane %v5125_v58, 1 }
0x2722   : > { %v5127_v41 = vadd.f32 %v5126_v17, %v5125_v58  ;;  %v5397_v58 = vld [vmem:[%s8411_s2 + $0x2c0] sm:$0xff]  ;;  %v5396_v17 = vld [vmem:[%s8411_s2 + $0x2b8] sm:$0xff] }
0x2723   : > { %6652 = vmatpush3.msra.mxu0 %v5397_v58 }
0x2724   : > { %6683 = vpush %v5127_v41  ;;  %6653 = vmatprep.subr.mxu0 %v7035_v38  ;;  %v5395_v41 = vld [vmem:[%s8411_s2 + $0x2b0] sm:$0xff] }
0x2725   : > { %6654 = vmatpush3.msra.mxu0 %v5396_v17 }
0x2726   : > { %6655 = vmatprep.subr.mxu0 %v7035_v38 }
0x2727   : > { %6656 = vmatpush3.msra.mxu0 %v5395_v41 }
0x2728   : > { %6660 = vmatprep.subr.mxu0 %v7035_v38 }
0x2755   : > { %s6684_s20 = spop %6683 }
0x2756   : > { %v5129_v42 = vstv %s6684_s20  ;;  %s162_s20 = scalar_lea.vmem [#allocation4], %s161_s17 }
0x2757   : > { %v5131_v43 = vmul.f32 0.0010416667, %v5129_v42  ;;  %s5573_s24 = sshll.u32 %s162_s20, 4  ;;  %s5574_s24 = int_to_ptr.vmem [resolvable:$true] %s5573_s24 }
0x2758   : > { %s6973_s29 = scalar_lea.vmem %s5574_s24, 16  ;;  %p6980_p0 = scmp.lt.s32.totalorder %s5574_s24, %s6978_s16 }
0x2759   : > { %v5132_v44 = vsub.f32 %v5109_v3, %v5131_v43  ;;  %v5133_v45 = vsub.f32 %v5110_v59, %v5131_v43  ;;  %v5134_v46 = vsub.f32 %v5111_v56, %v5131_v43  ;;  %v5135_v4 = vsub.f32 %v5112_v37, %v5131_v43  ;;  %v5277_v3 = vld [vmem:[%s8411_s2 + $0x290] sm:$0xff]  ;;  %p6974_p11 = scmp.ne.s32.totalorder %s5574_s24, %s6973_s29  ;;  %p6981_p1 = scmp.lt.s32.totalorder %s6979_s8, %s6973_s29 }
0x275a   : > { %v5273_v59 = vld [vmem:[%s8411_s2 + $0x270] sm:$0xff]  ;;  %v5284_v43 = vrot.slane %v8300_v52, %v7196_v29 }
0x275b   : > { %v5136_v25 = vmul.f32 %v5132_v44, %v5132_v44  ;;  %v5137_v5 = vmul.f32 %v5133_v45, %v5133_v45  ;;  %v5138_v14 = vmul.f32 %v5134_v46, %v5134_v46  ;;  %v5139_v6 = vmul.f32 %v5135_v4, %v5135_v4  ;;  %p6975_p12 = pnand %p6974_p11, %p7110_p5  ;;  %p6982_p2 = por %p6981_p1, %p6980_p0 }
0x275d   : > { %v5140_v7 = vsel %vm316_vm2, %v5136_v25, 0.0  ;;  %v5141_v8 = vsel %vm316_vm2, %v5137_v5, 0.0  ;;  %v5143_v47 = vsel %vm316_vm2, %v5138_v14, 0.0  ;;  %v5145_v49 = vsel %vm981_vm4, %v5139_v6, 0.0  ;;  %p6976_p13 = pneg %p6975_p12 }
0x275e   : > { %v5142_v11 = vadd.f32 %v5141_v8, %v5140_v7 }
0x275f   : > { %p6983_p3 = pnand %p6982_p2, %p6976_p13 }
0x2760   : > { %v5144_v55 = vadd.f32 %v5143_v47, %v5142_v11 }
0x2762   : > { %v5146_v12 = vadd.f32 %v5145_v49, %v5144_v55 }
0x2764   : > { %5147 = vadd.xlane.f32.xlu1 %v5146_v12 }
0x27ed   : > { %v5148_v1 = vpop.xlane.xlu1 %5147 }
0x27ee   : > { %v5149_v26 = vrot.slane %v5148_v1, 4 }
0x27f0   : > { %v5150_v22 = vadd.f32 %v5149_v26, %v5148_v1  ;;  %v5482_v1 = vld [vmem:[%s8411_s2 + $0x300] sm:$0xff]  ;;  %v5481_v26 = vld [vmem:[%s8411_s2 + $0x2f8] sm:$0xff] }
0x27f2   : > { %v5151_v62 = vrot.slane %v5150_v22, 2 }
0x27f4   : > { %v5152_v13 = vadd.f32 %v5151_v62, %v5150_v22  ;;  %v5480_v22 = vld [vmem:[%s8411_s2 + $0x2f0] sm:$0xff]  ;;  %v5479_v62 = vld [vmem:[%s8411_s2 + $0x2e8] sm:$0xff] }
0x27f6   : > { %v5153_v50 = vrot.slane %v5152_v13, 1 }
0x27f8   : > { %v5154_v16 = vadd.f32 %v5153_v50, %v5152_v13  ;;  %v5478_v13 = vld [vmem:[%s8411_s2 + $0x2e0] sm:$0xff]  ;;  %v5477_v50 = vld [vmem:[%s8411_s2 + $0x2d8] sm:$0xff] }
0x27fa   : > { %6685 = vpush %v5154_v16  ;;  %v5476_v16 = vld [vmem:[%s8411_s2 + $0x2d0] sm:$0xff] }
0x282b   : > { %s6686_s11 = spop %6685 }
0x282c   : > { %v5156_v18 = vstv %s6686_s11 }
0x282d   : > { %v5157_v34 = vmul.f32 0.0010416667, %v5156_v18  ;;  %v5400_v18 = vrot.slane %v8300_v52, 2 }
0x282f   : > { %v5158_v63 = vadd.f32 1e-05, %v5157_v34 }
0x2831   : > { %6968 = vrsqrt.f32 %v5158_v63 }
0x283e   : > { %v6969_v0 = vpop.eup %6968 }
0x283f   : > { %v5160_v2 = vmul.f32 %v6969_v0, %v5132_v44  ;;  %v5161_v48 = vmul.f32 %v6969_v0, %v5133_v45  ;;  %v5162_v60 = vmul.f32 %v6969_v0, %v5134_v46  ;;  %v5163_v31 = vmul.f32 %v6969_v0, %v5135_v4 }
0x2841   : > { %6621 = vmatprep.mubr.msk.f32.mxu1 %vm316_vm2, %v5160_v2 }
0x2842   : > { %6622 = vmatmul.mubr.msk.f32.vlgmr.msra.gmra.mxu1 %vm316_vm2, %v5161_v48  ;;  %v5484_v48 = vrot.slane %v8300_v52, 3 }
0x2843   : > { %6624 = vmatprep.mubr.msk.f32.mxu1 %vm316_vm2, %v5162_v60  ;;  %6628 = vmatpush3.msra.mxu1 %v5280_v32  ;;  %v5483_v32 = vld [vmem:[%s8411_s2 + $0x308] sm:$0xff] }
0x2844   : > { %6629 = vmatprep.subr.mxu1 %v5279_v36 }
0x2845   : > { %6630 = vmatpush3.msra.mxu1 %v5279_v36 }
0x2846   : > { %6625 = vmatmul.mubr.msk.f32.gmra.mxu1 %vm316_vm2, %v5163_v31  ;;  %6631 = vmatprep.subr.mxu1 %v5278_v15 }
0x2847   : > { %6632 = vmatpush3.msra.mxu1 %v5278_v15 }
0x2848   : > { %6633 = vmatprep.subr.mxu1 %v5277_v3 }
0x2849   : > { %6634 = vmatpush3.msra.mxu1 %v5277_v3 }
0x284a   : > { %6635 = vmatprep.subr.mxu1 %v5276_v21 }
0x284b   : > { %6636 = vmatpush3.msra.mxu1 %v5276_v21 }
0x284c   : > { %6637 = vmatprep.subr.mxu1 %v5275_v33 }
0x284d   : > { %6638 = vmatpush3.msra.mxu1 %v5275_v33 }
0x284e   : > { %6639 = vmatprep.subr.mxu1 %v5274_v35 }
0x284f   : > { %6640 = vmatpush3.msra.mxu1 %v5274_v35 }
0x2850   : > { %6641 = vmatprep.subr.mxu1 %v5273_v59 }
0x2851   : > { %6642 = vmatpush3.msra.mxu1 %v5273_v59 }
0x2902   : > { %v6623_v56 = vpop.f32.mrf.mxu1 }
0x2903   : > { %v5256_v37 = vadd.f32 %v6623_v56, %v5171_v53 }
0x2904   : > { %v5250_v54 = vpop.f32.mrf.mxu1 }
0x2905   : > { %v5251_v28 = vadd.f32 %v5250_v54, %v5171_v53  ;;  %v5270_v10 = vmax.f32 %v5256_v37, 0.0 }
0x2906   : > { %v6626_v39 = vpop.f32.mrf.mxu1 }
0x2907   : > { %v5269_v9 = vmax.f32 %v5251_v28, 0.0  ;;  %v5266_v23 = vadd.f32 %v6626_v39, %v5171_v53 }
0x2908   : > { %v5260_v51 = vpop.f32.mrf.mxu1 }
0x2909   : > { %v5261_v61 = vadd.f32 %v5260_v51, %v5171_v53  ;;  %6643 = vmatprep.mubr.msk.f32.mxu1 %vm3183_vm11, %v5269_v9  ;;  %v5272_v57 = vmax.f32 %v5266_v23, 0.0 }
0x290a   : > { %6644 = vmatmul.mubr.msk.f32.vlgmr.msra.gmra.mxu1 %vm3183_vm11, %v5270_v10 }
0x290b   : > { %v5271_v40 = vmax.f32 %v5261_v61, 0.0 }
0x290d   : > { %6646 = vmatprep.mubr.msk.f32.mxu1 %vm3183_vm11, %v5271_v40 }
0x290e   : > { %6647 = vmatmul.mubr.msk.f32.gmra.mxu1 %vm3183_vm11, %v5272_v57 }
0x29ca   : > { %v6645_v42 = vpop.f32.mrf.mxu1 }
0x29cb   : > { %v5369_v4 = vadd.f32 %v6645_v42, %v5284_v43 }
0x29cc   : > { %v5363_v44 = vpop.f32.mrf.mxu1 }
0x29cd   : > { %v5364_v45 = vadd.f32 %v5363_v44, %v5284_v43  ;;  %v5383_v7 = vsel %vm316_vm2, %v5369_v4, -inf }
0x29ce   : > { %v6648_v46 = vpop.f32.mrf.mxu1 }
0x29cf   : > { %v5379_v25 = vadd.f32 %v6648_v46, %v5284_v43  ;;  %v5382_v14 = vsel %vm316_vm2, %v5364_v45, -inf }
0x29d0   : > { %v5373_v5 = vpop.f32.mrf.mxu1  ;;  %v5386_v47 = vmax.f32 %v5382_v14, %v5383_v7 }
0x29d1   : > { %v5374_v6 = vadd.f32 %v5373_v5, %v5284_v43  ;;  %v5385_v8 = vsel %vm981_vm4, %v5379_v25, -inf }
0x29d3   : > { %v5384_v11 = vsel %vm316_vm2, %v5374_v6, -inf }
0x29d4   : > { %v5387_v55 = vmax.f32 %v5384_v11, %v5385_v8 }
0x29d6   : > { %v5388_v49 = vmax.f32 %v5386_v47, %v5387_v55 }
0x29d8   : > { %v5389_v12 = vrot.slane %v5388_v49, 4 }
0x29da   : > { %v5390_v29 = vmax.f32 %v5388_v49, %v5389_v12 }
0x29dc   : > { %v5391_v24 = vrot.slane %v5390_v29, 2 }
0x29de   : > { %v5392_v19 = vmax.f32 %v5390_v29, %v5391_v24 }
0x29e0   : > { %v5393_v20 = vrot.slane %v5392_v19, 1 }
0x29e2   : > { %v5394_v30 = vmax.f32 %v5392_v19, %v5393_v20 }
0x29e4   : > { %6658 = vmatmul.mubr.msk.f32.vlgmr.msra.gmra.mxu0 %vm316_vm2, %v5394_v30 }
0x29e5   : > { %6661 = vmatpush3.msra.mxu0 %v5483_v32  ;;  %6676 = vmatprep.mubr.msk.f32.mxu0 %vm7050_vm12, %v7035_v38 }
0x29e6   : > { %6662 = vmatprep.subr.mxu0 %v7035_v38 }
0x29e7   : > { %6663 = vmatpush3.msra.mxu0 %v5482_v1 }
0x29e8   : > { %6664 = vmatprep.subr.mxu0 %v7035_v38 }
0x29e9   : > { %6665 = vmatpush3.msra.mxu0 %v5481_v26 }
0x29ea   : > { %6666 = vmatprep.subr.mxu0 %v7035_v38 }
0x29eb   : > { %6667 = vmatpush3.msra.mxu0 %v5480_v22 }
0x29ec   : > { %6668 = vmatprep.subr.mxu0 %v7035_v38 }
0x29ed   : > { %6669 = vmatpush3.msra.mxu0 %v5479_v62 }
0x29ee   : > { %6670 = vmatprep.subr.mxu0 %v7035_v38 }
0x29ef   : > { %6671 = vmatpush3.msra.mxu0 %v5478_v13 }
0x29f0   : > { %6672 = vmatprep.subr.mxu0 %v7035_v38 }
0x29f1   : > { %6673 = vmatpush3.msra.mxu0 %v5477_v50 }
0x29f2   : > { %6674 = vmatprep.subr.mxu0 %v7035_v38 }
0x29f3   : > { %6675 = vmatpush3.msra.mxu0 %v5476_v16 }
0x2aa4   : > { %v5471_v34 = vpop.f32.mrf.mxu0 }
0x2aa5   : > { %v5472_v63 = vadd.f32 %v5471_v34, %v5400_v18 }
0x2aa6   : > { %v6659_v0 = vpop.f32.mrf.mxu0 }
0x2aa7   : > { %v5475_v2 = vmax.f32 %v5472_v63, 0.0 }
0x2aa9   : > { %6677 = vmatmul.mubr.msk.f32.vlgmr.msra.gmra.mxu0 %vm3183_vm11, %v5475_v2 }
0x2b69   : > { %v5555_v60 = vpop.f32.mrf.mxu0 }
0x2b6a   : > { %v5556_v36 = vadd.f32 %v5555_v60, %v5484_v48 }
0x2b6b   : > { %v6678_v38 = vpop.f32.mrf.mxu0 }
0x2b6c   : > { %5559 = vst [vmem:[%s162_s20] sm:$0x1] %v5556_v36 }
0x2b6d   : > { %6986 = shalt.err (!%p6983_p3)
}
0x2b6e   : > { %s6987_s9 = scalar_lea.hbm %s8374_s27, 16  ;;  %s6991_s4 = scalar_lea.hbm %s8412_s3, 32 }
0x2b6f   : > { %p6988_p4 = scmp.ne.s32.totalorder %s8374_s27, %s6987_s9  ;;  %p6992_p9 = scmp.lt.s32.totalorder %s8374_s27, %s8412_s3 }
0x2b70   : > { %p6993_p10 = scmp.lt.s32.totalorder %s6991_s4, %s6987_s9 }
0x2b71   : > { %p6989_p7 = pnand %p6988_p4, %p7110_p5 }
0x2b72   : > { %p6994_p11 = por %p6993_p10, %p6992_p9 }
0x2b73   : > { %p6990_p8 = pneg %p6989_p7 }
0x2b75   : > { %p6995_p12 = pnand %p6994_p11, %p6990_p8 }
0x2b77   : > { %6998 = shalt.err (!%p6995_p12)
}
0x2b78   : > { %6687 = dma.vmem_to_hbm [thread:$0]  (%p7110_p5), %s5574_s24, 16, %s8374_s27, %s5561_s28  }
0x2b79 PF: > { %p6693_p13 = scmp.ge.s32.totalorder %s7033_s15, 2  ;;  %s5585_s6 = sand.u32 1, %s7021_s12  }
0x2b7a   : > { %s5586_s17 = scalar_lea.sflag [#allocation5], %s5585_s6 }
0x2b7b   : > { %p6690_p0 = pnand %p6693_p13, %p7114_p6 }
0x2b7d   : > { %p6691_p1 = pneg %p6690_p0 }
0x2b7f   : > { %7016 = dma.done.wait (%p6691_p1), %s5586_s17, 16  }
0x2b80   : > { %7018 = vsyncadd (%p6691_p1), %s5586_s17, 4294967280  ;;  %p13_p2 = scmp.ge.s32.totalorder %s7097_s18, 4   ;;  %s8427_s12 = smov %s7025_s13 }
0x2b81   : > { %s8428_s13 = smov %s7029_s14  ;;  %s8429_s14 = smov %s7108_s21 }
0x2b82   : > { %s8430_s15 = smov %s7097_s18  ;;  %15 = sbr.rel (!%p13_p2) target bundleno = 3 (0x3), region = 82 }
0x2b87   :  { %5590 = vsyncpa [#allocation5], 1 }
0x2b88   :  { %5592 = vsyncpa [#allocation5 + $0x1], 1 }

</bundles_post_ra>
